<compile_context>
chip_gen: v7x
topology: tpu7x:2x2x1
jax: 0.10.0
libtpu: 0.0.40
codegen_flags: <defaults>
</compile_context>

<pallas_src>
import functools
import jax
import jax.numpy as jnp
from jax.experimental import pallas as pl
from jax.experimental.pallas import tpu as pltpu


def _round_up(x, m):
    return ((x + m - 1) // m) * m


# --------------------------------------------------------------------------
# Pallas kernel 1: fused 3x3 "same" conv (+bias, +optional ReLU), multi-output
# --------------------------------------------------------------------------
def _conv3x3_kernel(x_ref, w_ref, b_ref, *out_refs, H, W, Wp, relu, splits):
    # x_ref: (1, R, Cin)  zero-padded image rows flattened with row stride Wp
    # w_ref: (9, Cin, Ctot) bf16 ; b_ref: (1, Ctot) f32
    hw = H * Wp
    ctot = w_ref.shape[-1]
    acc = jnp.zeros((hw, ctot), jnp.float32)
    # im2col fused: each 3x3 tap is a contiguous row-band of the padded frame,
    # so the conv is 9 accumulated MXU matmuls on slices of one VMEM block.
    for di in range(3):
        for dj in range(3):
            start = di * Wp + dj
            a = x_ref[0, start:start + hw, :]                 # (H*Wp, Cin)
            acc = acc + jnp.dot(a, w_ref[3 * di + dj],
                                preferred_element_type=jnp.float32)
    acc = acc + b_ref[...]
    if relu:
        acc = jnp.maximum(acc, 0.0)
    val = acc.reshape(H, Wp, ctot)[:, :W, :]                  # drop width pad
    c0 = 0
    for o_ref, cs in zip(out_refs, splits):
        o_ref[0] = val[:, :, c0:c0 + cs].astype(o_ref.dtype)
        c0 += cs


def conv3x3(x_nhwc, w9, bias, *, splits, relu, out_dtype):
    """3x3 'same' conv. w9: (9, Cin, Ctot), tap order (di, dj); bias: (Ctot,).
    Returns a tuple of NHWC outputs whose channel counts are `splits`."""
    N, H, W, Cin = x_nhwc.shape
    Ctot = w9.shape[-1]
    assert sum(splits) == Ctot
    # TODO(synk): for very large H*W the whole padded image is held per batch
    # step; add row-band spatial tiling for big images (fine at SR-block sizes).
    Wp = _round_up(W + 2, 8)
    xp = jnp.pad(x_nhwc.astype(jnp.bfloat16),
                 ((0, 0), (1, 2), (1, Wp - W - 1), (0, 0)))   # (N, H+3, Wp, Cin)
    R = (H + 3) * Wp
    x_flat = xp.reshape(N, R, Cin)

    out_shape = tuple(jax.ShapeDtypeStruct((N, H, W, s), out_dtype)
                      for s in splits)
    out_specs = tuple(pl.BlockSpec((1, H, W, s), lambda n: (n, 0, 0, 0))
                      for s in splits)

    return pl.pallas_call(
        functools.partial(_conv3x3_kernel, H=H, W=W, Wp=Wp, relu=relu,
                          splits=splits),
        out_shape=out_shape,
        grid_spec=pl.GridSpec(
            grid=(N,),
            in_specs=[
                pl.BlockSpec((1, R, Cin), lambda n: (n, 0, 0)),
                pl.BlockSpec((9, Cin, Ctot), lambda n: (0, 0, 0)),
                pl.BlockSpec((1, Ctot), lambda n: (0, 0)),
            ],
            out_specs=out_specs,
        ),
        compiler_params=pltpu.CompilerParams(
            dimension_semantics=("parallel",),
            vmem_limit_bytes=32 * 1024 * 1024),
    )(x_flat, w9.astype(jnp.bfloat16),
      bias.reshape(1, Ctot).astype(jnp.float32))


# --------------------------------------------------------------------------
# Pallas kernel 2: LSH attention, all chunks of one (batch, hash) per step.
#   Adjacent-bucket (k-1 / k / k+1) key windows are formed in-kernel; the
#   fc-score MLP runs as two weight-stationary 2-D GEMMs; keys live on the
#   sublane axis so no transposes or broadcast weights are needed.
# --------------------------------------------------------------------------
def _gla_attn_kernel(x_ref, xm_ref, y_ref, fc_ref,
                     w1_ref, b1_ref, w2_ref, b2_ref,
                     ret_ref, lse_ref):
    x = x_ref[0, 0]        # (NK, CH, Cs)  queries (un-normalized)
    xm = xm_ref[0, 0]      # (NK, CH, Cs)  keys (L2-normalized), un-tripled
    y = y_ref[0, 0]        # (NK, CH, C)   values
    fc = fc_ref[0, 0]      # (NK, CH, C)   fc-score inputs

    nk, ch, _ = x.shape
    c = y.shape[-1]

    # fc MLP on the *un-tripled* rows: Linear(C->CH) + ReLU + Linear(CH->CH).
    # Two plain 2-D GEMMs (no NK-broadcast of w2, no batched einsum); b1/b2 are
    # (1, CH) row vectors added on the lane axis.
    h1 = jnp.dot(fc.reshape(nk * ch, c), w1_ref[...],
                 preferred_element_type=jnp.float32) + b1_ref[...]
    h1 = jnp.maximum(h1, 0.0).astype(jnp.bfloat16)
    g = jnp.dot(h1, w2_ref[...],
                preferred_element_type=jnp.float32) + b2_ref[...]
    g = g.reshape(nk, ch, ch)            # g[k, j_key, i_query]

    # adjacent buckets formed in-kernel (circular shift along the chunk axis)
    if nk > 1:
        def back(a):                     # chunk k sees chunk k-1 (wrap)
            return jnp.concatenate([a[nk - 1:], a[:nk - 1]], axis=0)

        def fwd(a):                      # chunk k sees chunk k+1 (wrap)
            return jnp.concatenate([a[1:], a[:1]], axis=0)
    else:
        back = fwd = lambda a: a

    # raw scores with keys on the sublane axis: s[k, j_key, i_query]
    def scores(keys):
        return jax.lax.dot_general(keys, x, (((2,), (2,)), ((0,), (0,))),
                                   preferred_element_type=jnp.float32)

    s0 = scores(xm) + g
    sb = scores(back(xm)) + back(g)
    sf = scores(fwd(xm)) + fwd(g)

    # softmax / logsumexp over the (3x) key axis (axis=1)
    m = jnp.maximum(jnp.maximum(jnp.max(s0, axis=1), jnp.max(sb, axis=1)),
                    jnp.max(sf, axis=1))                          # (NK, CH)
    mb = m[:, None, :]
    e0 = jnp.exp(s0 - mb)
    eb = jnp.exp(sb - mb)
    ef = jnp.exp(sf - mb)
    den = jnp.sum(e0, axis=1) + jnp.sum(eb, axis=1) + jnp.sum(ef, axis=1)
    lse = m + jnp.log(den)
    inv = pl.reciprocal(den, approx=True)[:, None, :]

    def weighted(e, vals):
        p = (e * inv).astype(jnp.bfloat16)
        return jax.lax.dot_general(p, vals, (((1,), (1,)), ((0,), (0,))),
                                   preferred_element_type=jnp.float32)

    ret = weighted(e0, y) + weighted(eb, back(y)) + weighted(ef, fwd(y))

    # TODO(synk): ret stays (NK, CH, C) (bf16) rather than a lane-flattened
    # (NK, CH*C) slab to avoid an in-kernel sublane->lane relayout.
    ret_ref[0, 0] = ret.astype(ret_ref.dtype)
    lse_ref[0, 0] = lse.astype(lse_ref.dtype)


def gla_attention(x_att, x_match, y_att, fc_att, w1, b1, w2, b2):
    # TODO(synk): the chunk (NK) axis is not tiled; for very large images on
    # v7x add a +-1-chunk halo and tile NK to bound the per-step VMEM block.
    N, NH, NK, CH, Cs = x_att.shape
    C = y_att.shape[-1]
    bf = jnp.bfloat16
    ret, lse = pl.pallas_call(
        _gla_attn_kernel,
        out_shape=(jax.ShapeDtypeStruct((N, NH, NK, CH, C), bf),
                   jax.ShapeDtypeStruct((N, NH, NK, CH), jnp.float32)),
        grid_spec=pl.GridSpec(
            grid=(N, NH),
            in_specs=[
                pl.BlockSpec((1, 1, NK, CH, Cs), lambda n, h: (n, h, 0, 0, 0)),
                pl.BlockSpec((1, 1, NK, CH, Cs), lambda n, h: (n, h, 0, 0, 0)),
                pl.BlockSpec((1, 1, NK, CH, C), lambda n, h: (n, h, 0, 0, 0)),
                pl.BlockSpec((1, 1, NK, CH, C), lambda n, h: (n, h, 0, 0, 0)),
                pl.BlockSpec((C, CH), lambda n, h: (0, 0)),
                pl.BlockSpec((1, CH), lambda n, h: (0, 0)),
                pl.BlockSpec((CH, CH), lambda n, h: (0, 0)),
                pl.BlockSpec((1, CH), lambda n, h: (0, 0)),
            ],
            out_specs=(
                pl.BlockSpec((1, 1, NK, CH, C), lambda n, h: (n, h, 0, 0, 0)),
                pl.BlockSpec((1, 1, NK, CH), lambda n, h: (n, h, 0, 0)),
            ),
        ),
        compiler_params=pltpu.CompilerParams(
            dimension_semantics=("parallel", "parallel"),
            vmem_limit_bytes=32 * 1024 * 1024),
    )(x_att, x_match, y_att, fc_att,
      w1.astype(bf), b1.reshape(1, CH).astype(jnp.float32),
      w2.astype(bf), b2.reshape(1, CH).astype(jnp.float32))
    return ret, lse


# --------------------------------------------------------------------------
# Plain-JAX glue: LSH hashing / sort / gather (data-dependent permutes)
# --------------------------------------------------------------------------
def sblsh(x_embed, rotations, n_hashes, hash_buckets):
    # x_embed: (N, L, f) (bf16 ok), rotations: (n_hashes, f, hash_buckets) f32
    N, L, _ = x_embed.shape
    rotated = jnp.einsum('blf,hfi->bhli', x_embed.astype(jnp.float32),
                         rotations)
    hash_codes = jnp.argmax(rotated, axis=-1)                   # (N, nh, L)
    offsets = (jnp.arange(n_hashes) * hash_buckets).reshape(1, n_hashes, 1)
    return (hash_codes + offsets).reshape(N, n_hashes * L)


def batched_index_select(values, indices):
    return jnp.take_along_axis(values, indices[:, :, None], axis=1)


# --------------------------------------------------------------------------
# GLA forward (channels=C, reduction, chunk_size, n_hashes; res_scale=1 here)
# --------------------------------------------------------------------------
def gla_forward(x_nhwc, params, *, chunk_size, n_hashes, reduction, res_scale):
    N, H, W, C = x_nhwc.shape
    L = H * W
    Cs = C // reduction
    bf = jnp.bfloat16

    # One fused conv kernel (input read once) with three bf16 outputs; no
    # post-kernel channel slicing in HBM.
    w_all = jnp.concatenate(
        [params['w_match'], params['w_asm'], params['w_asm_fc']], axis=-1)
    b_all = jnp.concatenate(
        [params['b_match'], params['b_asm'], params['b_asm_fc']], axis=0)
    x_e, y_e, fc_e = conv3x3(x_nhwc, w_all, b_all, splits=(Cs, C, C),
                             relu=True, out_dtype=bf)
    x_embed = x_e.reshape(N, L, Cs)
    y_embed = y_e.reshape(N, L, C)
    fc_embed = fc_e.reshape(N, L, C)

    hash_buckets = min(L // chunk_size + (L // chunk_size) % 2, 128)
    hash_codes = sblsh(x_embed, params['rotations'], n_hashes, hash_buckets)
    indices = jnp.argsort(hash_codes, axis=-1)
    undo_sort = jnp.argsort(indices, axis=-1)
    mod_indices = indices % L

    x_sorted = batched_index_select(x_embed, mod_indices)
    y_sorted = batched_index_select(y_embed, mod_indices)
    fc_sorted = batched_index_select(fc_embed, mod_indices)

    padding = (chunk_size - L % chunk_size) if (L % chunk_size != 0) else 0
    x_att = x_sorted.reshape(N, n_hashes, L, Cs)
    y_att = y_sorted.reshape(N, n_hashes, L, C)
    fc_att = fc_sorted.reshape(N, n_hashes, L, C)
    if padding:
        x_att = jnp.concatenate([x_att, x_att[:, :, -padding:, :]], axis=2)
        y_att = jnp.concatenate([y_att, y_att[:, :, -padding:, :]], axis=2)
        fc_att = jnp.concatenate([fc_att, fc_att[:, :, -padding:, :]], axis=2)

    n_chunks = x_att.shape[2] // chunk_size
    x_att = x_att.reshape(N, n_hashes, n_chunks, chunk_size, Cs)
    y_att = y_att.reshape(N, n_hashes, n_chunks, chunk_size, C)
    fc_att = fc_att.reshape(N, n_hashes, n_chunks, chunk_size, C)

    # F.normalize(p=2, dim=-1, eps=5e-5)
    nrm = jnp.sqrt(jnp.sum(jnp.square(x_att.astype(jnp.float32)),
                           axis=-1, keepdims=True))
    x_match = (x_att.astype(jnp.float32) / jnp.maximum(nrm, 5e-5)).astype(bf)

    # Un-tripled inputs: adjacent buckets are formed inside the kernel.
    ret, lse = gla_attention(x_att, x_match, y_att, fc_att,
                             params['fc_w1'], params['fc_b1'],
                             params['fc_w2'], params['fc_b2'])

    bucket_score = lse.reshape(N, n_hashes, n_chunks * chunk_size)
    ret = ret.reshape(N, n_hashes, n_chunks * chunk_size, C)
    if padding:
        ret = ret[:, :, :-padding, :]
        bucket_score = bucket_score[:, :, :-padding]
    ret = ret.reshape(N, n_hashes * L, C)
    bucket_score = bucket_score.reshape(N, n_hashes * L)

    ret = batched_index_select(ret, undo_sort)
    bucket_score = jnp.take_along_axis(bucket_score, undo_sort, axis=1)

    ret = ret.reshape(N, n_hashes, L, C).astype(jnp.float32)
    bucket_score = bucket_score.reshape(N, n_hashes, L, 1)
    probs = jax.nn.softmax(bucket_score, axis=1)
    ret = jnp.sum(ret * probs, axis=1).reshape(N, H, W, C)
    return ret * res_scale + x_nhwc


# --------------------------------------------------------------------------
# GLAM forward = GLA body + 3x3 conv + res_scale + residual
# --------------------------------------------------------------------------
def glam_forward(x, params, *, chunk_size, n_hashes, reduction, res_scale):
    res = gla_forward(x, params, chunk_size=chunk_size, n_hashes=n_hashes,
                      reduction=reduction, res_scale=1.0)
    (res,) = conv3x3(res, params['w_conv1'], params['b_conv1'],
                     splits=(x.shape[-1],), relu=False, out_dtype=jnp.float32)
    return res * res_scale + x


# --------------------------------------------------------------------------
# Deterministic parameter init (synthetic; mirrors the module's shapes)
# --------------------------------------------------------------------------
def init_params(key, C, reduction, chunk_size, n_hashes, hash_buckets, k=3):
    Cs = C // reduction
    keys = jax.random.split(key, 10)

    def w(k_, shape, scale=0.05):
        return jax.random.normal(k_, shape, jnp.float32) * scale

    p = {}
    p['w_match'] = w(keys[0], (k * k, C, Cs))      # (9, Cin, Cout), tap (di,dj)
    p['b_match'] = jnp.zeros((Cs,), jnp.float32)
    p['w_asm'] = w(keys[1], (k * k, C, C))
    p['b_asm'] = jnp.zeros((C,), jnp.float32)
    p['w_asm_fc'] = w(keys[2], (k * k, C, C))
    p['b_asm_fc'] = jnp.zeros((C,), jnp.float32)
    p['fc_w1'] = w(keys[3], (C, chunk_size), 0.1)
    p['fc_b1'] = w(keys[4], (chunk_size,), 0.01)
    p['fc_w2'] = w(keys[5], (chunk_size, chunk_size), 0.1)
    p['fc_b2'] = w(keys[6], (chunk_size,), 0.01)
    p['w_conv1'] = w(keys[7], (k * k, C, C))
    p['b_conv1'] = jnp.zeros((C,), jnp.float32)

    # TODO(synk): the PyTorch module draws fresh unseeded orthogonal rotations
    # every forward; we use fixed deterministic rotations instead.
    rots = []
    rkey = keys[8]
    d = max(Cs, hash_buckets)
    for _ in range(n_hashes):
        rkey, sub = jax.random.split(rkey)
        q, _ = jnp.linalg.qr(jax.random.normal(sub, (d, d), jnp.float32))
        rots.append(q[:Cs, :hash_buckets])
    p['rotations'] = jnp.stack(rots, axis=0)    # (n_hashes, Cs, hash_buckets)
    return p


if __name__ == "__main__":
    # small shapes consistent with the module
    N, H, W = 2, 8, 8
    n_feat = 32          # channels
    reduction = 4
    chunk_size = 16
    n_hashes = 2
    res_scale = 0.5      # GLAM's res_scale (GLA's is fixed to 1 inside GLAM)

    L = H * W
    hash_buckets = min(L // chunk_size + (L // chunk_size) % 2, 128)

    key = jax.random.PRNGKey(0)
    kx, kp = jax.random.split(key)
    x = jax.random.normal(kx, (N, H, W, n_feat), jnp.float32)   # NHWC input
    params = init_params(kp, n_feat, reduction, chunk_size, n_hashes,
                         hash_buckets)

    fwd = jax.jit(functools.partial(glam_forward, chunk_size=chunk_size,
                                    n_hashes=n_hashes, reduction=reduction,
                                    res_scale=res_scale))
    out = fwd(x, params)
    jax.block_until_ready(out)
    assert out.shape == (N, H, W, n_feat)
    assert bool(jnp.all(jnp.isfinite(out)))
    print("KERNEL_OK")
</pallas_src>

<mosaic_0001>
module attributes {stable_mosaic.version = 11 : i64} {
  func.func @_conv3x3_kernel(%arg0: i32, %arg1: memref<1x176x32xbf16, #tpu.memory_space<vmem>>, %arg2: memref<9x32x72xbf16, #tpu.memory_space<vmem>>, %arg3: memref<1x72xf32, #tpu.memory_space<vmem>>, %arg4: memref<1x8x8x8xbf16, #tpu.memory_space<vmem>>, %arg5: memref<1x8x8x32xbf16, #tpu.memory_space<vmem>>, %arg6: memref<1x8x8x32xbf16, #tpu.memory_space<vmem>>) attributes {dimension_semantics = [#tpu.dimension_semantics<parallel>], iteration_bounds = array<i64: 2>, scalar_prefetch = 0 : i64, scratch_operands = 0 : i64, tpu.core_type = #tpu.core_type<tc>, window_params = [{transform_indices = @transform_0, window_bounds = array<i64: 1, 176, 32>}, {pipeline_mode = #tpu.pipeline_mode<synchronous>, transform_indices = @transform_1, window_bounds = array<i64: 9, 32, 72>}, {pipeline_mode = #tpu.pipeline_mode<synchronous>, transform_indices = @transform_2, window_bounds = array<i64: 1, 72>}, {transform_indices = @transform_3, window_bounds = array<i64: 1, 8, 8, 8>}, {transform_indices = @transform_4, window_bounds = array<i64: 1, 8, 8, 32>}, {transform_indices = @transform_5, window_bounds = array<i64: 1, 8, 8, 32>}]} {
    %cst = arith.constant 0.000000e+00 : f32
    %0 = vector.broadcast %cst : f32 to vector<128x72xf32>
    %c0 = arith.constant 0 : index
    %c0_0 = arith.constant 0 : index
    %c0_1 = arith.constant 0 : index
    %1 = vector.load %arg1[%c0, %c0_0, %c0_1] : memref<1x176x32xbf16, #tpu.memory_space<vmem>>, vector<1x128x32xbf16>
    %2 = vector.shape_cast %1 : vector<1x128x32xbf16> to vector<128x32xbf16>
    %c0_2 = arith.constant 0 : index
    %c0_3 = arith.constant 0 : index
    %c0_4 = arith.constant 0 : index
    %3 = vector.load %arg2[%c0_2, %c0_3, %c0_4] : memref<9x32x72xbf16, #tpu.memory_space<vmem>>, vector<1x32x72xbf16>
    %4 = vector.shape_cast %3 : vector<1x32x72xbf16> to vector<32x72xbf16>
    %cst_5 = arith.constant dense<0.000000e+00> : vector<128x72xf32>
    %5 = tpu.matmul %2, %4, %cst_5 {dimension_numbers = #tpu.dot_dimension_numbers<[1], [0], [0], [1], [0, 0, 1, 1], [], []>} : vector<128x32xbf16>, vector<32x72xbf16>, vector<128x72xf32> -> vector<128x72xf32>
    %6 = arith.addf %0, %5 : vector<128x72xf32>
    %c0_6 = arith.constant 0 : index
    %c1 = arith.constant 1 : index
    %c0_7 = arith.constant 0 : index
    %7 = vector.load %arg1[%c0_6, %c1, %c0_7] : memref<1x176x32xbf16, #tpu.memory_space<vmem>>, vector<1x128x32xbf16>
    %8 = vector.shape_cast %7 : vector<1x128x32xbf16> to vector<128x32xbf16>
    %c1_8 = arith.constant 1 : index
    %c0_9 = arith.constant 0 : index
    %c0_10 = arith.constant 0 : index
    %9 = vector.load %arg2[%c1_8, %c0_9, %c0_10] : memref<9x32x72xbf16, #tpu.memory_space<vmem>>, vector<1x32x72xbf16>
    %10 = vector.shape_cast %9 : vector<1x32x72xbf16> to vector<32x72xbf16>
    %cst_11 = arith.constant dense<0.000000e+00> : vector<128x72xf32>
    %11 = tpu.matmul %8, %10, %cst_11 {dimension_numbers = #tpu.dot_dimension_numbers<[1], [0], [0], [1], [0, 0, 1, 1], [], []>} : vector<128x32xbf16>, vector<32x72xbf16>, vector<128x72xf32> -> vector<128x72xf32>
    %12 = arith.addf %6, %11 : vector<128x72xf32>
    %c0_12 = arith.constant 0 : index
    %c2 = arith.constant 2 : index
    %c0_13 = arith.constant 0 : index
    %13 = vector.load %arg1[%c0_12, %c2, %c0_13] : memref<1x176x32xbf16, #tpu.memory_space<vmem>>, vector<1x128x32xbf16>
    %14 = vector.shape_cast %13 : vector<1x128x32xbf16> to vector<128x32xbf16>
    %c2_14 = arith.constant 2 : index
    %c0_15 = arith.constant 0 : index
    %c0_16 = arith.constant 0 : index
    %15 = vector.load %arg2[%c2_14, %c0_15, %c0_16] : memref<9x32x72xbf16, #tpu.memory_space<vmem>>, vector<1x32x72xbf16>
    %16 = vector.shape_cast %15 : vector<1x32x72xbf16> to vector<32x72xbf16>
    %cst_17 = arith.constant dense<0.000000e+00> : vector<128x72xf32>
    %17 = tpu.matmul %14, %16, %cst_17 {dimension_numbers = #tpu.dot_dimension_numbers<[1], [0], [0], [1], [0, 0, 1, 1], [], []>} : vector<128x32xbf16>, vector<32x72xbf16>, vector<128x72xf32> -> vector<128x72xf32>
    %18 = arith.addf %12, %17 : vector<128x72xf32>
    %c0_18 = arith.constant 0 : index
    %c16 = arith.constant 16 : index
    %c0_19 = arith.constant 0 : index
    %19 = vector.load %arg1[%c0_18, %c16, %c0_19] : memref<1x176x32xbf16, #tpu.memory_space<vmem>>, vector<1x128x32xbf16>
    %20 = vector.shape_cast %19 : vector<1x128x32xbf16> to vector<128x32xbf16>
    %c3 = arith.constant 3 : index
    %c0_20 = arith.constant 0 : index
    %c0_21 = arith.constant 0 : index
    %21 = vector.load %arg2[%c3, %c0_20, %c0_21] : memref<9x32x72xbf16, #tpu.memory_space<vmem>>, vector<1x32x72xbf16>
    %22 = vector.shape_cast %21 : vector<1x32x72xbf16> to vector<32x72xbf16>
    %cst_22 = arith.constant dense<0.000000e+00> : vector<128x72xf32>
    %23 = tpu.matmul %20, %22, %cst_22 {dimension_numbers = #tpu.dot_dimension_numbers<[1], [0], [0], [1], [0, 0, 1, 1], [], []>} : vector<128x32xbf16>, vector<32x72xbf16>, vector<128x72xf32> -> vector<128x72xf32>
    %24 = arith.addf %18, %23 : vector<128x72xf32>
    %c0_23 = arith.constant 0 : index
    %c17 = arith.constant 17 : index
    %c0_24 = arith.constant 0 : index
    %25 = vector.load %arg1[%c0_23, %c17, %c0_24] : memref<1x176x32xbf16, #tpu.memory_space<vmem>>, vector<1x128x32xbf16>
    %26 = vector.shape_cast %25 : vector<1x128x32xbf16> to vector<128x32xbf16>
    %c4 = arith.constant 4 : index
    %c0_25 = arith.constant 0 : index
    %c0_26 = arith.constant 0 : index
    %27 = vector.load %arg2[%c4, %c0_25, %c0_26] : memref<9x32x72xbf16, #tpu.memory_space<vmem>>, vector<1x32x72xbf16>
    %28 = vector.shape_cast %27 : vector<1x32x72xbf16> to vector<32x72xbf16>
    %cst_27 = arith.constant dense<0.000000e+00> : vector<128x72xf32>
    %29 = tpu.matmul %26, %28, %cst_27 {dimension_numbers = #tpu.dot_dimension_numbers<[1], [0], [0], [1], [0, 0, 1, 1], [], []>} : vector<128x32xbf16>, vector<32x72xbf16>, vector<128x72xf32> -> vector<128x72xf32>
    %30 = arith.addf %24, %29 : vector<128x72xf32>
    %c0_28 = arith.constant 0 : index
    %c18 = arith.constant 18 : index
    %c0_29 = arith.constant 0 : index
    %31 = vector.load %arg1[%c0_28, %c18, %c0_29] : memref<1x176x32xbf16, #tpu.memory_space<vmem>>, vector<1x128x32xbf16>
    %32 = vector.shape_cast %31 : vector<1x128x32xbf16> to vector<128x32xbf16>
    %c5 = arith.constant 5 : index
    %c0_30 = arith.constant 0 : index
    %c0_31 = arith.constant 0 : index
    %33 = vector.load %arg2[%c5, %c0_30, %c0_31] : memref<9x32x72xbf16, #tpu.memory_space<vmem>>, vector<1x32x72xbf16>
    %34 = vector.shape_cast %33 : vector<1x32x72xbf16> to vector<32x72xbf16>
    %cst_32 = arith.constant dense<0.000000e+00> : vector<128x72xf32>
    %35 = tpu.matmul %32, %34, %cst_32 {dimension_numbers = #tpu.dot_dimension_numbers<[1], [0], [0], [1], [0, 0, 1, 1], [], []>} : vector<128x32xbf16>, vector<32x72xbf16>, vector<128x72xf32> -> vector<128x72xf32>
    %36 = arith.addf %30, %35 : vector<128x72xf32>
    %c0_33 = arith.constant 0 : index
    %c32 = arith.constant 32 : index
    %c0_34 = arith.constant 0 : index
    %37 = vector.load %arg1[%c0_33, %c32, %c0_34] : memref<1x176x32xbf16, #tpu.memory_space<vmem>>, vector<1x128x32xbf16>
    %38 = vector.shape_cast %37 : vector<1x128x32xbf16> to vector<128x32xbf16>
    %c6 = arith.constant 6 : index
    %c0_35 = arith.constant 0 : index
    %c0_36 = arith.constant 0 : index
    %39 = vector.load %arg2[%c6, %c0_35, %c0_36] : memref<9x32x72xbf16, #tpu.memory_space<vmem>>, vector<1x32x72xbf16>
    %40 = vector.shape_cast %39 : vector<1x32x72xbf16> to vector<32x72xbf16>
    %cst_37 = arith.constant dense<0.000000e+00> : vector<128x72xf32>
    %41 = tpu.matmul %38, %40, %cst_37 {dimension_numbers = #tpu.dot_dimension_numbers<[1], [0], [0], [1], [0, 0, 1, 1], [], []>} : vector<128x32xbf16>, vector<32x72xbf16>, vector<128x72xf32> -> vector<128x72xf32>
    %42 = arith.addf %36, %41 : vector<128x72xf32>
    %c0_38 = arith.constant 0 : index
    %c33 = arith.constant 33 : index
    %c0_39 = arith.constant 0 : index
    %43 = vector.load %arg1[%c0_38, %c33, %c0_39] : memref<1x176x32xbf16, #tpu.memory_space<vmem>>, vector<1x128x32xbf16>
    %44 = vector.shape_cast %43 : vector<1x128x32xbf16> to vector<128x32xbf16>
    %c7 = arith.constant 7 : index
    %c0_40 = arith.constant 0 : index
    %c0_41 = arith.constant 0 : index
    %45 = vector.load %arg2[%c7, %c0_40, %c0_41] : memref<9x32x72xbf16, #tpu.memory_space<vmem>>, vector<1x32x72xbf16>
    %46 = vector.shape_cast %45 : vector<1x32x72xbf16> to vector<32x72xbf16>
    %cst_42 = arith.constant dense<0.000000e+00> : vector<128x72xf32>
    %47 = tpu.matmul %44, %46, %cst_42 {dimension_numbers = #tpu.dot_dimension_numbers<[1], [0], [0], [1], [0, 0, 1, 1], [], []>} : vector<128x32xbf16>, vector<32x72xbf16>, vector<128x72xf32> -> vector<128x72xf32>
    %48 = arith.addf %42, %47 : vector<128x72xf32>
    %c0_43 = arith.constant 0 : index
    %c34 = arith.constant 34 : index
    %c0_44 = arith.constant 0 : index
    %49 = vector.load %arg1[%c0_43, %c34, %c0_44] : memref<1x176x32xbf16, #tpu.memory_space<vmem>>, vector<1x128x32xbf16>
    %50 = vector.shape_cast %49 : vector<1x128x32xbf16> to vector<128x32xbf16>
    %c8 = arith.constant 8 : index
    %c0_45 = arith.constant 0 : index
    %c0_46 = arith.constant 0 : index
    %51 = vector.load %arg2[%c8, %c0_45, %c0_46] : memref<9x32x72xbf16, #tpu.memory_space<vmem>>, vector<1x32x72xbf16>
    %52 = vector.shape_cast %51 : vector<1x32x72xbf16> to vector<32x72xbf16>
    %cst_47 = arith.constant dense<0.000000e+00> : vector<128x72xf32>
    %53 = tpu.matmul %50, %52, %cst_47 {dimension_numbers = #tpu.dot_dimension_numbers<[1], [0], [0], [1], [0, 0, 1, 1], [], []>} : vector<128x32xbf16>, vector<32x72xbf16>, vector<128x72xf32> -> vector<128x72xf32>
    %54 = arith.addf %48, %53 : vector<128x72xf32>
    %c0_48 = arith.constant 0 : index
    %c0_49 = arith.constant 0 : index
    %55 = vector.load %arg3[%c0_48, %c0_49] : memref<1x72xf32, #tpu.memory_space<vmem>>, vector<1x72xf32>
    %56 = vector.broadcast %55 : vector<1x72xf32> to vector<128x72xf32>
    %57 = arith.addf %54, %56 : vector<128x72xf32>
    %cst_50 = arith.constant 0.000000e+00 : f32
    %58 = vector.broadcast %cst_50 : f32 to vector<128x72xf32>
    %59 = arith.maximumf %57, %58 : vector<128x72xf32>
    %60 = vector.shape_cast %59 : vector<128x72xf32> to vector<8x16x72xf32>
    %61 = vector.extract_strided_slice %60 {offsets = [0, 0, 0], sizes = [8, 8, 72], strides = [1, 1, 1]} : vector<8x16x72xf32> to vector<8x8x72xf32>
    %62 = vector.extract_strided_slice %61 {offsets = [0, 0, 0], sizes = [8, 8, 8], strides = [1, 1, 1]} : vector<8x8x72xf32> to vector<8x8x8xf32>
    %63 = arith.truncf %62 : vector<8x8x8xf32> to vector<8x8x8xbf16>
    %c0_51 = arith.constant 0 : index
    %c0_52 = arith.constant 0 : index
    %c0_53 = arith.constant 0 : index
    %c0_54 = arith.constant 0 : index
    %64 = vector.load %arg4[%c0_51, %c0_52, %c0_53, %c0_54] : memref<1x8x8x8xbf16, #tpu.memory_space<vmem>>, vector<1x8x8x8xbf16>
    %65 = vector.shape_cast %64 : vector<1x8x8x8xbf16> to vector<8x8x8xbf16>
    %66 = vector.shape_cast %63 : vector<8x8x8xbf16> to vector<1x8x8x8xbf16>
    tpu.vector_store %arg4[%c0_51, %c0_52, %c0_53, %c0_54], %66 {strides = array<i32>} : memref<1x8x8x8xbf16, #tpu.memory_space<vmem>>, vector<1x8x8x8xbf16>,
    %67 = vector.extract_strided_slice %61 {offsets = [0, 0, 8], sizes = [8, 8, 32], strides = [1, 1, 1]} : vector<8x8x72xf32> to vector<8x8x32xf32>
    %68 = arith.truncf %67 : vector<8x8x32xf32> to vector<8x8x32xbf16>
    %c0_55 = arith.constant 0 : index
    %c0_56 = arith.constant 0 : index
    %c0_57 = arith.constant 0 : index
    %c0_58 = arith.constant 0 : index
    %69 = vector.load %arg5[%c0_55, %c0_56, %c0_57, %c0_58] : memref<1x8x8x32xbf16, #tpu.memory_space<vmem>>, vector<1x8x8x32xbf16>
    %70 = vector.shape_cast %69 : vector<1x8x8x32xbf16> to vector<8x8x32xbf16>
    %71 = vector.shape_cast %68 : vector<8x8x32xbf16> to vector<1x8x8x32xbf16>
    tpu.vector_store %arg5[%c0_55, %c0_56, %c0_57, %c0_58], %71 {strides = array<i32>} : memref<1x8x8x32xbf16, #tpu.memory_space<vmem>>, vector<1x8x8x32xbf16>,
    %72 = vector.extract_strided_slice %61 {offsets = [0, 0, 40], sizes = [8, 8, 32], strides = [1, 1, 1]} : vector<8x8x72xf32> to vector<8x8x32xf32>
    %73 = arith.truncf %72 : vector<8x8x32xf32> to vector<8x8x32xbf16>
    %c0_59 = arith.constant 0 : index
    %c0_60 = arith.constant 0 : index
    %c0_61 = arith.constant 0 : index
    %c0_62 = arith.constant 0 : index
    %74 = vector.load %arg6[%c0_59, %c0_60, %c0_61, %c0_62] : memref<1x8x8x32xbf16, #tpu.memory_space<vmem>>, vector<1x8x8x32xbf16>
    %75 = vector.shape_cast %74 : vector<1x8x8x32xbf16> to vector<8x8x32xbf16>
    %76 = vector.shape_cast %73 : vector<8x8x32xbf16> to vector<1x8x8x32xbf16>
    tpu.vector_store %arg6[%c0_59, %c0_60, %c0_61, %c0_62], %76 {strides = array<i32>} : memref<1x8x8x32xbf16, #tpu.memory_space<vmem>>, vector<1x8x8x32xbf16>,
    return
  }
  func.func @transform_0(%arg0: i32) -> (i32, i32, i32) {
    %c0_i32 = arith.constant 0 : i32
    %c0_i32_0 = arith.constant 0 : i32
    %c0_i32_1 = arith.constant 0 : i32
    return %arg0, %c0_i32, %c0_i32_0 : i32, i32, i32
  }
  func.func @transform_1(%arg0: i32) -> (i32, i32, i32) {
    %c0_i32 = arith.constant 0 : i32
    %c0_i32_0 = arith.constant 0 : i32
    %c0_i32_1 = arith.constant 0 : i32
    %c0_i32_2 = arith.constant 0 : i32
    return %c0_i32, %c0_i32_0, %c0_i32_1 : i32, i32, i32
  }
  func.func @transform_2(%arg0: i32) -> (i32, i32) {
    %c0_i32 = arith.constant 0 : i32
    %c0_i32_0 = arith.constant 0 : i32
    %c0_i32_1 = arith.constant 0 : i32
    return %c0_i32, %c0_i32_0 : i32, i32
  }
  func.func @transform_3(%arg0: i32) -> (i32, i32, i32, i32) {
    %c0_i32 = arith.constant 0 : i32
    %c0_i32_0 = arith.constant 0 : i32
    %c0_i32_1 = arith.constant 0 : i32
    %c0_i32_2 = arith.constant 0 : i32
    return %arg0, %c0_i32, %c0_i32_0, %c0_i32_1 : i32, i32, i32, i32
  }
  func.func @transform_4(%arg0: i32) -> (i32, i32, i32, i32) {
    %c0_i32 = arith.constant 0 : i32
    %c0_i32_0 = arith.constant 0 : i32
    %c0_i32_1 = arith.constant 0 : i32
    %c0_i32_2 = arith.constant 0 : i32
    return %arg0, %c0_i32, %c0_i32_0, %c0_i32_1 : i32, i32, i32, i32
  }
  func.func @transform_5(%arg0: i32) -> (i32, i32, i32, i32) {
    %c0_i32 = arith.constant 0 : i32
    %c0_i32_0 = arith.constant 0 : i32
    %c0_i32_1 = arith.constant 0 : i32
    %c0_i32_2 = arith.constant 0 : i32
    return %arg0, %c0_i32, %c0_i32_0, %c0_i32_1 : i32, i32, i32, i32
  }
}

module attributes {stable_mosaic.version = 11 : i64} {
  func.func @_gla_attn_kernel(%arg0: i32, %arg1: i32, %arg2: memref<1x1x4x16x8xbf16, #tpu.memory_space<vmem>>, %arg3: memref<1x1x4x16x8xbf16, #tpu.memory_space<vmem>>, %arg4: memref<1x1x4x16x32xbf16, #tpu.memory_space<vmem>>, %arg5: memref<1x1x4x16x32xbf16, #tpu.memory_space<vmem>>, %arg6: memref<32x16xbf16, #tpu.memory_space<vmem>>, %arg7: memref<1x16xf32, #tpu.memory_space<vmem>>, %arg8: memref<16x16xbf16, #tpu.memory_space<vmem>>, %arg9: memref<1x16xf32, #tpu.memory_space<vmem>>, %arg10: memref<1x1x4x16x32xbf16, #tpu.memory_space<vmem>>, %arg11: memref<1x1x4x16xf32, #tpu.memory_space<vmem>>) attributes {dimension_semantics = [#tpu.dimension_semantics<parallel>, #tpu.dimension_semantics<parallel>], iteration_bounds = array<i64: 2, 2>, scalar_prefetch = 0 : i64, scratch_operands = 0 : i64, tpu.core_type = #tpu.core_type<tc>, window_params = [{transform_indices = @transform_0, window_bounds = array<i64: 1, 1, 4, 16, 8>}, {transform_indices = @transform_1, window_bounds = array<i64: 1, 1, 4, 16, 8>}, {transform_indices = @transform_2, window_bounds = array<i64: 1, 1, 4, 16, 32>}, {transform_indices = @transform_3, window_bounds = array<i64: 1, 1, 4, 16, 32>}, {pipeline_mode = #tpu.pipeline_mode<synchronous>, transform_indices = @transform_4, window_bounds = array<i64: 32, 16>}, {pipeline_mode = #tpu.pipeline_mode<synchronous>, transform_indices = @transform_5, window_bounds = array<i64: 1, 16>}, {pipeline_mode = #tpu.pipeline_mode<synchronous>, transform_indices = @transform_6, window_bounds = array<i64: 16, 16>}, {pipeline_mode = #tpu.pipeline_mode<synchronous>, transform_indices = @transform_7, window_bounds = array<i64: 1, 16>}, {transform_indices = @transform_8, window_bounds = array<i64: 1, 1, 4, 16, 32>}, {transform_indices = @transform_9, window_bounds = array<i64: 1, 1, 4, 16>}]} {
    %c0 = arith.constant 0 : index
    %c0_0 = arith.constant 0 : index
    %c0_1 = arith.constant 0 : index
    %c0_2 = arith.constant 0 : index
    %c0_3 = arith.constant 0 : index
    %0 = vector.load %arg2[%c0, %c0_0, %c0_1, %c0_2, %c0_3] : memref<1x1x4x16x8xbf16, #tpu.memory_space<vmem>>, vector<1x1x4x16x8xbf16>
    %1 = vector.shape_cast %0 : vector<1x1x4x16x8xbf16> to vector<4x16x8xbf16>
    %c0_4 = arith.constant 0 : index
    %c0_5 = arith.constant 0 : index
    %c0_6 = arith.constant 0 : index
    %c0_7 = arith.constant 0 : index
    %c0_8 = arith.constant 0 : index
    %2 = vector.load %arg3[%c0_4, %c0_5, %c0_6, %c0_7, %c0_8] : memref<1x1x4x16x8xbf16, #tpu.memory_space<vmem>>, vector<1x1x4x16x8xbf16>
    %3 = vector.shape_cast %2 : vector<1x1x4x16x8xbf16> to vector<4x16x8xbf16>
    %c0_9 = arith.constant 0 : index
    %c0_10 = arith.constant 0 : index
    %c0_11 = arith.constant 0 : index
    %c0_12 = arith.constant 0 : index
    %c0_13 = arith.constant 0 : index
    %4 = vector.load %arg4[%c0_9, %c0_10, %c0_11, %c0_12, %c0_13] : memref<1x1x4x16x32xbf16, #tpu.memory_space<vmem>>, vector<1x1x4x16x32xbf16>
    %5 = vector.shape_cast %4 : vector<1x1x4x16x32xbf16> to vector<4x16x32xbf16>
    %c0_14 = arith.constant 0 : index
    %c0_15 = arith.constant 0 : index
    %c0_16 = arith.constant 0 : index
    %c0_17 = arith.constant 0 : index
    %c0_18 = arith.constant 0 : index
    %6 = vector.load %arg5[%c0_14, %c0_15, %c0_16, %c0_17, %c0_18] : memref<1x1x4x16x32xbf16, #tpu.memory_space<vmem>>, vector<1x1x4x16x32xbf16>
    %7 = vector.shape_cast %6 : vector<1x1x4x16x32xbf16> to vector<4x16x32xbf16>
    %8 = vector.shape_cast %7 : vector<4x16x32xbf16> to vector<64x32xbf16>
    %c0_19 = arith.constant 0 : index
    %c0_20 = arith.constant 0 : index
    %9 = vector.load %arg6[%c0_19, %c0_20] : memref<32x16xbf16, #tpu.memory_space<vmem>>, vector<32x16xbf16>
    %cst = arith.constant dense<0.000000e+00> : vector<64x16xf32>
    %10 = tpu.matmul %8, %9, %cst {dimension_numbers = #tpu.dot_dimension_numbers<[1], [0], [0], [1], [0, 0, 1, 1], [], []>} : vector<64x32xbf16>, vector<32x16xbf16>, vector<64x16xf32> -> vector<64x16xf32>
    %c0_21 = arith.constant 0 : index
    %c0_22 = arith.constant 0 : index
    %11 = vector.load %arg7[%c0_21, %c0_22] : memref<1x16xf32, #tpu.memory_space<vmem>>, vector<1x16xf32>
    %12 = vector.broadcast %11 : vector<1x16xf32> to vector<64x16xf32>
    %13 = arith.addf %10, %12 : vector<64x16xf32>
    %cst_23 = arith.constant 0.000000e+00 : f32
    %14 = vector.broadcast %cst_23 : f32 to vector<64x16xf32>
    %15 = arith.maximumf %13, %14 : vector<64x16xf32>
    %16 = arith.truncf %15 : vector<64x16xf32> to vector<64x16xbf16>
    %c0_24 = arith.constant 0 : index
    %c0_25 = arith.constant 0 : index
    %17 = vector.load %arg8[%c0_24, %c0_25] : memref<16x16xbf16, #tpu.memory_space<vmem>>, vector<16x16xbf16>
    %cst_26 = arith.constant dense<0.000000e+00> : vector<64x16xf32>
    %18 = tpu.matmul %16, %17, %cst_26 {dimension_numbers = #tpu.dot_dimension_numbers<[1], [0], [0], [1], [0, 0, 1, 1], [], []>} : vector<64x16xbf16>, vector<16x16xbf16>, vector<64x16xf32> -> vector<64x16xf32>
    %c0_27 = arith.constant 0 : index
    %c0_28 = arith.constant 0 : index
    %19 = vector.load %arg9[%c0_27, %c0_28] : memref<1x16xf32, #tpu.memory_space<vmem>>, vector<1x16xf32>
    %20 = vector.broadcast %19 : vector<1x16xf32> to vector<64x16xf32>
    %21 = arith.addf %18, %20 : vector<64x16xf32>
    %22 = vector.shape_cast %21 : vector<64x16xf32> to vector<4x16x16xf32>
    %cst_29 = arith.constant dense<0.000000e+00> : vector<4x16x16xf32>
    %23 = tpu.matmul %3, %1, %cst_29 {dimension_numbers = #tpu.dot_dimension_numbers<[2], [2], [1], [1], [0, 0, 0, 1, 1, 1], [0], [0]>} : vector<4x16x8xbf16>, vector<4x16x8xbf16>, vector<4x16x16xf32> -> vector<4x16x16xf32>
    %24 = arith.addf %23, %22 : vector<4x16x16xf32>
    %25 = vector.extract_strided_slice %3 {offsets = [3, 0, 0], sizes = [1, 16, 8], strides = [1, 1, 1]} : vector<4x16x8xbf16> to vector<1x16x8xbf16>
    %26 = vector.extract_strided_slice %3 {offsets = [0, 0, 0], sizes = [3, 16, 8], strides = [1, 1, 1]} : vector<4x16x8xbf16> to vector<3x16x8xbf16>
    %27 = tpu.concatenate %25, %26 in 0 : vector<1x16x8xbf16>, vector<3x16x8xbf16> -> vector<4x16x8xbf16>
    %cst_30 = arith.constant dense<0.000000e+00> : vector<4x16x16xf32>
    %28 = tpu.matmul %27, %1, %cst_30 {dimension_numbers = #tpu.dot_dimension_numbers<[2], [2], [1], [1], [0, 0, 0, 1, 1, 1], [0], [0]>} : vector<4x16x8xbf16>, vector<4x16x8xbf16>, vector<4x16x16xf32> -> vector<4x16x16xf32>
    %29 = vector.extract_strided_slice %22 {offsets = [3, 0, 0], sizes = [1, 16, 16], strides = [1, 1, 1]} : vector<4x16x16xf32> to vector<1x16x16xf32>
    %30 = vector.extract_strided_slice %22 {offsets = [0, 0, 0], sizes = [3, 16, 16], strides = [1, 1, 1]} : vector<4x16x16xf32> to vector<3x16x16xf32>
    %31 = tpu.concatenate %29, %30 in 0 : vector<1x16x16xf32>, vector<3x16x16xf32> -> vector<4x16x16xf32>
    %32 = arith.addf %28, %31 : vector<4x16x16xf32>
    %33 = vector.extract_strided_slice %3 {offsets = [1, 0, 0], sizes = [3, 16, 8], strides = [1, 1, 1]} : vector<4x16x8xbf16> to vector<3x16x8xbf16>
    %34 = vector.extract_strided_slice %3 {offsets = [0, 0, 0], sizes = [1, 16, 8], strides = [1, 1, 1]} : vector<4x16x8xbf16> to vector<1x16x8xbf16>
    %35 = tpu.concatenate %33, %34 in 0 : vector<3x16x8xbf16>, vector<1x16x8xbf16> -> vector<4x16x8xbf16>
    %cst_31 = arith.constant dense<0.000000e+00> : vector<4x16x16xf32>
    %36 = tpu.matmul %35, %1, %cst_31 {dimension_numbers = #tpu.dot_dimension_numbers<[2], [2], [1], [1], [0, 0, 0, 1, 1, 1], [0], [0]>} : vector<4x16x8xbf16>, vector<4x16x8xbf16>, vector<4x16x16xf32> -> vector<4x16x16xf32>
    %37 = vector.extract_strided_slice %22 {offsets = [1, 0, 0], sizes = [3, 16, 16], strides = [1, 1, 1]} : vector<4x16x16xf32> to vector<3x16x16xf32>
    %38 = vector.extract_strided_slice %22 {offsets = [0, 0, 0], sizes = [1, 16, 16], strides = [1, 1, 1]} : vector<4x16x16xf32> to vector<1x16x16xf32>
    %39 = tpu.concatenate %37, %38 in 0 : vector<3x16x16xf32>, vector<1x16x16xf32> -> vector<4x16x16xf32>
    %40 = arith.addf %36, %39 : vector<4x16x16xf32>
    %cst_32 = arith.constant dense<0xFF800000> : vector<4x16xf32>
    %41 = vector.multi_reduction <maximumf>, %24, %cst_32 [1] : vector<4x16x16xf32> to vector<4x16xf32>
    %cst_33 = arith.constant dense<0xFF800000> : vector<4x16xf32>
    %42 = vector.multi_reduction <maximumf>, %32, %cst_33 [1] : vector<4x16x16xf32> to vector<4x16xf32>
    %43 = arith.maximumf %41, %42 : vector<4x16xf32>
    %cst_34 = arith.constant dense<0xFF800000> : vector<4x16xf32>
    %44 = vector.multi_reduction <maximumf>, %40, %cst_34 [1] : vector<4x16x16xf32> to vector<4x16xf32>
    %45 = arith.maximumf %43, %44 : vector<4x16xf32>
    %46 = vector.shape_cast %45 : vector<4x16xf32> to vector<4x1x16xf32>
    %47 = vector.broadcast %46 : vector<4x1x16xf32> to vector<4x16x16xf32>
    %48 = arith.subf %24, %47 : vector<4x16x16xf32>
    %49 = math.exp %48 : vector<4x16x16xf32>
    %50 = vector.broadcast %46 : vector<4x1x16xf32> to vector<4x16x16xf32>
    %51 = arith.subf %32, %50 : vector<4x16x16xf32>
    %52 = math.exp %51 : vector<4x16x16xf32>
    %53 = vector.broadcast %46 : vector<4x1x16xf32> to vector<4x16x16xf32>
    %54 = arith.subf %40, %53 : vector<4x16x16xf32>
    %55 = math.exp %54 : vector<4x16x16xf32>
    %cst_35 = arith.constant dense<0.000000e+00> : vector<4x16xf32>
    %56 = vector.multi_reduction <add>, %49, %cst_35 [1] : vector<4x16x16xf32> to vector<4x16xf32>
    %cst_36 = arith.constant dense<0.000000e+00> : vector<4x16xf32>
    %57 = vector.multi_reduction <add>, %52, %cst_36 [1] : vector<4x16x16xf32> to vector<4x16xf32>
    %58 = arith.addf %56, %57 : vector<4x16xf32>
    %cst_37 = arith.constant dense<0.000000e+00> : vector<4x16xf32>
    %59 = vector.multi_reduction <add>, %55, %cst_37 [1] : vector<4x16x16xf32> to vector<4x16xf32>
    %60 = arith.addf %58, %59 : vector<4x16xf32>
    %61 = math.log %60 : vector<4x16xf32>
    %62 = arith.addf %45, %61 : vector<4x16xf32>
    %63 = tpu.reciprocal %60 {approx = true} : vector<4x16xf32> -> vector<4x16xf32>
    %64 = vector.shape_cast %63 : vector<4x16xf32> to vector<4x1x16xf32>
    %65 = vector.broadcast %64 : vector<4x1x16xf32> to vector<4x16x16xf32>
    %66 = arith.mulf %49, %65 : vector<4x16x16xf32>
    %67 = arith.truncf %66 : vector<4x16x16xf32> to vector<4x16x16xbf16>
    %cst_38 = arith.constant dense<0.000000e+00> : vector<4x16x32xf32>
    %68 = tpu.matmul %67, %5, %cst_38 {dimension_numbers = #tpu.dot_dimension_numbers<[1], [1], [2], [2], [0, 0, 0, 2, 1, 2], [0], [0]>} : vector<4x16x16xbf16>, vector<4x16x32xbf16>, vector<4x16x32xf32> -> vector<4x16x32xf32>
    %69 = vector.extract_strided_slice %5 {offsets = [3, 0, 0], sizes = [1, 16, 32], strides = [1, 1, 1]} : vector<4x16x32xbf16> to vector<1x16x32xbf16>
    %70 = vector.extract_strided_slice %5 {offsets = [0, 0, 0], sizes = [3, 16, 32], strides = [1, 1, 1]} : vector<4x16x32xbf16> to vector<3x16x32xbf16>
    %71 = tpu.concatenate %69, %70 in 0 : vector<1x16x32xbf16>, vector<3x16x32xbf16> -> vector<4x16x32xbf16>
    %72 = vector.broadcast %64 : vector<4x1x16xf32> to vector<4x16x16xf32>
    %73 = arith.mulf %52, %72 : vector<4x16x16xf32>
    %74 = arith.truncf %73 : vector<4x16x16xf32> to vector<4x16x16xbf16>
    %cst_39 = arith.constant dense<0.000000e+00> : vector<4x16x32xf32>
    %75 = tpu.matmul %74, %71, %cst_39 {dimension_numbers = #tpu.dot_dimension_numbers<[1], [1], [2], [2], [0, 0, 0, 2, 1, 2], [0], [0]>} : vector<4x16x16xbf16>, vector<4x16x32xbf16>, vector<4x16x32xf32> -> vector<4x16x32xf32>
    %76 = arith.addf %68, %75 : vector<4x16x32xf32>
    %77 = vector.extract_strided_slice %5 {offsets = [1, 0, 0], sizes = [3, 16, 32], strides = [1, 1, 1]} : vector<4x16x32xbf16> to vector<3x16x32xbf16>
    %78 = vector.extract_strided_slice %5 {offsets = [0, 0, 0], sizes = [1, 16, 32], strides = [1, 1, 1]} : vector<4x16x32xbf16> to vector<1x16x32xbf16>
    %79 = tpu.concatenate %77, %78 in 0 : vector<3x16x32xbf16>, vector<1x16x32xbf16> -> vector<4x16x32xbf16>
    %80 = vector.broadcast %64 : vector<4x1x16xf32> to vector<4x16x16xf32>
    %81 = arith.mulf %55, %80 : vector<4x16x16xf32>
    %82 = arith.truncf %81 : vector<4x16x16xf32> to vector<4x16x16xbf16>
    %cst_40 = arith.constant dense<0.000000e+00> : vector<4x16x32xf32>
    %83 = tpu.matmul %82, %79, %cst_40 {dimension_numbers = #tpu.dot_dimension_numbers<[1], [1], [2], [2], [0, 0, 0, 2, 1, 2], [0], [0]>} : vector<4x16x16xbf16>, vector<4x16x32xbf16>, vector<4x16x32xf32> -> vector<4x16x32xf32>
    %84 = arith.addf %76, %83 : vector<4x16x32xf32>
    %85 = arith.truncf %84 : vector<4x16x32xf32> to vector<4x16x32xbf16>
    %c0_41 = arith.constant 0 : index
    %c0_42 = arith.constant 0 : index
    %c0_43 = arith.constant 0 : index
    %c0_44 = arith.constant 0 : index
    %c0_45 = arith.constant 0 : index
    %86 = vector.load %arg10[%c0_41, %c0_42, %c0_43, %c0_44, %c0_45] : memref<1x1x4x16x32xbf16, #tpu.memory_space<vmem>>, vector<1x1x4x16x32xbf16>
    %87 = vector.shape_cast %86 : vector<1x1x4x16x32xbf16> to vector<4x16x32xbf16>
    %88 = vector.shape_cast %85 : vector<4x16x32xbf16> to vector<1x1x4x16x32xbf16>
    tpu.vector_store %arg10[%c0_41, %c0_42, %c0_43, %c0_44, %c0_45], %88 {strides = array<i32>} : memref<1x1x4x16x32xbf16, #tpu.memory_space<vmem>>, vector<1x1x4x16x32xbf16>,
    %c0_46 = arith.constant 0 : index
    %c0_47 = arith.constant 0 : index
    %c0_48 = arith.constant 0 : index
    %c0_49 = arith.constant 0 : index
    %89 = vector.load %arg11[%c0_46, %c0_47, %c0_48, %c0_49] : memref<1x1x4x16xf32, #tpu.memory_space<vmem>>, vector<1x1x4x16xf32>
    %90 = vector.shape_cast %89 : vector<1x1x4x16xf32> to vector<4x16xf32>
    %91 = vector.shape_cast %62 : vector<4x16xf32> to vector<1x1x4x16xf32>
    tpu.vector_store %arg11[%c0_46, %c0_47, %c0_48, %c0_49], %91 {strides = array<i32>} : memref<1x1x4x16xf32, #tpu.memory_space<vmem>>, vector<1x1x4x16xf32>,
    return
  }
  func.func @transform_0(%arg0: i32, %arg1: i32) -> (i32, i32, i32, i32, i32) {
    %c0_i32 = arith.constant 0 : i32
    %c0_i32_0 = arith.constant 0 : i32
    %c0_i32_1 = arith.constant 0 : i32
    %c0_i32_2 = arith.constant 0 : i32
    return %arg0, %arg1, %c0_i32, %c0_i32_0, %c0_i32_1 : i32, i32, i32, i32, i32
  }
  func.func @transform_1(%arg0: i32, %arg1: i32) -> (i32, i32, i32, i32, i32) {
    %c0_i32 = arith.constant 0 : i32
    %c0_i32_0 = arith.constant 0 : i32
    %c0_i32_1 = arith.constant 0 : i32
    %c0_i32_2 = arith.constant 0 : i32
    return %arg0, %arg1, %c0_i32, %c0_i32_0, %c0_i32_1 : i32, i32, i32, i32, i32
  }
  func.func @transform_2(%arg0: i32, %arg1: i32) -> (i32, i32, i32, i32, i32) {
    %c0_i32 = arith.constant 0 : i32
    %c0_i32_0 = arith.constant 0 : i32
    %c0_i32_1 = arith.constant 0 : i32
    %c0_i32_2 = arith.constant 0 : i32
    return %arg0, %arg1, %c0_i32, %c0_i32_0, %c0_i32_1 : i32, i32, i32, i32, i32
  }
  func.func @transform_3(%arg0: i32, %arg1: i32) -> (i32, i32, i32, i32, i32) {
    %c0_i32 = arith.constant 0 : i32
    %c0_i32_0 = arith.constant 0 : i32
    %c0_i32_1 = arith.constant 0 : i32
    %c0_i32_2 = arith.constant 0 : i32
    return %arg0, %arg1, %c0_i32, %c0_i32_0, %c0_i32_1 : i32, i32, i32, i32, i32
  }
  func.func @transform_4(%arg0: i32, %arg1: i32) -> (i32, i32) {
    %c0_i32 = arith.constant 0 : i32
    %c0_i32_0 = arith.constant 0 : i32
    %c0_i32_1 = arith.constant 0 : i32
    return %c0_i32, %c0_i32_0 : i32, i32
  }
  func.func @transform_5(%arg0: i32, %arg1: i32) -> (i32, i32) {
    %c0_i32 = arith.constant 0 : i32
    %c0_i32_0 = arith.constant 0 : i32
    %c0_i32_1 = arith.constant 0 : i32
    return %c0_i32, %c0_i32_0 : i32, i32
  }
  func.func @transform_6(%arg0: i32, %arg1: i32) -> (i32, i32) {
    %c0_i32 = arith.constant 0 : i32
    %c0_i32_0 = arith.constant 0 : i32
    %c0_i32_1 = arith.constant 0 : i32
    return %c0_i32, %c0_i32_0 : i32, i32
  }
  func.func @transform_7(%arg0: i32, %arg1: i32) -> (i32, i32) {
    %c0_i32 = arith.constant 0 : i32
    %c0_i32_0 = arith.constant 0 : i32
    %c0_i32_1 = arith.constant 0 : i32
    return %c0_i32, %c0_i32_0 : i32, i32
  }
  func.func @transform_8(%arg0: i32, %arg1: i32) -> (i32, i32, i32, i32, i32) {
    %c0_i32 = arith.constant 0 : i32
    %c0_i32_0 = arith.constant 0 : i32
    %c0_i32_1 = arith.constant 0 : i32
    %c0_i32_2 = arith.constant 0 : i32
    return %arg0, %arg1, %c0_i32, %c0_i32_0, %c0_i32_1 : i32, i32, i32, i32, i32
  }
  func.func @transform_9(%arg0: i32, %arg1: i32) -> (i32, i32, i32, i32) {
    %c0_i32 = arith.constant 0 : i32
    %c0_i32_0 = arith.constant 0 : i32
    %c0_i32_1 = arith.constant 0 : i32
    return %arg0, %arg1, %c0_i32, %c0_i32_0 : i32, i32, i32, i32
  }
}

module attributes {stable_mosaic.version = 11 : i64} {
  func.func @_conv3x3_kernel(%arg0: i32, %arg1: memref<1x176x32xbf16, #tpu.memory_space<vmem>>, %arg2: memref<9x32x32xbf16, #tpu.memory_space<vmem>>, %arg3: memref<1x32xf32, #tpu.memory_space<vmem>>, %arg4: memref<1x8x8x32xf32, #tpu.memory_space<vmem>>) attributes {dimension_semantics = [#tpu.dimension_semantics<parallel>], iteration_bounds = array<i64: 2>, scalar_prefetch = 0 : i64, scratch_operands = 0 : i64, tpu.core_type = #tpu.core_type<tc>, window_params = [{transform_indices = @transform_0, window_bounds = array<i64: 1, 176, 32>}, {pipeline_mode = #tpu.pipeline_mode<synchronous>, transform_indices = @transform_1, window_bounds = array<i64: 9, 32, 32>}, {pipeline_mode = #tpu.pipeline_mode<synchronous>, transform_indices = @transform_2, window_bounds = array<i64: 1, 32>}, {transform_indices = @transform_3, window_bounds = array<i64: 1, 8, 8, 32>}]} {
    %cst = arith.constant 0.000000e+00 : f32
    %0 = vector.broadcast %cst : f32 to vector<128x32xf32>
    %c0 = arith.constant 0 : index
    %c0_0 = arith.constant 0 : index
    %c0_1 = arith.constant 0 : index
    %1 = vector.load %arg1[%c0, %c0_0, %c0_1] : memref<1x176x32xbf16, #tpu.memory_space<vmem>>, vector<1x128x32xbf16>
    %2 = vector.shape_cast %1 : vector<1x128x32xbf16> to vector<128x32xbf16>
    %c0_2 = arith.constant 0 : index
    %c0_3 = arith.constant 0 : index
    %c0_4 = arith.constant 0 : index
    %3 = vector.load %arg2[%c0_2, %c0_3, %c0_4] : memref<9x32x32xbf16, #tpu.memory_space<vmem>>, vector<1x32x32xbf16>
    %4 = vector.shape_cast %3 : vector<1x32x32xbf16> to vector<32x32xbf16>
    %cst_5 = arith.constant dense<0.000000e+00> : vector<128x32xf32>
    %5 = tpu.matmul %2, %4, %cst_5 {dimension_numbers = #tpu.dot_dimension_numbers<[1], [0], [0], [1], [0, 0, 1, 1], [], []>} : vector<128x32xbf16>, vector<32x32xbf16>, vector<128x32xf32> -> vector<128x32xf32>
    %6 = arith.addf %0, %5 : vector<128x32xf32>
    %c0_6 = arith.constant 0 : index
    %c1 = arith.constant 1 : index
    %c0_7 = arith.constant 0 : index
    %7 = vector.load %arg1[%c0_6, %c1, %c0_7] : memref<1x176x32xbf16, #tpu.memory_space<vmem>>, vector<1x128x32xbf16>
    %8 = vector.shape_cast %7 : vector<1x128x32xbf16> to vector<128x32xbf16>
    %c1_8 = arith.constant 1 : index
    %c0_9 = arith.constant 0 : index
    %c0_10 = arith.constant 0 : index
    %9 = vector.load %arg2[%c1_8, %c0_9, %c0_10] : memref<9x32x32xbf16, #tpu.memory_space<vmem>>, vector<1x32x32xbf16>
    %10 = vector.shape_cast %9 : vector<1x32x32xbf16> to vector<32x32xbf16>
    %cst_11 = arith.constant dense<0.000000e+00> : vector<128x32xf32>
    %11 = tpu.matmul %8, %10, %cst_11 {dimension_numbers = #tpu.dot_dimension_numbers<[1], [0], [0], [1], [0, 0, 1, 1], [], []>} : vector<128x32xbf16>, vector<32x32xbf16>, vector<128x32xf32> -> vector<128x32xf32>
    %12 = arith.addf %6, %11 : vector<128x32xf32>
    %c0_12 = arith.constant 0 : index
    %c2 = arith.constant 2 : index
    %c0_13 = arith.constant 0 : index
    %13 = vector.load %arg1[%c0_12, %c2, %c0_13] : memref<1x176x32xbf16, #tpu.memory_space<vmem>>, vector<1x128x32xbf16>
    %14 = vector.shape_cast %13 : vector<1x128x32xbf16> to vector<128x32xbf16>
    %c2_14 = arith.constant 2 : index
    %c0_15 = arith.constant 0 : index
    %c0_16 = arith.constant 0 : index
    %15 = vector.load %arg2[%c2_14, %c0_15, %c0_16] : memref<9x32x32xbf16, #tpu.memory_space<vmem>>, vector<1x32x32xbf16>
    %16 = vector.shape_cast %15 : vector<1x32x32xbf16> to vector<32x32xbf16>
    %cst_17 = arith.constant dense<0.000000e+00> : vector<128x32xf32>
    %17 = tpu.matmul %14, %16, %cst_17 {dimension_numbers = #tpu.dot_dimension_numbers<[1], [0], [0], [1], [0, 0, 1, 1], [], []>} : vector<128x32xbf16>, vector<32x32xbf16>, vector<128x32xf32> -> vector<128x32xf32>
    %18 = arith.addf %12, %17 : vector<128x32xf32>
    %c0_18 = arith.constant 0 : index
    %c16 = arith.constant 16 : index
    %c0_19 = arith.constant 0 : index
    %19 = vector.load %arg1[%c0_18, %c16, %c0_19] : memref<1x176x32xbf16, #tpu.memory_space<vmem>>, vector<1x128x32xbf16>
    %20 = vector.shape_cast %19 : vector<1x128x32xbf16> to vector<128x32xbf16>
    %c3 = arith.constant 3 : index
    %c0_20 = arith.constant 0 : index
    %c0_21 = arith.constant 0 : index
    %21 = vector.load %arg2[%c3, %c0_20, %c0_21] : memref<9x32x32xbf16, #tpu.memory_space<vmem>>, vector<1x32x32xbf16>
    %22 = vector.shape_cast %21 : vector<1x32x32xbf16> to vector<32x32xbf16>
    %cst_22 = arith.constant dense<0.000000e+00> : vector<128x32xf32>
    %23 = tpu.matmul %20, %22, %cst_22 {dimension_numbers = #tpu.dot_dimension_numbers<[1], [0], [0], [1], [0, 0, 1, 1], [], []>} : vector<128x32xbf16>, vector<32x32xbf16>, vector<128x32xf32> -> vector<128x32xf32>
    %24 = arith.addf %18, %23 : vector<128x32xf32>
    %c0_23 = arith.constant 0 : index
    %c17 = arith.constant 17 : index
    %c0_24 = arith.constant 0 : index
    %25 = vector.load %arg1[%c0_23, %c17, %c0_24] : memref<1x176x32xbf16, #tpu.memory_space<vmem>>, vector<1x128x32xbf16>
    %26 = vector.shape_cast %25 : vector<1x128x32xbf16> to vector<128x32xbf16>
    %c4 = arith.constant 4 : index
    %c0_25 = arith.constant 0 : index
    %c0_26 = arith.constant 0 : index
    %27 = vector.load %arg2[%c4, %c0_25, %c0_26] : memref<9x32x32xbf16, #tpu.memory_space<vmem>>, vector<1x32x32xbf16>
    %28 = vector.shape_cast %27 : vector<1x32x32xbf16> to vector<32x32xbf16>
    %cst_27 = arith.constant dense<0.000000e+00> : vector<128x32xf32>
    %29 = tpu.matmul %26, %28, %cst_27 {dimension_numbers = #tpu.dot_dimension_numbers<[1], [0], [0], [1], [0, 0, 1, 1], [], []>} : vector<128x32xbf16>, vector<32x32xbf16>, vector<128x32xf32> -> vector<128x32xf32>
    %30 = arith.addf %24, %29 : vector<128x32xf32>
    %c0_28 = arith.constant 0 : index
    %c18 = arith.constant 18 : index
    %c0_29 = arith.constant 0 : index
    %31 = vector.load %arg1[%c0_28, %c18, %c0_29] : memref<1x176x32xbf16, #tpu.memory_space<vmem>>, vector<1x128x32xbf16>
    %32 = vector.shape_cast %31 : vector<1x128x32xbf16> to vector<128x32xbf16>
    %c5 = arith.constant 5 : index
    %c0_30 = arith.constant 0 : index
    %c0_31 = arith.constant 0 : index
    %33 = vector.load %arg2[%c5, %c0_30, %c0_31] : memref<9x32x32xbf16, #tpu.memory_space<vmem>>, vector<1x32x32xbf16>
    %34 = vector.shape_cast %33 : vector<1x32x32xbf16> to vector<32x32xbf16>
    %cst_32 = arith.constant dense<0.000000e+00> : vector<128x32xf32>
    %35 = tpu.matmul %32, %34, %cst_32 {dimension_numbers = #tpu.dot_dimension_numbers<[1], [0], [0], [1], [0, 0, 1, 1], [], []>} : vector<128x32xbf16>, vector<32x32xbf16>, vector<128x32xf32> -> vector<128x32xf32>
    %36 = arith.addf %30, %35 : vector<128x32xf32>
    %c0_33 = arith.constant 0 : index
    %c32 = arith.constant 32 : index
    %c0_34 = arith.constant 0 : index
    %37 = vector.load %arg1[%c0_33, %c32, %c0_34] : memref<1x176x32xbf16, #tpu.memory_space<vmem>>, vector<1x128x32xbf16>
    %38 = vector.shape_cast %37 : vector<1x128x32xbf16> to vector<128x32xbf16>
    %c6 = arith.constant 6 : index
    %c0_35 = arith.constant 0 : index
    %c0_36 = arith.constant 0 : index
    %39 = vector.load %arg2[%c6, %c0_35, %c0_36] : memref<9x32x32xbf16, #tpu.memory_space<vmem>>, vector<1x32x32xbf16>
    %40 = vector.shape_cast %39 : vector<1x32x32xbf16> to vector<32x32xbf16>
    %cst_37 = arith.constant dense<0.000000e+00> : vector<128x32xf32>
    %41 = tpu.matmul %38, %40, %cst_37 {dimension_numbers = #tpu.dot_dimension_numbers<[1], [0], [0], [1], [0, 0, 1, 1], [], []>} : vector<128x32xbf16>, vector<32x32xbf16>, vector<128x32xf32> -> vector<128x32xf32>
    %42 = arith.addf %36, %41 : vector<128x32xf32>
    %c0_38 = arith.constant 0 : index
    %c33 = arith.constant 33 : index
    %c0_39 = arith.constant 0 : index
    %43 = vector.load %arg1[%c0_38, %c33, %c0_39] : memref<1x176x32xbf16, #tpu.memory_space<vmem>>, vector<1x128x32xbf16>
    %44 = vector.shape_cast %43 : vector<1x128x32xbf16> to vector<128x32xbf16>
    %c7 = arith.constant 7 : index
    %c0_40 = arith.constant 0 : index
    %c0_41 = arith.constant 0 : index
    %45 = vector.load %arg2[%c7, %c0_40, %c0_41] : memref<9x32x32xbf16, #tpu.memory_space<vmem>>, vector<1x32x32xbf16>
    %46 = vector.shape_cast %45 : vector<1x32x32xbf16> to vector<32x32xbf16>
    %cst_42 = arith.constant dense<0.000000e+00> : vector<128x32xf32>
    %47 = tpu.matmul %44, %46, %cst_42 {dimension_numbers = #tpu.dot_dimension_numbers<[1], [0], [0], [1], [0, 0, 1, 1], [], []>} : vector<128x32xbf16>, vector<32x32xbf16>, vector<128x32xf32> -> vector<128x32xf32>
    %48 = arith.addf %42, %47 : vector<128x32xf32>
    %c0_43 = arith.constant 0 : index
    %c34 = arith.constant 34 : index
    %c0_44 = arith.constant 0 : index
    %49 = vector.load %arg1[%c0_43, %c34, %c0_44] : memref<1x176x32xbf16, #tpu.memory_space<vmem>>, vector<1x128x32xbf16>
    %50 = vector.shape_cast %49 : vector<1x128x32xbf16> to vector<128x32xbf16>
    %c8 = arith.constant 8 : index
    %c0_45 = arith.constant 0 : index
    %c0_46 = arith.constant 0 : index
    %51 = vector.load %arg2[%c8, %c0_45, %c0_46] : memref<9x32x32xbf16, #tpu.memory_space<vmem>>, vector<1x32x32xbf16>
    %52 = vector.shape_cast %51 : vector<1x32x32xbf16> to vector<32x32xbf16>
    %cst_47 = arith.constant dense<0.000000e+00> : vector<128x32xf32>
    %53 = tpu.matmul %50, %52, %cst_47 {dimension_numbers = #tpu.dot_dimension_numbers<[1], [0], [0], [1], [0, 0, 1, 1], [], []>} : vector<128x32xbf16>, vector<32x32xbf16>, vector<128x32xf32> -> vector<128x32xf32>
    %54 = arith.addf %48, %53 : vector<128x32xf32>
    %c0_48 = arith.constant 0 : index
    %c0_49 = arith.constant 0 : index
    %55 = vector.load %arg3[%c0_48, %c0_49] : memref<1x32xf32, #tpu.memory_space<vmem>>, vector<1x32xf32>
    %56 = vector.broadcast %55 : vector<1x32xf32> to vector<128x32xf32>
    %57 = arith.addf %54, %56 : vector<128x32xf32>
    %58 = vector.shape_cast %57 : vector<128x32xf32> to vector<8x16x32xf32>
    %59 = vector.extract_strided_slice %58 {offsets = [0, 0, 0], sizes = [8, 8, 32], strides = [1, 1, 1]} : vector<8x16x32xf32> to vector<8x8x32xf32>
    %c0_50 = arith.constant 0 : index
    %c0_51 = arith.constant 0 : index
    %c0_52 = arith.constant 0 : index
    %c0_53 = arith.constant 0 : index
    %60 = vector.load %arg4[%c0_50, %c0_51, %c0_52, %c0_53] : memref<1x8x8x32xf32, #tpu.memory_space<vmem>>, vector<1x8x8x32xf32>
    %61 = vector.shape_cast %60 : vector<1x8x8x32xf32> to vector<8x8x32xf32>
    %62 = vector.shape_cast %59 : vector<8x8x32xf32> to vector<1x8x8x32xf32>
    tpu.vector_store %arg4[%c0_50, %c0_51, %c0_52, %c0_53], %62 {strides = array<i32>} : memref<1x8x8x32xf32, #tpu.memory_space<vmem>>, vector<1x8x8x32xf32>,
    return
  }
  func.func @transform_0(%arg0: i32) -> (i32, i32, i32) {
    %c0_i32 = arith.constant 0 : i32
    %c0_i32_0 = arith.constant 0 : i32
    %c0_i32_1 = arith.constant 0 : i32
    return %arg0, %c0_i32, %c0_i32_0 : i32, i32, i32
  }
  func.func @transform_1(%arg0: i32) -> (i32, i32, i32) {
    %c0_i32 = arith.constant 0 : i32
    %c0_i32_0 = arith.constant 0 : i32
    %c0_i32_1 = arith.constant 0 : i32
    %c0_i32_2 = arith.constant 0 : i32
    return %c0_i32, %c0_i32_0, %c0_i32_1 : i32, i32, i32
  }
  func.func @transform_2(%arg0: i32) -> (i32, i32) {
    %c0_i32 = arith.constant 0 : i32
    %c0_i32_0 = arith.constant 0 : i32
    %c0_i32_1 = arith.constant 0 : i32
    return %c0_i32, %c0_i32_0 : i32, i32
  }
  func.func @transform_3(%arg0: i32) -> (i32, i32, i32, i32) {
    %c0_i32 = arith.constant 0 : i32
    %c0_i32_0 = arith.constant 0 : i32
    %c0_i32_1 = arith.constant 0 : i32
    %c0_i32_2 = arith.constant 0 : i32
    return %arg0, %c0_i32, %c0_i32_0, %c0_i32_1 : i32, i32, i32, i32
  }
}

</mosaic_0001>

<bundles_post_ra>
// kernel: glam_forward.3
= control target key start
LH: loop header
LB: loop body
LE: loop exit
PB: predicated region body
PF: predicated region fallthrough
CT: control target
= control target key end

     0   :  { %s2871_s18 = smov 0   ;;  %s3416_s0 = inlined_call_operand.vmem [shape: bf16[2,176,32], index: 0, kind: input, shape index: {}]   ;;  %s3417_s1 = inlined_call_operand.vmem [shape: bf16[9,32,72], index: 1, kind: input, shape index: {}]   ;;  %s3418_s2 = inlined_call_operand.vmem [shape: f32[1,72], index: 2, kind: input, shape index: {}]   ;;  %s3419_s3 = inlined_call_operand.vmem [shape: bf16[2,8,8,8], index: 3, kind: output, shape index: {0}]   ;;  %s3420_s4 = inlined_call_operand.vmem [shape: bf16[2,8,8,32], index: 4, kind: output, shape index: {1}]   ;;  %s3421_s5 = inlined_call_operand.vmem [shape: bf16[2,8,8,32], index: 5, kind: output, shape index: {2}]  }
   0x1 LB: > { %s2280_s19 = sadd.s32 4294967295, %s2837_s18   ;;  %p2284_p0 = scmp.ge.s32.totalorder %s2837_s18, 1  ;;  %s2837_s18 = sphi %s2871_s18, %s16_s18  }
   0x2   : > { %p192_p1 = scmp.lt.s32.totalorder %s2837_s18, 3 }
   0x4   : > { %p193_p2 = pnand %p2284_p0, %p192_p1 }
   0x5   : > { %v2767_v0 = vld [vmem:[%s3417_s1 + $0x10] sm:$0xff] (!%p193_p2)   ;;  %p230_p3 = scmp.lt.s32.totalorder (!%p193_p2), %s2280_s19, 1  ;;  %v2768_v1 = vld [vmem:[%s3417_s1 + $0x18] sm:$0xff] (!%p193_p2)   ;;  %v2890_v2 = vld [vmem:[%s3417_s1] sm:$0xff] (!%p193_p2)   ;;  %vm320_vm0 = vsmask.f32 (!%p193_p2), 7424 }
   0x6   : > { %196 = sbr.rel (%p193_p2) target bundleno = 509 (0x1fd), region = 32  ;;  %2752 = vmatprep.subr.bf16.mxu1 (!%p193_p2), %v2767_v0  ;;  %2572 = vmatprep.subr.bf16.mxu0 (!%p193_p2), %v2767_v0  ;;  %v2776_v3 = vld [vmem:[%s3417_s1 + $0x20] sm:$0xff] (!%p193_p2)   ;;  %vm401_vm1 = vcmask (!%p193_p2), 261120   ;;  %v2781_v37 = vld [vmem:[%s3417_s1 + $0x28] sm:$0xff] (!%p193_p2)   ;;  %vm641_vm2 = vcmask (!%p193_p2), 1046528   ;;  %v2783_v62 = vld [vmem:[%s3417_s1 + $0x30] sm:$0xff] (!%p193_p2)  }
   0x7   : > { %2754 = vmatpush3.bf16.msra.mxu1 (!%p193_p2), %v2767_v0  ;;  %2573 = vmatpush3.bf16.msra.mxu0 (!%p193_p2), %v2767_v0  ;;  %v2779_v46 = vld [vmem:[%s3417_s1 + $0x8] sm:$0xff] (!%p193_p2)   ;;  %v2784_v57 = vld [vmem:[%s3417_s1 + $0x40] sm:$0xff] (!%p193_p2)   ;;  %vm2061_vm3 = vcmask (!%p193_p2), 60416   ;;  %s2840_s20 = smov (!%p193_p2), 120   ;;  %vm2118_vm4 = vcmask (!%p193_p2), 257024  }
   0x8   : > { %2753 = vmatprep.subr.bf16.mxu1 (!%p193_p2), %v2768_v1  ;;  %2574 = vmatprep.subr.bf16.mxu0 (!%p193_p2), %v2768_v1 }
   0xb   : > { %2755 = vmatpush3.bf16.msra.mxu1 (!%p193_p2), %v2768_v1  ;;  %2575 = vmatpush3.bf16.msra.mxu0 (!%p193_p2), %v2768_v1 }
   0xc   : > { %2592 = vmatprep.subr.bf16.mxu1 (!%p193_p2), %v2890_v2  ;;  %2612 = vmatprep.subr.bf16.mxu0 (!%p193_p2), %v2776_v3 }
   0xd   : > { %s3423_s19 = smov (!%p230_p3, %s2280_s19), 1 }
   0xe   : > { %s2756_s26 = smul.u32 88, %s3423_s19  ;;  %s3327_s14 = sshll.u32 %s3423_s19, 5 }
   0xf   : > { %s3335_s17 = scalar_lea.vmem %s3419_s3, %s3327_s14  ;;  %s2839_s19 = smov 88  }
  0x10   : > { %s2899_s6 = scalar_lea.vmem %s3416_s0, %s2756_s26  ;;  %s3383_s23 = scalar_lea.vmem %s3421_s5, %s3327_s14 }
  0x11   : > { %v251_v4 = vld [vmem:[%s2899_s6] sm:$0xf]  ;;  %v2903_v5 = vld [vmem:[%s2899_s6 + $0x4] sm:$0xf]  ;;  %v2909_v7 = vld [vmem:[%s2899_s6 + $0x8] sm:$0xff]   ;;  %s244_s26 = scalar_lea.vmem %s3420_s4, %s3327_s14 }
  0x12   : > { %v2906_v6 = vcombine.low %v251_v4, %v2903_v5  ;;  %v329_v10 = vshll.u32 %v2909_v7, 16  ;;  %v333_v11 = vshrl.u32 %v2909_v7, 16  ;;  %v2917_v12 = vld [vmem:[%s2899_s6 + $0x20] sm:$0xff]   ;;  %v2920_v13 = vld [vmem:[%s2899_s6 + $0x28] sm:$0xff]   ;;  %v2923_v14 = vld [vmem:[%s2899_s6 + $0x10] sm:$0xff]   ;;  %v643_v15 = vrot.slane %v2909_v7, 1 }
  0x13   : > { %v353_v18 = vshll.u32 %v2917_v12, 16  ;;  %v357_v19 = vshrl.u32 %v2917_v12, 16  ;;  %v361_v20 = vshll.u32 %v2920_v13, 16  ;;  %v365_v21 = vshrl.u32 %v2920_v13, 16  ;;  %v2932_v23 = vld [vmem:[%s2899_s6 + $0x30] sm:$0xff]   ;;  %v2935_v27 = vld [vmem:[%s2899_s6 + $0x18] sm:$0xff]  }
  0x14   : > { %v322_v8 = vshrl.u32 %v2906_v6, 16  ;;  %v324_v9 = vshll.u32 %v2906_v6, 16  ;;  %v331_v17 = vrot.slane %v329_v10, 1  ;;  %v337_v22 = vshll.u32 %v2923_v14, 16  ;;  %v2942_v35 = vld [vmem:[%s2899_s6 + $0x38] sm:$0xff]  }
  0x15   : > { %v355_v26 = vrot.slane %v353_v18, 1  ;;  %v363_v28 = vrot.slane %v361_v20, 1  ;;  %v369_v30 = vshll.u32 %v2932_v23, 16  ;;  %v341_v31 = vshrl.u32 %v2923_v14, 16  ;;  %v632_v48 = vld [vmem:[%s2899_s6] sm:$0xe] }
  0x16   : > { %v326_v16 = vrot.slane %v324_v9, 1  ;;  %v335_v25 = vor.u32 %v333_v11, %v331_v17  ;;  %v339_v29 = vrot.slane %v337_v22, 1  ;;  %v345_v34 = vshll.u32 %v2935_v27, 16  ;;  %v2951_v42 = vld [vmem:[%s2899_s6 + $0x40] ss:$0 sps:$4 sm:$0x11]  }
  0x17   : > { %v359_v33 = vor.u32 %v357_v19, %v355_v26  ;;  %v373_v36 = vshrl.u32 %v2932_v23, 16  ;;  %v367_v38 = vor.u32 %v365_v21, %v363_v28  ;;  %v371_v40 = vrot.slane %v369_v30, 1  ;;  %v2988_v4 = vld [vmem:[%s2899_s6 + $0xc] sm:$0xf]  ;;  %v2785_v11 = vld [vmem:[%s3417_s1 + $0x38] sm:$0xff]   ;;  %v3023_v22 = vld [vmem:[%s3417_s1 + $0x50] sm:$0xff]  }
  0x18   : > { %v327_v24 = vor.u32 %v326_v16, %v322_v8  ;;  %v340_v39 = vsel %vm320_vm0, %v335_v25, %v339_v29  ;;  %v343_v41 = vor.u32 %v341_v31, %v339_v29  ;;  %v347_v44 = vrot.slane %v345_v34, 1  ;;  %v2786_v16 = vld [vmem:[%s3417_s1 + $0x48] sm:$0xff]   ;;  %v3031_v25 = vld [vmem:[%s2899_s6 + $0x30] sm:$0xff]   ;;  %v3039_v29 = vld [vmem:[%s2899_s6 + $0x18] sm:$0xff]  }
  0x19   : > { %v364_v43 = vsel %vm320_vm0, %v359_v33, %v363_v28  ;;  %v377_v45 = vshll.u32 %v2942_v35, 16  ;;  %v349_v47 = vshrl.u32 %v2935_v27, 16  ;;  %v372_v49 = vsel %vm320_vm0, %v367_v38, %v371_v40  ;;  %v2802_v31 = vld [vmem:[%s2899_s6 + $0x38] sm:$0xff]  }
  0x1a   : > { %v332_v32 = vsel %vm320_vm0, %v327_v24, %v331_v17  ;;  %2584 = vmatprep.mubr.msk.bf16.mxu1 %vm401_vm1, %v364_v43  ;;  %v375_v50 = vor.u32 %v373_v36, %v371_v40  ;;  %v381_v51 = vshrl.u32 %v2942_v35, 16  ;;  %v385_v52 = vshll.u32 %v2951_v42, 16  ;;  %v3008_v17 = vld [vmem:[%s2899_s6 + $0x10] sm:$0xff]   ;;  %v3028_v24 = vld [vmem:[%s3417_s1 + $0x60] sm:$0xff]  }
  0x1b   : > { %2576 = vmatprep.mubr.msk.bf16.mxu0 %vm401_vm1, %v332_v32  ;;  %2585 = vmatmul.mubr.msk.bf16.vlgmr.msra.gmra.mrb[0].mxu1 %vm401_vm1, %v372_v49  ;;  %v348_v53 = vsel %vm320_vm0, %v343_v41, %v347_v44  ;;  %v379_v54 = vrot.slane %v377_v45, 1  ;;  %v351_v55 = vor.u32 %v349_v47, %v347_v44  ;;  %v2329_v56 = vcombine.low %v632_v48, %v2903_v5  ;;  %v2805_v43 = vld [vmem:[%s2899_s6 + $0x40] sm:$0xff]   ;;  %v2807_v49 = vld [vmem:[%s2899_s6 + $0x48] ss:$0 sps:$4 sm:$0x11]  }
  0x1c   : > { %2577 = vmatmul.mubr.msk.bf16.vlgmr.msra.gmra.mrb[0].mxu0 %vm401_vm1, %v340_v39  ;;  %2593 = vmatpush3.bf16.msra.mxu1 %v2890_v2  ;;  %v387_v58 = vrot.slane %v385_v52, 1  ;;  %v645_v2 = vrot.slane %v2923_v14, 1  ;;  %v647_v5 = vrot.slane %v2935_v27, 1  ;;  %v651_v18 = vrot.slane %v2920_v13, 1  ;;  %v3056_v45 = vld [vmem:[%s2899_s6 + $0x20] sm:$0xff]  }
  0x1d   : > { %2613 = vmatpush3.bf16.msra.mxu0 %v2776_v3  ;;  %2580 = vmatprep.mubr.msk.bf16.mxu0 %vm401_vm1, %v348_v53  ;;  %v380_v59 = vsel %vm320_vm0, %v375_v50, %v379_v54  ;;  %v383_v60 = vor.u32 %v381_v51, %v379_v54  ;;  %v642_v61 = vrot.slane %v2329_v56, 1  ;;  %v356_v63 = vsel %vm320_vm0, %v351_v55, %v355_v26  ;;  %v986_v3 = vld [vmem:[%s2899_s6 + $0x8] sm:$0xf] }
  0x1e   : > { %2614 = vmatprep.subr.bf16.mxu0 %v2781_v37  ;;  %2594 = vmatprep.subr.bf16.mxu1 %v2779_v46  ;;  %v2995_v8 = vcombine.low %v986_v3, %v2988_v4  ;;  %v646_v9 = vsel %vm641_vm2, %v643_v15, %v645_v2  ;;  %v648_v10 = vsel %vm641_vm2, %v645_v2, %v647_v5  ;;  %v655_v20 = vrot.slane %v2942_v35, 1  ;;  %v1252_v51 = vld [vmem:[%s2899_s6 + $0x8] sm:$0xe] }
  0x1f   : > { %2588 = vmatprep.mubr.msk.bf16.mxu1 %vm401_vm1, %v380_v59  ;;  %v644_v0 = vsel %vm641_vm2, %v642_v61, %v643_v15  ;;  %v388_v1 = vsel %vm320_vm0, %v383_v60, %v387_v58  ;;  %v653_v15 = vrot.slane %v2932_v23, 1  ;;  %v657_v21 = vrot.slane %v2951_v42, 1  ;;  %v3076_v59 = vld [vmem:[%s2899_s6 + $0x28] sm:$0xff]  }
  0x20   : > { %2595 = vmatpush3.bf16.msra.mxu1 %v2779_v46  ;;  %v1054_v19 = vshll.u32 %v2995_v8, 16  ;;  %v1059_v26 = vshll.u32 %v3008_v17, 16  ;;  %v1063_v28 = vshrl.u32 %v3008_v17, 16  ;;  %v1091_v30 = vshll.u32 %v3031_v25, 16 }
  0x21   : > { %2615 = vmatpush3.bf16.msra.mxu0 %v2781_v37  ;;  %2632 = vmatprep.subr.bf16.mxu1 %v2783_v62  ;;  %v1099_v37 = vshll.u32 %v2802_v31, 16  ;;  %v1103_v39 = vshrl.u32 %v2802_v31, 16  ;;  %v1067_v44 = vshll.u32 %v3039_v29, 16  ;;  %v1107_v48 = vshll.u32 %v2805_v43, 16 }
  0x22   : > { %2652 = vmatprep.subr.bf16.mxu0 %v2784_v57  ;;  %v1056_v33 = vrot.slane %v1054_v19, 1  ;;  %v3047_v36 = vrot.slane %v1091_v30, 1  ;;  %v1061_v38 = vrot.slane %v1059_v26, 1  ;;  %v1111_v50 = vshrl.u32 %v2805_v43, 16  ;;  %v2787_v30 = vld [vmem:[%s2899_s6 + $0x8] sm:$0xff]  }
  0x23   : > { %2589 = vmatmul.mubr.msk.bf16.gmra.mrb[4].mxu1 %vm401_vm1, %v388_v1  ;;  %v1101_v41 = vrot.slane %v1099_v37, 1  ;;  %v1262_v52 = vrot.slane %v3008_v17, 1  ;;  %v1109_v53 = vrot.slane %v1107_v48, 1  ;;  %v1115_v54 = vshll.u32 %v2807_v49, 16 }
  0x24   : > { %2581 = vmatmul.mubr.msk.bf16.gmra.mrb[4].mxu0 %vm401_vm1, %v356_v63  ;;  %2596 = vmatprep.mubr.msk.bf16.mxu1 %vm401_vm1, %v2906_v6  ;;  %v649_v6 = vrot.slane %v2917_v12, 1  ;;  %v2389_v55 = vcombine.low %v1252_v51, %v2988_v4  ;;  %v656_v56 = vsel %vm641_vm2, %v653_v15, %v655_v20  ;;  %v1075_v58 = vshll.u32 %v3056_v45, 16 }
  0x25   : > { %2616 = vmatprep.mubr.msk.bf16.mxu0 %vm401_vm1, %v644_v0  ;;  %v1105_v47 = vor.u32 %v1103_v39, %v1101_v41  ;;  %v1113_v60 = vor.u32 %v1111_v50, %v1109_v53  ;;  %v1117_v61 = vrot.slane %v1115_v54, 1  ;;  %v1079_v63 = vshrl.u32 %v3056_v45, 16  ;;  %v2824_v39 = vld [vmem:[%s2899_s6 + $0x20] sm:$0xff]   ;;  %v2826_v54 = vld [vmem:[%s2899_s6 + $0x30] sm:$0xff]  }
  0x26   : > { %v650_v32 = vsel %vm641_vm2, %v647_v5, %v649_v6  ;;  %v652_v34 = vsel %vm641_vm2, %v649_v6, %v651_v18  ;;  %v1270_v2 = vrot.slane %v3031_v25, 1  ;;  %v1077_v3 = vrot.slane %v1075_v58, 1 }
  0x27   : > { %v3084_v0 = vsel %vm320_vm0, %v1113_v60, %v1117_v61  ;;  %v1272_v4 = vrot.slane %v2802_v31, 1  ;;  %v1605_v31 = vld [vmem:[%s2899_s6 + $0x10] sm:$0xf]  ;;  %v1686_v50 = vshll.u32 %v2824_v39, 16  ;;  %v1883_v51 = vrot.slane %v2824_v39, 1  ;;  %v2827_v60 = vld [vmem:[%s2899_s6 + $0x38] sm:$0xff]  }
  0x28   : > { %v1081_v26 = vor.u32 %v1079_v63, %v1077_v3  ;;  %v1690_v58 = vshrl.u32 %v2824_v39, 16  ;;  %v2800_v61 = vld [vmem:[%s3417_s1 + $0x58] sm:$0xff]   ;;  %v2810_v39 = vld [vmem:[%s3417_s1 + $0x70] sm:$0xff]   ;;  %v1268_v17 = vrot.slane %v3076_v59, 1 }
  0x29   : > { %v1688_v63 = vrot.slane %v1686_v50, 1  ;;  %v2796_v50 = vld [vmem:[%s2899_s6 + $0x20] sm:$0xff]  }
  0x2b   : > { %2597 = vmatmul.mubr.msk.bf16.vlgmr.msra.gmra.mrb[8].mxu1 %vm401_vm1, %v2909_v7  ;;  %v1052_v7 = vshrl.u32 %v2995_v8, 16  ;;  %v1083_v8 = vshll.u32 %v3076_v59, 16 }
  0x2c   : > { %2617 = vmatmul.mubr.msk.bf16.vlgmr.msra.gmra.mrb[8].mxu0 %vm401_vm1, %v646_v9  ;;  %2633 = vmatpush3.bf16.msra.mxu1 %v2783_v62  ;;  %v1261_v62 = vrot.slane %v2389_v55, 1  ;;  %v1274_v9 = vrot.slane %v2805_v43, 1  ;;  %v2794_v55 = vld [vmem:[%s2899_s6 + $0x18] sm:$0xff]  }
  0x2d   : > { %2653 = vmatpush3.bf16.msra.mxu0 %v2784_v57  ;;  %2620 = vmatprep.mubr.msk.bf16.mxu0 %vm401_vm1, %v648_v10  ;;  %v1071_v57 = vshrl.u32 %v3039_v29, 16  ;;  %v1057_v5 = vor.u32 %v1056_v33, %v1052_v7  ;;  %v3101_v10 = vsel %vm641_vm2, %v1270_v2, %v1272_v4  ;;  %v1085_v42 = vrot.slane %v1083_v8, 1  ;;  %v1871_v33 = vld [vmem:[%s2899_s6 + $0x10] sm:$0xe] }
  0x2e   : > { %2654 = vmatprep.subr.bf16.mxu0 %v2786_v16  ;;  %2600 = vmatprep.mubr.msk.bf16.mxu1 %vm401_vm1, %v2923_v14  ;;  %v1095_v14 = vshrl.u32 %v3031_v25, 16  ;;  %v3089_v1 = vsel %vm641_vm2, %v1261_v62, %v1262_v52  ;;  %v3104_v6 = vsel %vm641_vm2, %v1272_v4, %v1274_v9  ;;  %v2820_v25 = vld [vmem:[%s2899_s6 + $0x48] sm:$0xff]  }
  0x2f   : > { %2634 = vmatprep.subr.bf16.mxu1 %v2785_v11  ;;  %v1062_v19 = vsel %vm320_vm0, %v1057_v5, %v1061_v38  ;;  %v3130_v37 = vsel %vm320_vm0, %v1081_v26, %v1085_v42 }
  0x30   : > { %2635 = vmatpush3.bf16.msra.mxu1 %v2785_v11  ;;  %v1097_v40 = vor.u32 %v1095_v14, %v3047_v36  ;;  %v1276_v11 = vrot.slane %v2807_v49, 1 }
  0x31   : > { %2655 = vmatpush3.bf16.msra.mxu0 %v2786_v16  ;;  %2672 = vmatprep.subr.bf16.mxu1 %v3023_v22  ;;  %v1069_v16 = vrot.slane %v1067_v44, 1 }
  0x32   : > { %2692 = vmatprep.subr.bf16.mxu0 %v3028_v24  ;;  %v3061_v46 = vsel %vm320_vm0, %v1097_v40, %v1101_v41 }
  0x33   : > { %2601 = vmatmul.mubr.msk.bf16.gmra.mrb[12].mxu1 %vm401_vm1, %v2935_v27  ;;  %v654_v27 = vsel %vm641_vm2, %v651_v18, %v653_v15  ;;  %v1087_v18 = vshrl.u32 %v3076_v59, 16  ;;  %v3115_v15 = vsel %vm641_vm2, %v1274_v9, %v1276_v11  ;;  %v1073_v7 = vor.u32 %v1071_v57, %v1069_v16  ;;  %v3159_v11 = vld [vmem:[%s3417_s1 + $0x80] sm:$0xff]   ;;  %v2817_v59 = vld [vmem:[%s2899_s6 + $0x38] sm:$0xff]  }
  0x34   : > { %2621 = vmatmul.mubr.msk.bf16.gmra.mrb[12].mxu0 %vm401_vm1, %v650_v32  ;;  %2604 = vmatprep.mubr.msk.bf16.mxu1 %vm401_vm1, %v2917_v12  ;;  %v3079_v12 = vsel %vm320_vm0, %v1105_v47, %v1109_v53  ;;  %v2822_v32 = vld [vmem:[%s2899_s6 + $0x18] sm:$0xff]   ;;  %v2803_v47 = vld [vmem:[%s3417_s1 + $0x68] sm:$0xff]  }
  0x35   : > { %2624 = vmatprep.mubr.msk.bf16.mxu0 %vm401_vm1, %v652_v34  ;;  %v1078_v34 = vsel %vm320_vm0, %v1073_v7, %v1077_v3  ;;  %v1678_v43 = vshll.u32 %v2822_v32, 16  ;;  %v1682_v44 = vshrl.u32 %v2822_v32, 16  ;;  %v1881_v49 = vrot.slane %v2822_v32, 1  ;;  %v2825_v53 = vld [vmem:[%s2899_s6 + $0x28] sm:$0xff]  }
  0x36   : > { %v1694_v4 = vshll.u32 %v2825_v53, 16  ;;  %v1885_v8 = vrot.slane %v2825_v53, 1  ;;  %v1698_v9 = vshrl.u32 %v2825_v53, 16  ;;  %v2830_v32 = vld [vmem:[%s2899_s6 + $0x50] ss:$0 sps:$4 sm:$0x11]  }
  0x37   : > { %v1680_v57 = vrot.slane %v1678_v43, 1  ;;  %v3153_v3 = vsel %vm641_vm2, %v1881_v49, %v1883_v51 }
  0x3b   : > { %2605 = vmatmul.mubr.msk.bf16.gmra.mrb[16].mxu1 %vm401_vm1, %v2920_v13  ;;  %v658_v13 = vsel %vm641_vm2, %v655_v20, %v657_v21  ;;  %v1606_v20 = vld [vmem:[%s2899_s6 + $0x14] sm:$0xf]  ;;  %v1089_v21 = vor.u32 %v1087_v18, %v1085_v42  ;;  %v1887_v18 = vrot.slane %v2826_v54, 1  ;;  %v3171_v42 = vsel %vm641_vm2, %v1883_v51, %v1885_v8 }
  0x3c   : > { %2625 = vmatmul.mubr.msk.bf16.gmra.mrb[16].mxu0 %vm401_vm1, %v654_v27  ;;  %2608 = vmatprep.mubr.msk.bf16.mxu1 %vm401_vm1, %v2932_v23  ;;  %v1065_v23 = vor.u32 %v1063_v28, %v1061_v38  ;;  %v2426_v28 = vcombine.low %v1605_v31, %v1606_v20  ;;  %v2449_v38 = vcombine.low %v1871_v33, %v1606_v20  ;;  %v2829_v31 = vld [vmem:[%s2899_s6 + $0x48] sm:$0xff]   ;;  %v1710_v33 = vshll.u32 %v2827_v60, 16 }
  0x3d   : > { %2628 = vmatprep.mubr.msk.bf16.mxu0 %vm401_vm1, %v656_v56  ;;  %v3143_v27 = vsel %vm320_vm0, %v1089_v21, %v3047_v36  ;;  %v1684_v36 = vor.u32 %v1682_v44, %v1680_v57  ;;  %v1730_v53 = vshrl.u32 %v2829_v31, 16 }
  0x3e   : > { %v1070_v14 = vsel %vm320_vm0, %v1065_v23, %v1069_v16  ;;  %v1671_v40 = vshrl.u32 %v2426_v28, 16  ;;  %v1673_v41 = vshll.u32 %v2426_v28, 16  ;;  %v1880_v48 = vrot.slane %v2449_v38, 1 }
  0x3f   : > { %v1692_v16 = vor.u32 %v1690_v58, %v1688_v63  ;;  %v1702_v23 = vshll.u32 %v2826_v54, 16  ;;  %v3168_v26 = vsel %vm320_vm0, %v1684_v36, %v1688_v63  ;;  %v3179_v28 = vsel %vm641_vm2, %v1885_v8, %v1887_v18 }
  0x40   : > { %v1675_v56 = vrot.slane %v1673_v41, 1  ;;  %v3150_v62 = vsel %vm641_vm2, %v1880_v48, %v1881_v49  ;;  %v1889_v38 = vrot.slane %v2827_v60, 1  ;;  %v1726_v49 = vshll.u32 %v2829_v31, 16 }
  0x41   : > { %v1704_v21 = vrot.slane %v1702_v23, 1  ;;  %v2806_v23 = vld [vmem:[%s2899_s6 + $0x40] sm:$0xff]  }
  0x42   : > { %v1676_v5 = vor.u32 %v1675_v56, %v1671_v40  ;;  %v3191_v48 = vsel %vm641_vm2, %v1887_v18, %v1889_v38  ;;  %v2798_v56 = vld [vmem:[%s2899_s6 + $0x28] sm:$0xff]   ;;  %v1266_v18 = vrot.slane %v3056_v45, 1 }
  0x43   : > { %2609 = vmatmul.mubr.msk.bf16.gmra.mrb[20].mxu1 %vm401_vm1, %v2942_v35  ;;  %v2791_v35 = vld [vmem:[%s2899_s6 + $0x10] sm:$0xff]   ;;  %v2814_v45 = vld [vmem:[%s2899_s6 + $0x28] sm:$0xff]  }
  0x44   : > { %2629 = vmatmul.mubr.msk.bf16.gmra.mrb[20].mxu0 %vm401_vm1, %v658_v13  ;;  %2636 = vmatprep.mubr.msk.bf16.mxu1 %vm401_vm1, %v2787_v30  ;;  %v1696_v13 = vrot.slane %v1694_v4, 1  ;;  %v3165_v7 = vsel %vm320_vm0, %v1676_v5, %v1680_v57  ;;  %v1706_v30 = vshrl.u32 %v2826_v54, 16  ;;  %v1734_v54 = vshll.u32 %v2830_v32, 16 }
  0x45   : > { %2656 = vmatprep.mubr.msk.bf16.mxu0 %vm401_vm1, %v1062_v19  ;;  %v2828_v19 = vld [vmem:[%s2899_s6 + $0x40] sm:$0xff]   ;;  %v1895_v5 = vrot.slane %v2830_v32, 1 }
  0x46   : > { %v3176_v20 = vsel %vm320_vm0, %v1692_v16, %v1696_v13  ;;  %v1708_v41 = vor.u32 %v1706_v30, %v1704_v21  ;;  %v1891_v43 = vrot.slane %v2828_v19, 1  ;;  %v1722_v44 = vshrl.u32 %v2828_v19, 16  ;;  %v2804_v16 = vld [vmem:[%s2899_s6 + $0x38] sm:$0xff]   ;;  %v2818_v30 = vld [vmem:[%s3417_s1 + $0x88] sm:$0xff]  }
  0x47   : > { %v1736_v63 = vrot.slane %v1734_v54, 1 }
  0x48   : > { %v3196_v51 = vsel %vm641_vm2, %v1889_v38, %v1891_v43 }
  0x4b   : > { %2637 = vmatmul.mubr.msk.bf16.vlgmr.msra.gmra.mrb[24].mxu1 %vm401_vm1, %v2791_v35 }
  0x4c   : > { %2657 = vmatmul.mubr.msk.bf16.vlgmr.msra.gmra.mrb[24].mxu0 %vm401_vm1, %v1070_v14  ;;  %2673 = vmatpush3.bf16.msra.mxu1 %v3023_v22  ;;  %v1714_v14 = vshrl.u32 %v2827_v60, 16  ;;  %v1712_v22 = vrot.slane %v1710_v33, 1  ;;  %v1728_v60 = vrot.slane %v1726_v49, 1 }
  0x4d   : > { %2693 = vmatpush3.bf16.msra.mxu0 %v3028_v24  ;;  %2660 = vmatprep.mubr.msk.bf16.mxu0 %vm401_vm1, %v1078_v34  ;;  %v1700_v24 = vor.u32 %v1698_v9, %v1696_v13  ;;  %v1718_v34 = vshll.u32 %v2828_v19, 16  ;;  %v2809_v13 = vld [vmem:[%s2899_s6 + $0x10] sm:$0xff]   ;;  %v2813_v19 = vld [vmem:[%s2899_s6 + $0x20] sm:$0xff]  }
  0x4e   : > { %2694 = vmatprep.subr.bf16.mxu0 %v2803_v47  ;;  %2640 = vmatprep.mubr.msk.bf16.mxu1 %vm401_vm1, %v2794_v55  ;;  %v1893_v55 = vrot.slane %v2829_v31, 1  ;;  %v3200_v57 = vsel %vm320_vm0, %v1708_v41, %v1712_v22  ;;  %v1732_v8 = vor.u32 %v1730_v53, %v1728_v60  ;;  %v1269_v31 = vsel %vm641_vm2, %v1266_v18, %v1268_v17 }
  0x4f   : > { %2674 = vmatprep.subr.bf16.mxu1 %v2800_v61  ;;  %v3188_v40 = vsel %vm320_vm0, %v1700_v24, %v1704_v21  ;;  %v1720_v35 = vrot.slane %v1718_v34, 1  ;;  %v2819_v24 = vld [vmem:[%s2899_s6 + $0x40] sm:$0xff]  }
  0x50   : > { %2675 = vmatpush3.bf16.msra.mxu1 %v2800_v61  ;;  %v3205_v4 = vsel %vm641_vm2, %v1891_v43, %v1893_v55  ;;  %v3221_v9 = vsel %vm320_vm0, %v1732_v8, %v1736_v63 }
  0x51   : > { %2695 = vmatpush3.bf16.msra.mxu0 %v2803_v47  ;;  %v1716_v47 = vor.u32 %v1714_v14, %v1712_v22  ;;  %v1724_v58 = vor.u32 %v1722_v44, %v1720_v35  ;;  %2712 = vmatprep.subr.bf16.mxu1 %v2810_v39 }
  0x52   : > { %2732 = vmatprep.subr.bf16.mxu0 %v3159_v11 }
  0x53   : > { %v3210_v61 = vsel %vm320_vm0, %v1716_v47, %v1720_v35  ;;  %v3213_v36 = vsel %vm320_vm0, %v1724_v58, %v1728_v60  ;;  %2641 = vmatmul.mubr.msk.bf16.gmra.mrb[28].mxu1 %vm401_vm1, %v2796_v50 }
  0x54   : > { %2661 = vmatmul.mubr.msk.bf16.gmra.mrb[28].mxu0 %vm401_vm1, %v3130_v37  ;;  %v3217_v37 = vsel %vm641_vm2, %v1893_v55, %v1895_v5  ;;  %2644 = vmatprep.mubr.msk.bf16.mxu1 %vm401_vm1, %v2798_v56 }
  0x55   : > { %2664 = vmatprep.mubr.msk.bf16.mxu0 %vm401_vm1, %v3143_v27  ;;  %v2801_v27 = vld [vmem:[%s2899_s6 + $0x30] sm:$0xff]  }
  0x5b   : > { %2645 = vmatmul.mubr.msk.bf16.gmra.mrb[32].mxu1 %vm401_vm1, %v2801_v27 }
  0x5c   : > { %2665 = vmatmul.mubr.msk.bf16.gmra.mrb[32].mxu0 %vm401_vm1, %v3061_v46  ;;  %2648 = vmatprep.mubr.msk.bf16.mxu1 %vm401_vm1, %v2804_v16  ;;  %v1264_v46 = vrot.slane %v3039_v29, 1  ;;  %v2816_v29 = vld [vmem:[%s3417_s1 + $0x78] sm:$0xff]  }
  0x5d   : > { %2668 = vmatprep.mubr.msk.bf16.mxu0 %vm401_vm1, %v3079_v12  ;;  %v2811_v12 = vld [vmem:[%s2899_s6 + $0x18] sm:$0xff]  }
  0x63   : > { %2649 = vmatmul.mubr.msk.bf16.gmra.mrb[36].mxu1 %vm401_vm1, %v2806_v23 }
  0x64   : > { %2669 = vmatmul.mubr.msk.bf16.gmra.mrb[36].mxu0 %vm401_vm1, %v3084_v0  ;;  %2676 = vmatprep.mubr.msk.bf16.mxu1 %vm401_vm1, %v3089_v1  ;;  %v1265_v0 = vsel %vm641_vm2, %v1262_v52, %v1264_v46  ;;  %v1267_v1 = vsel %vm641_vm2, %v1264_v46, %v1266_v18  ;;  %v2815_v52 = vld [vmem:[%s2899_s6 + $0x30] sm:$0xff]  }
  0x65   : > { %2696 = vmatprep.mubr.msk.bf16.mxu0 %vm401_vm1, %v2809_v13 }
  0x6b   : > { %2677 = vmatmul.mubr.msk.bf16.vlgmr.msra.gmra.mrb[40].mxu1 %vm401_vm1, %v1265_v0 }
  0x6c   : > { %2697 = vmatmul.mubr.msk.bf16.vlgmr.msra.gmra.mrb[40].mxu0 %vm401_vm1, %v2811_v12  ;;  %2713 = vmatpush3.bf16.msra.mxu1 %v2810_v39 }
  0x6d   : > { %2733 = vmatpush3.bf16.msra.mxu0 %v3159_v11  ;;  %2700 = vmatprep.mubr.msk.bf16.mxu0 %vm401_vm1, %v2813_v19  ;;  %v1271_v11 = vsel %vm641_vm2, %v1268_v17, %v1270_v2 }
  0x6e   : > { %2734 = vmatprep.subr.bf16.mxu0 %v2818_v30  ;;  %2680 = vmatprep.mubr.msk.bf16.mxu1 %vm401_vm1, %v1267_v1 }
  0x6f   : > { %2714 = vmatprep.subr.bf16.mxu1 %v2816_v29 }
  0x70   : > { %2715 = vmatpush3.bf16.msra.mxu1 %v2816_v29 }
  0x71   : > { %2735 = vmatpush3.bf16.msra.mxu0 %v2818_v30 }
  0x73   : > { %2681 = vmatmul.mubr.msk.bf16.gmra.mrb[44].mxu1 %vm401_vm1, %v1269_v31 }
  0x74   : > { %2701 = vmatmul.mubr.msk.bf16.gmra.mrb[44].mxu0 %vm401_vm1, %v2814_v45  ;;  %2684 = vmatprep.mubr.msk.bf16.mxu1 %vm401_vm1, %v1271_v11 }
  0x75   : > { %2704 = vmatprep.mubr.msk.bf16.mxu0 %vm401_vm1, %v2815_v52 }
  0x7b   : > { %2685 = vmatmul.mubr.msk.bf16.gmra.mrb[48].mxu1 %vm401_vm1, %v3101_v10 }
  0x7c   : > { %2705 = vmatmul.mubr.msk.bf16.gmra.mrb[48].mxu0 %vm401_vm1, %v2817_v59  ;;  %2688 = vmatprep.mubr.msk.bf16.mxu1 %vm401_vm1, %v3104_v6 }
  0x7d   : > { %2708 = vmatprep.mubr.msk.bf16.mxu0 %vm401_vm1, %v2819_v24 }
  0x83   : > { %2689 = vmatmul.mubr.msk.bf16.gmra.mrb[52].mxu1 %vm401_vm1, %v3115_v15 }
  0x84   : > { %2709 = vmatmul.mubr.msk.bf16.gmra.mrb[52].mxu0 %vm401_vm1, %v2820_v25  ;;  %2716 = vmatprep.mubr.msk.bf16.mxu1 %vm401_vm1, %v3165_v7 }
  0x85   : > { %2736 = vmatprep.mubr.msk.bf16.mxu0 %vm401_vm1, %v3150_v62 }
  0x8b   : > { %2717 = vmatmul.mubr.msk.bf16.vlgmr.msra.gmra.mrb[56].mxu1 %vm401_vm1, %v3168_v26 }
  0x8c   : > { %2737 = vmatmul.mubr.msk.bf16.vlgmr.msra.gmra.mrb[56].mxu0 %vm401_vm1, %v3153_v3  ;;  %2720 = vmatprep.mubr.msk.bf16.mxu1 %vm401_vm1, %v3176_v20 }
  0x8d   : > { %2740 = vmatprep.mubr.msk.bf16.mxu0 %vm401_vm1, %v3171_v42 }
  0x93   : > { %2721 = vmatmul.mubr.msk.bf16.gmra.mrb[60].mxu1 %vm401_vm1, %v3188_v40 }
  0x94   : > { %2741 = vmatmul.mubr.msk.bf16.gmra.mrb[60].mxu0 %vm401_vm1, %v3179_v28  ;;  %2724 = vmatprep.mubr.msk.bf16.mxu1 %vm401_vm1, %v3200_v57 }
  0x95   : > { %2744 = vmatprep.mubr.msk.bf16.mxu0 %vm401_vm1, %v3191_v48 }
  0x9b   : > { %2725 = vmatmul.mubr.msk.bf16.gmra.mrb[64].mxu1 %vm401_vm1, %v3210_v61 }
  0x9c   : > { %2745 = vmatmul.mubr.msk.bf16.gmra.mrb[64].mxu0 %vm401_vm1, %v3196_v51  ;;  %2728 = vmatprep.mubr.msk.bf16.mxu1 %vm401_vm1, %v3213_v36 }
  0x9d   : > { %2748 = vmatprep.mubr.msk.bf16.mxu0 %vm401_vm1, %v3205_v4 }
  0xa3   : > { %2729 = vmatmul.mubr.msk.bf16.gmra.mrb[68].mxu1 %vm401_vm1, %v3221_v9 }
  0xa4   : > { %2749 = vmatmul.mubr.msk.bf16.gmra.mrb[68].mxu0 %vm401_vm1, %v3217_v37 }
  0xee   : > { %v2586_v6 = vpop.f32.mrb[0].mxu1 }
  0xef   : > { %v2578_v2 = vpop.f32.mrb[0].mxu0  ;;  %v488_v62 = vpop.f32.mrb[1].mxu1 }
  0xf0   : > { %v460_v10 = vpop.f32.mrb[1].mxu0  ;;  %v2587_v7 = vpop.f32.mrb[2].mxu1 }
  0xf1   : > { %v2579_v15 = vpop.f32.mrb[2].mxu0  ;;  %v491_v26 = vpop.f32.mrb[3].mxu1 }
  0xf2   : > { %v463_v3 = vpop.f32.mrb[3].mxu0 }
  0xf6   : > { %v2590_v21 = vpop.f32.mrb[4].mxu1 }
  0xf7   : > { %v2582_v42 = vpop.f32.mrb[4].mxu0  ;;  %v502_v32 = vpop.f32.mrb[5].mxu1 }
  0xf8   : > { %v474_v20 = vpop.f32.mrb[5].mxu0  ;;  %v2591_v14 = vpop.f32.mrb[6].mxu1 }
  0xf9   : > { %v2583_v28 = vpop.f32.mrb[6].mxu0  ;;  %v505_v34 = vpop.f32.mrb[7].mxu1 }
  0xfa   : > { %v477_v33 = vpop.f32.mrb[7].mxu0 }
  0xfe   : > { %v2598_v40 = vpop.f32.mrb[8].mxu1 }
  0xff   : > { %v2618_v38 = vpop.f32.mrb[8].mxu0  ;;  %v585_v43 = vadd.f32 %v2598_v40, %v2578_v2  ;;  %v577_v44 = vpop.f32.mrb[9].mxu1 }
 0x100   : > { %v729_v39 = vpop.f32.mrb[9].mxu0  ;;  %v578_v35 = vadd.f32 %v577_v44, %v460_v10  ;;  %v2599_v48 = vpop.f32.mrb[10].mxu1 }
 0x101   : > { %v2619_v41 = vpop.f32.mrb[10].mxu0  ;;  %v785_v49 = vadd.f32 %v2618_v38, %v585_v43  ;;  %v580_v50 = vpop.f32.mrb[11].mxu1 }
 0x102   : > { %v732_v22 = vpop.f32.mrb[11].mxu0  ;;  %v784_v51 = vadd.f32 %v729_v39, %v578_v35 }
 0x106   : > { %v2602_v55 = vpop.f32.mrb[12].mxu1 }
 0x107   : > { %v2622_v53 = vpop.f32.mrb[12].mxu0  ;;  %v599_v57 = vadd.f32 %v2602_v55, %v2582_v42  ;;  %v591_v47 = vpop.f32.mrb[13].mxu1 }
 0x108   : > { %v743_v54 = vpop.f32.mrb[13].mxu0  ;;  %v592_v60 = vadd.f32 %v591_v47, %v474_v20  ;;  %v2603_v63 = vpop.f32.mrb[14].mxu1 }
 0x109   : > { %v2623_v56 = vpop.f32.mrb[14].mxu0  ;;  %v787_v4 = vadd.f32 %v2622_v53, %v599_v57  ;;  %v594_v5 = vpop.f32.mrb[15].mxu1 }
 0x10a   : > { %v746_v58 = vpop.f32.mrb[15].mxu0  ;;  %v786_v61 = vadd.f32 %v743_v54, %v592_v60 }
 0x10e   : > { %v2606_v37 = vpop.f32.mrb[16].mxu1 }
 0x10f   : > { %v2626_v36 = vpop.f32.mrb[16].mxu0  ;;  %v613_v27 = vadd.f32 %v2606_v37, %v2586_v6  ;;  %v605_v16 = vpop.f32.mrb[17].mxu1 }
 0x110   : > { %v757_v8 = vpop.f32.mrb[17].mxu0  ;;  %v606_v23 = vadd.f32 %v605_v16, %v488_v62  ;;  %v2607_v46 = vpop.f32.mrb[18].mxu1 }
 0x111   : > { %v2627_v9 = vpop.f32.mrb[18].mxu0  ;;  %v789_v12 = vadd.f32 %v2626_v36, %v613_v27  ;;  %v608_v18 = vpop.f32.mrb[19].mxu1 }
 0x112   : > { %v760_v13 = vpop.f32.mrb[19].mxu0  ;;  %v788_v19 = vadd.f32 %v757_v8, %v606_v23 }
 0x116   : > { %v2610_v1 = vpop.f32.mrb[20].mxu1 }
 0x117   : > { %v2630_v30 = vpop.f32.mrb[20].mxu0  ;;  %v627_v17 = vadd.f32 %v2610_v1, %v2590_v21  ;;  %v619_v45 = vpop.f32.mrb[21].mxu1 }
 0x118   : > { %v771_v0 = vpop.f32.mrb[21].mxu0  ;;  %v620_v31 = vadd.f32 %v619_v45, %v502_v32  ;;  %v2611_v11 = vpop.f32.mrb[22].mxu1 }
 0x119   : > { %v2631_v29 = vpop.f32.mrb[22].mxu0  ;;  %v791_v59 = vadd.f32 %v2630_v30, %v627_v17  ;;  %v622_v24 = vpop.f32.mrb[23].mxu1 }
 0x11a   : > { %v774_v52 = vpop.f32.mrb[23].mxu0  ;;  %v790_v25 = vadd.f32 %v771_v0, %v620_v31 }
 0x11e   : > { %v2638_v6 = vpop.f32.mrb[24].mxu1 }
 0x11f   : > { %v2658_v2 = vpop.f32.mrb[24].mxu0  ;;  %v979_v62 = vadd.f32 %v2638_v6, %v785_v49  ;;  %v923_v3 = vpop.f32.mrb[25].mxu1 }
 0x120   : > { %v1189_v10 = vpop.f32.mrb[25].mxu0  ;;  %v978_v26 = vadd.f32 %v923_v3, %v784_v51  ;;  %v2639_v42 = vpop.f32.mrb[26].mxu1 }
 0x121   : > { %v2659_v15 = vpop.f32.mrb[26].mxu0  ;;  %v1245_v20 = vadd.f32 %v2658_v2, %v979_v62  ;;  %v926_v28 = vpop.f32.mrb[27].mxu1 }
 0x122   : > { %v1192_v7 = vpop.f32.mrb[27].mxu0  ;;  %v1244_v33 = vadd.f32 %v1189_v10, %v978_v26 }
 0x126   : > { %v2642_v34 = vpop.f32.mrb[28].mxu1 }
 0x127   : > { %v2662_v21 = vpop.f32.mrb[28].mxu0  ;;  %v981_v38 = vadd.f32 %v2642_v34, %v787_v4  ;;  %v937_v39 = vpop.f32.mrb[29].mxu1 }
 0x128   : > { %v1203_v14 = vpop.f32.mrb[29].mxu0  ;;  %v980_v41 = vadd.f32 %v937_v39, %v786_v61  ;;  %v2643_v43 = vpop.f32.mrb[30].mxu1 }
 0x129   : > { %v2663_v32 = vpop.f32.mrb[30].mxu0  ;;  %v1247_v44 = vadd.f32 %v2662_v21, %v981_v38  ;;  %v940_v22 = vpop.f32.mrb[31].mxu1 }
 0x12a   : > { %v1206_v40 = vpop.f32.mrb[31].mxu0  ;;  %v1246_v35 = vadd.f32 %v1203_v14, %v980_v41 }
 0x12e   : > { %v2646_v50 = vpop.f32.mrb[32].mxu1 }
 0x12f   : > { %v2666_v48 = vpop.f32.mrb[32].mxu0  ;;  %v983_v53 = vadd.f32 %v2646_v50, %v789_v12  ;;  %v951_v54 = vpop.f32.mrb[33].mxu1 }
 0x130   : > { %v1217_v49 = vpop.f32.mrb[33].mxu0  ;;  %v982_v56 = vadd.f32 %v951_v54, %v788_v19  ;;  %v2647_v57 = vpop.f32.mrb[34].mxu1 }
 0x131   : > { %v2667_v51 = vpop.f32.mrb[34].mxu0  ;;  %v1249_v47 = vadd.f32 %v2666_v48, %v983_v53  ;;  %v954_v58 = vpop.f32.mrb[35].mxu1 }
 0x132   : > { %v1220_v55 = vpop.f32.mrb[35].mxu0  ;;  %v1248_v60 = vadd.f32 %v1217_v49, %v982_v56 }
 0x136   : > { %v2650_v5 = vpop.f32.mrb[36].mxu1 }
 0x137   : > { %v2670_v63 = vpop.f32.mrb[36].mxu0  ;;  %v985_v36 = vadd.f32 %v2650_v5, %v791_v59  ;;  %v965_v8 = vpop.f32.mrb[37].mxu1 }
 0x138   : > { %v1231_v4 = vpop.f32.mrb[37].mxu0  ;;  %v984_v9 = vadd.f32 %v965_v8, %v790_v25  ;;  %v2651_v27 = vpop.f32.mrb[38].mxu1 }
 0x139   : > { %v2671_v61 = vpop.f32.mrb[38].mxu0  ;;  %v1251_v16 = vadd.f32 %v2670_v63, %v985_v36  ;;  %v968_v13 = vpop.f32.mrb[39].mxu1 }
 0x13a   : > { %v1234_v37 = vpop.f32.mrb[39].mxu0  ;;  %v1250_v23 = vadd.f32 %v1231_v4, %v984_v9  ;;  %v3324_v61 = vld [vmem:[%s3418_s2] ss:$0 sm:$0xff] }
 0x13e   : > { %v2678_v18 = vpop.f32.mrb[40].mxu1 }
 0x13f   : > { %v2698_v46 = vpop.f32.mrb[40].mxu0  ;;  %v1404_v30 = vadd.f32 %v2678_v18, %v1245_v20  ;;  %v1348_v0 = vpop.f32.mrb[41].mxu1 }
 0x140   : > { %v1542_v12 = vpop.f32.mrb[41].mxu0  ;;  %v1403_v29 = vadd.f32 %v1348_v0, %v1244_v33  ;;  %v2679_v17 = vpop.f32.mrb[42].mxu1 }
 0x141   : > { %v2699_v19 = vpop.f32.mrb[42].mxu0  ;;  %v1598_v45 = vadd.f32 %v2698_v46, %v1404_v30  ;;  %v1351_v52 = vpop.f32.mrb[43].mxu1 }
 0x142   : > { %v1545_v1 = vpop.f32.mrb[43].mxu0  ;;  %v1597_v31 = vadd.f32 %v1542_v12, %v1403_v29 }
 0x146   : > { %v2682_v24 = vpop.f32.mrb[44].mxu1 }
 0x147   : > { %v2702_v11 = vpop.f32.mrb[44].mxu0  ;;  %v1406_v2 = vadd.f32 %v2682_v24, %v1247_v44  ;;  %v1362_v10 = vpop.f32.mrb[45].mxu1 }
 0x148   : > { %v1556_v59 = vpop.f32.mrb[45].mxu0  ;;  %v1405_v15 = vadd.f32 %v1362_v10, %v1246_v35  ;;  %v2683_v62 = vpop.f32.mrb[46].mxu1 }
 0x149   : > { %v2703_v25 = vpop.f32.mrb[46].mxu0  ;;  %v1600_v3 = vadd.f32 %v2702_v11, %v1406_v2  ;;  %v1365_v7 = vpop.f32.mrb[47].mxu1 }
 0x14a   : > { %v1559_v6 = vpop.f32.mrb[47].mxu0  ;;  %v1599_v26 = vadd.f32 %v1556_v59, %v1405_v15 }
 0x14e   : > { %v2686_v28 = vpop.f32.mrb[48].mxu1 }
 0x14f   : > { %v2706_v42 = vpop.f32.mrb[48].mxu0  ;;  %v1408_v21 = vadd.f32 %v2686_v28, %v1249_v47  ;;  %v1376_v14 = vpop.f32.mrb[49].mxu1 }
 0x150   : > { %v1570_v20 = vpop.f32.mrb[49].mxu0  ;;  %v1407_v32 = vadd.f32 %v1376_v14, %v1248_v60  ;;  %v2687_v38 = vpop.f32.mrb[50].mxu1 }
 0x151   : > { %v2707_v33 = vpop.f32.mrb[50].mxu0  ;;  %v3313_v39 = vadd.f32 %v2706_v42, %v1408_v21  ;;  %v1379_v40 = vpop.f32.mrb[51].mxu1 }
 0x152   : > { %v1573_v34 = vpop.f32.mrb[51].mxu0  ;;  %v3315_v41 = vadd.f32 %v1570_v20, %v1407_v32 }
 0x156   : > { %v2690_v22 = vpop.f32.mrb[52].mxu1 }
 0x157   : > { %v2710_v43 = vpop.f32.mrb[52].mxu0  ;;  %v1410_v48 = vadd.f32 %v2690_v22, %v1251_v16  ;;  %v1390_v49 = vpop.f32.mrb[53].mxu1 }
 0x158   : > { %v1584_v44 = vpop.f32.mrb[53].mxu0  ;;  %v1409_v51 = vadd.f32 %v1390_v49, %v1250_v23  ;;  %v2691_v53 = vpop.f32.mrb[54].mxu1 }
 0x159   : > { %v2711_v35 = vpop.f32.mrb[54].mxu0  ;;  %v3317_v54 = vadd.f32 %v2710_v43, %v1410_v48  ;;  %v1393_v55 = vpop.f32.mrb[55].mxu1 }
 0x15a   : > { %v1587_v50 = vpop.f32.mrb[55].mxu0  ;;  %v3319_v56 = vadd.f32 %v1584_v44, %v1409_v51 }
 0x15e   : > { %v2718_v58 = vpop.f32.mrb[56].mxu1 }
 0x15f   : > { %v2738_v57 = vpop.f32.mrb[56].mxu0  ;;  %v1864_v63 = vadd.f32 %v2718_v58, %v1598_v45  ;;  %v1808_v4 = vpop.f32.mrb[57].mxu1 }
 0x160   : > { %v1967_v47 = vpop.f32.mrb[57].mxu0  ;;  %v1863_v36 = vadd.f32 %v1808_v4, %v1597_v31  ;;  %v2719_v8 = vpop.f32.mrb[58].mxu1 }
 0x161   : > { %v2739_v60 = vpop.f32.mrb[58].mxu0  ;;  %v2023_v37 = vadd.f32 %v2738_v57, %v1864_v63  ;;  %v1811_v9 = vpop.f32.mrb[59].mxu1 }
 0x162   : > { %v1970_v5 = vpop.f32.mrb[59].mxu0  ;;  %v2022_v27 = vadd.f32 %v1967_v47, %v1863_v36 }
 0x163   : > { %v2038_v16 = vadd.f32 %v3324_v61, %v2023_v37 }
 0x164   : > { %v2037_v13 = vadd.f32 %v3324_v61, %v2022_v27 }
 0x165   : > { %v2046_v46 = vmax.f32 %v2038_v16, 0.0 }
 0x166   : > { %v2045_v18 = vmax.f32 %v2037_v13, 0.0  ;;  %v2722_v19 = vpop.f32.mrb[60].mxu1 }
 0x167   : > { %v2742_v23 = vpop.f32.mrb[60].mxu0  ;;  %v2054_v0 = vpack.c.bf16 %v2046_v46, %v2046_v46  ;;  %v1866_v1 = vadd.f32 %v2722_v19, %v1600_v3  ;;  %v1822_v29 = vpop.f32.mrb[61].mxu1 }
 0x168   : > { %v1981_v12 = vpop.f32.mrb[61].mxu0  ;;  %v2053_v45 = vpack.c.bf16 %v2045_v18, %v2045_v18  ;;  %v1865_v52 = vadd.f32 %v1822_v29, %v1599_v26  ;;  %v2723_v31 = vpop.f32.mrb[62].mxu1 }
 0x169   : > { %v2743_v30 = vpop.f32.mrb[62].mxu0  ;;  %2063 = vst.msk [vmem:[%s3335_s17 + $0x4] sm:$0xf] %vm2061_vm3, %v2054_v0  ;;  %v2025_v11 = vadd.f32 %v2742_v23, %v1866_v1  ;;  %v1825_v59 = vpop.f32.mrb[63].mxu1  ;;  %2129 = vrot.lane.b32.xlu1 %v2054_v0, %s2839_s19  ;;  %2096 = vrot.lane.b32.xlu0 %v2054_v0, %s2840_s20 }
 0x16a   : > { %v1984_v17 = vpop.f32.mrb[63].mxu0  ;;  %2062 = vst.msk [vmem:[%s3335_s17] sm:$0xf] %vm2061_vm3, %v2053_v45  ;;  %v2024_v24 = vadd.f32 %v1981_v12, %v1865_v52 }
 0x16b   : > { %v2040_v25 = vadd.f32 %v3324_v61, %v2025_v11 }
 0x16c   : > { %v2039_v2 = vadd.f32 %v3324_v61, %v2024_v24 }
 0x16d   : > { %v2048_v6 = vmax.f32 %v2040_v25, 0.0  ;;  %2094 = vrot.lane.b32.xlu0 %v2053_v45, %s2840_s20 }
 0x16e   : > { %v2047_v62 = vmax.f32 %v2039_v2, 0.0  ;;  %v2726_v3 = vpop.f32.mrb[64].mxu1 }
 0x16f   : > { %v2746_v10 = vpop.f32.mrb[64].mxu0  ;;  %v2056_v26 = vpack.c.bf16 %v2048_v6, %v2048_v6  ;;  %v1868_v42 = vadd.f32 %v2726_v3, %v3313_v39  ;;  %v1836_v20 = vpop.f32.mrb[65].mxu1 }
 0x170   : > { %v1995_v15 = vpop.f32.mrb[65].mxu0  ;;  %v2055_v33 = vpack.c.bf16 %v2047_v62, %v2047_v62  ;;  %v1867_v21 = vadd.f32 %v1836_v20, %v3315_v41  ;;  %v2727_v14 = vpop.f32.mrb[66].mxu1 }
 0x171   : > { %v2747_v7 = vpop.f32.mrb[66].mxu0  ;;  %2065 = vst.msk [vmem:[%s3335_s17 + $0xc] sm:$0xf] %vm2061_vm3, %v2056_v26  ;;  %v2027_v34 = vadd.f32 %v2746_v10, %v1868_v42  ;;  %v1839_v32 = vpop.f32.mrb[67].mxu1  ;;  %2127 = vrot.lane.b32.xlu0 %v2053_v45, %s2839_s19  ;;  %2100 = vrot.lane.b32.xlu1 %v2056_v26, %s2840_s20 }
 0x172   : > { %v1998_v28 = vpop.f32.mrb[67].mxu0  ;;  %2064 = vst.msk [vmem:[%s3335_s17 + $0x8] sm:$0xf] %vm2061_vm3, %v2055_v33  ;;  %v2026_v38 = vadd.f32 %v1995_v15, %v1867_v21 }
 0x173   : > { %v2042_v40 = vadd.f32 %v3324_v61, %v2027_v34 }
 0x174   : > { %v2041_v39 = vadd.f32 %v3324_v61, %v2026_v38 }
 0x175   : > { %v2050_v44 = vmax.f32 %v2042_v40, 0.0  ;;  %2133 = vrot.lane.b32.xlu1 %v2056_v26, %s2839_s19  ;;  %2131 = vrot.lane.b32.xlu0 %v2055_v33, %s2839_s19 }
 0x176   : > { %v2049_v22 = vmax.f32 %v2041_v39, 0.0  ;;  %v2730_v35 = vpop.f32.mrb[68].mxu1 }
 0x177   : > { %v2750_v43 = vpop.f32.mrb[68].mxu0  ;;  %v2058_v49 = vpack.c.bf16 %v2050_v44, %v2050_v44  ;;  %v1870_v50 = vadd.f32 %v2730_v35, %v3317_v54  ;;  %v1850_v51 = vpop.f32.mrb[69].mxu1 }
 0x178   : > { %v2009_v41 = vpop.f32.mrb[69].mxu0  ;;  %v2057_v55 = vpack.c.bf16 %v2049_v22, %v2049_v22  ;;  %v1869_v57 = vadd.f32 %v1850_v51, %v3319_v56  ;;  %v2731_v47 = vpop.f32.mrb[70].mxu1 }
 0x179   : > { %v2751_v48 = vpop.f32.mrb[70].mxu0  ;;  %2067 = vst.msk [vmem:[%s3335_s17 + $0x14] sm:$0xf] %vm2061_vm3, %v2058_v49  ;;  %v2029_v58 = vadd.f32 %v2750_v43, %v1870_v50  ;;  %v1853_v60 = vpop.f32.mrb[71].mxu1  ;;  %2098 = vrot.lane.b32.xlu1 %v2055_v33, %s2840_s20 }
 0x17a   : > { %v2012_v53 = vpop.f32.mrb[71].mxu0  ;;  %2066 = vst.msk [vmem:[%s3335_s17 + $0x10] sm:$0xf] %vm2061_vm3, %v2057_v55  ;;  %v2028_v63 = vadd.f32 %v2009_v41, %v1869_v57  ;;  %2102 = vrot.lane.b32.xlu0 %v2057_v55, %s2840_s20 }
 0x17b   : > { %v2044_v54 = vadd.f32 %v3324_v61, %v2029_v58 }
 0x17c   : > { %v2043_v4 = vadd.f32 %v3324_v61, %v2028_v63 }
 0x17d   : > { %v2052_v56 = vmax.f32 %v2044_v54, 0.0  ;;  %2104 = vrot.lane.b32.xlu1 %v2058_v49, %s2840_s20 }
 0x17e   : > { %v2051_v5 = vmax.f32 %v2043_v4, 0.0  ;;  %2135 = vrot.lane.b32.xlu0 %v2057_v55, %s2839_s19 }
 0x17f   : > { %v2060_v36 = vpack.c.bf16 %v2052_v56, %v2052_v56 }
 0x180   : > { %v2059_v8 = vpack.c.bf16 %v2051_v5, %v2051_v5 }
 0x181   : > { %2069 = vst.msk [vmem:[%s3335_s17 + $0x1c] sm:$0xf] %vm2061_vm3, %v2060_v36  ;;  %2137 = vrot.lane.b32.xlu1 %v2058_v49, %s2839_s19 }
 0x182   : > { %2068 = vst.msk [vmem:[%s3335_s17 + $0x18] sm:$0xf] %vm2061_vm3, %v2059_v8  ;;  %2106 = vrot.lane.b32.xlu0 %v2059_v8, %s2840_s20 }
 0x185   : > { %2108 = vrot.lane.b32.xlu1 %v2060_v36, %s2840_s20 }
 0x186   : > { %2139 = vrot.lane.b32.xlu0 %v2059_v8, %s2839_s19 }
 0x189   : > { %2141 = vrot.lane.b32.xlu1 %v2060_v36, %s2839_s19 }
 0x1db   : > { %v2130_v61 = vpop.permute.xlu1 %2129  ;;  %v2097_v37 = vpop.permute.xlu0 %2096 }
 0x1dc   : > { %2152 = vst.msk [vmem:[%s3383_s23 + $0x4] sm:$0xf] %vm2118_vm4, %v2130_v61  ;;  %2120 = vst.msk [vmem:[%s244_s26 + $0x4] sm:$0xf] %vm2118_vm4, %v2097_v37 }
 0x1df   : > { %v2095_v9 = vpop.permute.xlu0 %2094 }
 0x1e0   : > { %2119 = vst.msk [vmem:[%s244_s26] sm:$0xf] %vm2118_vm4, %v2095_v9 }
 0x1e3   : > { %v2128_v27 = vpop.permute.xlu0 %2127  ;;  %v2101_v16 = vpop.permute.xlu1 %2100 }
 0x1e4   : > { %2151 = vst.msk [vmem:[%s3383_s23] sm:$0xf] %vm2118_vm4, %v2128_v27  ;;  %2122 = vst.msk [vmem:[%s244_s26 + $0xc] sm:$0xf] %vm2118_vm4, %v2101_v16 }
 0x1e7   : > { %v2134_v13 = vpop.permute.xlu1 %2133  ;;  %v2132_v23 = vpop.permute.xlu0 %2131 }
 0x1e8   : > { %2154 = vst.msk [vmem:[%s3383_s23 + $0xc] sm:$0xf] %vm2118_vm4, %v2134_v13  ;;  %2153 = vst.msk [vmem:[%s3383_s23 + $0x8] sm:$0xf] %vm2118_vm4, %v2132_v23 }
 0x1eb   : > { %v2099_v46 = vpop.permute.xlu1 %2098 }
 0x1ec   : > { %2121 = vst.msk [vmem:[%s244_s26 + $0x8] sm:$0xf] %vm2118_vm4, %v2099_v46  ;;  %v2103_v12 = vpop.permute.xlu0 %2102 }
 0x1ed   : > { %2123 = vst.msk [vmem:[%s244_s26 + $0x10] sm:$0xf] %vm2118_vm4, %v2103_v12 }
 0x1ef   : > { %v2105_v18 = vpop.permute.xlu1 %2104 }
 0x1f0   : > { %2124 = vst.msk [vmem:[%s244_s26 + $0x14] sm:$0xf] %vm2118_vm4, %v2105_v18  ;;  %v2136_v19 = vpop.permute.xlu0 %2135 }
 0x1f1   : > { %2155 = vst.msk [vmem:[%s3383_s23 + $0x10] sm:$0xf] %vm2118_vm4, %v2136_v19 }
 0x1f3   : > { %v2138_v30 = vpop.permute.xlu1 %2137 }
 0x1f4   : > { %2156 = vst.msk [vmem:[%s3383_s23 + $0x14] sm:$0xf] %vm2118_vm4, %v2138_v30  ;;  %v2107_v0 = vpop.permute.xlu0 %2106 }
 0x1f5   : > { %2125 = vst.msk [vmem:[%s244_s26 + $0x18] sm:$0xf] %vm2118_vm4, %v2107_v0 }
 0x1f7   : > { %v2109_v1 = vpop.permute.xlu1 %2108 }
 0x1f8   : > { %2126 = vst.msk [vmem:[%s244_s26 + $0x1c] sm:$0xf] %vm2118_vm4, %v2109_v1  ;;  %v2140_v29 = vpop.permute.xlu0 %2139 }
 0x1f9   : > { %2157 = vst.msk [vmem:[%s3383_s23 + $0x18] sm:$0xf] %vm2118_vm4, %v2140_v29 }
 0x1fb   : > { %v2142_v17 = vpop.permute.xlu1 %2141 }
 0x1fc   : > { %2158 = vst.msk [vmem:[%s3383_s23 + $0x1c] sm:$0xf] %vm2118_vm4, %v2142_v17 }
 0x1fd PF: > { %s16_s18 = sadd.s32 1, %s2837_s18  }
 0x1fe   : > { %p13_p4 = scmp.ge.s32.totalorder %s16_s18, 4  }
 0x200   :  { %15 = sbr.rel (!%p13_p4) target bundleno = 1 (0x1), region = 94 }

// kernel: glam_forward.4
= control target key start
LH: loop header
LB: loop body
LE: loop exit
PB: predicated region body
PF: predicated region fallthrough
CT: control target
= control target key end

     0   :  { %s3243_s30 = smov 0   ;;  %s3245_s10 = smov 0   ;;  %s3870_s0 = inlined_call_operand.vmem [shape: bf16[2,2,4,16,8], index: 0, kind: input, shape index: {}]   ;;  %s3871_s1 = inlined_call_operand.vmem [shape: bf16[2,2,4,16,8], index: 1, kind: input, shape index: {}]   ;;  %s3872_s2 = inlined_call_operand.vmem [shape: bf16[2,2,4,16,32], index: 2, kind: input, shape index: {}]   ;;  %s3873_s3 = inlined_call_operand.vmem [shape: bf16[2,2,4,16,32], index: 3, kind: input, shape index: {}]   ;;  %s3874_s4 = inlined_call_operand.vmem [shape: bf16[32,16], index: 4, kind: input, shape index: {}]   ;;  %s3875_s5 = inlined_call_operand.vmem [shape: f32[1,16], index: 5, kind: input, shape index: {}]   ;;  %s3876_s6 = inlined_call_operand.vmem [shape: bf16[16,16], index: 6, kind: input, shape index: {}]   ;;  %s3877_s7 = inlined_call_operand.vmem [shape: f32[1,16], index: 7, kind: input, shape index: {}]   ;;  %s3878_s8 = inlined_call_operand.vmem [shape: bf16[2,2,4,16,32], index: 8, kind: output, shape index: {0}]   ;;  %s3879_s9 = inlined_call_operand.vmem [shape: f32[2,2,4,16], index: 9, kind: output, shape index: {1}]  }
   0x1   :  { %s3247_s11 = smov 0   ;;  %s3249_s12 = smov 0  }
   0x2   :  { %s3251_s13 = smov 0  }
   0x3 LB: > { %s29_s14 = sadd.s32 1, %s3181_s11  ;;  %s32_s15 = sadd.s32 1, %s3185_s12  ;;  %s3189_s13 = sphi %s3251_s13, %s20_s13   ;;  %s3185_s12 = sphi %s3249_s12, %s3887_s12   ;;  %s3181_s11 = sphi %s3247_s11, %s3886_s11   ;;  %s3177_s10 = sphi %s3245_s10, %s3885_s10   ;;  %s3173_s30 = sphi %s3243_s30, %s3884_s30  }
   0x4   : > { %p30_p0 = scmp.ge.s32.totalorder %s29_s14, 2  ;;  %p2679_p1 = scmp.ge.s32.totalorder %s3189_s13, 1 }
   0x5   : > { %p360_p2 = scmp.lt.s32.totalorder %s3189_s13, 5 }
   0x6   : > { %s3889_s14 = smov (%p30_p0, %s29_s14), 0  ;;  %s3891_s15 = smov (!%p30_p0, %s32_s15), %s3185_s12 }
   0x7   : > { %p361_p3 = pnand %p2679_p1, %p360_p2  ;;  %p34_p4 = scmp.ge.s32.totalorder %s3891_s15, 2 }
   0x8   : > { %v3068_v0 = vld [vmem:[%s3874_s4] sm:$0xff] (!%p361_p3)   ;;  %p439_p5 = scmp.lt.s32.totalorder (!%p361_p3), %s3177_s10, 1  ;;  %v3069_v1 = vld [vmem:[%s3874_s4 + $0x8] sm:$0xff] (!%p361_p3)   ;;  %p441_p6 = scmp.lt.s32.totalorder (!%p361_p3), %s3173_s30, 1  ;;  %vm568_vm0 = vcmask (!%p361_p3), 261120   ;;  %v3880_v2 = vmov (!%p361_p3), 0.0  }
   0x9   : > { %s3893_s15 = smov (%p34_p4, %s3891_s15), 0  ;;  %364 = sbr.rel (%p361_p3) target bundleno = 946 (0x3b2), region = 52 }
   0xa   : > { %2827 = vmatprep.subr.bf16.mxu0 (!%p361_p3), %v3068_v0  ;;  %vm761_vm1 = vcmask (!%p361_p3), 64512   ;;  %vm3192_vm2 = vmmov (!%p361_p3), 0   ;;  %v3080_v15 = vld [vmem:[%s3876_s6] sm:$0xff] (!%p361_p3)   ;;  %vm673_vm3 = vcmask (!%p361_p3), 130048   ;;  %vm2461_vm4 = vcmask (!%p361_p3), 1041409  }
   0xb   : > { %2828 = vmatpush3.bf16.msra.mxu0 (!%p361_p3), %v3068_v0  ;;  %2839 = vmatprep.subr.bf16.mxu1 (!%p361_p3), %v3080_v15  ;;  %v2697_v16 = vld [vmem:[%s3875_s5] ss:$0 sm:$0xff] (!%p361_p3)  ;;  %vm2463_vm5 = vcmask (!%p361_p3), 1042434   ;;  %vm2465_vm6 = vcmask (!%p361_p3), 1043459   ;;  %vm2468_vm7 = vcmask (!%p361_p3), 125952   ;;  %vm2448_vm8 = vcmask (!%p361_p3), 257024  }
   0xc   : > { %2829 = vmatprep.subr.bf16.mxu0 (!%p361_p3), %v3069_v1  ;;  %2840 = vmatpush3.bf16.msra.mxu1 (!%p361_p3), %v3080_v15 }
   0xd   : > { %2849 = vmatprep.subr.bf16.mxu1 (!%p361_p3), %v3880_v2 }
   0xf   : > { %2830 = vmatpush3.bf16.msra.mxu0 (!%p361_p3), %v3069_v1 }
  0x10   : > { %s3895_s10 = smov (!%p439_p5, %s3177_s10), 1  ;;  %s3897_s30 = smov (!%p441_p6, %s3173_s30), 1  ;;  %2855 = vmatprep.subr.bf16.mxu0 %v3880_v2 }
  0x11   : > { %s2681_s20 = sshll.u32 %s3895_s10, 4  ;;  %s2695_s21 = sshll.u32 %s3895_s10, 1 }
  0x12   : > { %s2680_s22 = sshll.u32 %s3897_s30, 3  ;;  %s3279_s23 = sadd.s32 %s2695_s21, %s3897_s30 }
  0x13   : > { %s445_s24 = sadd.s32 %s2681_s20, %s2680_s22  ;;  %s2696_s30 = sshll.u32 %s3279_s23, 2 }
  0x14   : > { %s3281_s25 = sshll.u32 %s445_s24, 2  ;;  %s491_s17 = scalar_lea.vmem %s3879_s9, %s2696_s30 }
  0x15   : > { %s474_s28 = scalar_lea.vmem %s3873_s3, %s3281_s25  ;;  %s3292_s10 = scalar_lea.vmem %s3870_s0, %s3281_s25 }
  0x16   : > { %v3070_v3 = vld [vmem:[%s474_s28] sm:$0xff]   ;;  %v3071_v4 = vld [vmem:[%s474_s28 + $0x8] sm:$0xff]   ;;  %v3072_v5 = vld [vmem:[%s474_s28 + $0x10] sm:$0xff]   ;;  %s456_s18 = scalar_lea.vmem %s3871_s1, %s3281_s25  ;;  %s3479_s29 = scalar_lea.vmem %s3872_s2, %s3281_s25 }
  0x17   : > { %2831 = vmatprep.mubr.msk.bf16.mxu0 %vm568_vm0, %v3070_v3  ;;  %v3074_v6 = vld [vmem:[%s3292_s10 + $0x8] sm:$0xff]   ;;  %v3073_v8 = vld [vmem:[%s474_s28 + $0x18] sm:$0xff]   ;;  %v3323_v13 = vld [vmem:[%s456_s18] sm:$0xff]   ;;  %s3837_s19 = scalar_lea.vmem %s3878_s8, %s3281_s25 }
  0x18   : > { %2832 = vmatmul.mubr.msk.bf16.vlgmr.msra.gmra.mrb[0].mxu0 %vm568_vm0, %v3071_v4  ;;  %v823_v7 = vsel %vm761_vm1, %v3074_v6, 0  ;;  %v3076_v9 = vld [vmem:[%s3292_s10 + $0x18] sm:$0xff]   ;;  %v3308_v10 = vld [vmem:[%s456_s18 + $0x8] sm:$0xff]   ;;  %v3330_v14 = vld [vmem:[%s456_s18 + $0x10] sm:$0xff]  }
  0x19   : > { %2835 = vmatprep.mubr.msk.bf16.mxu0 %vm568_vm0, %v3072_v5  ;;  %2856 = vmatpush3.bf16.xpose.msra.mxu0 %v823_v7  ;;  %v937_v11 = vsel %vm761_vm1, %v3076_v9, 0  ;;  %v3316_v12 = vld [vmem:[%s456_s18 + $0x18] sm:$0xff]   ;;  %v3081_v27 = vld [vmem:[%s3292_s10] sm:$0xff]   ;;  %v3082_v51 = vld [vmem:[%s3292_s10 + $0x10] sm:$0xff]  }
  0x1a   : > { %2867 = vmatprep.subr.bf16.mxu0 %v3880_v2  ;;  %v766_v35 = vsel %vm761_vm1, %v3081_v27, 0  ;;  %v880_v53 = vsel %vm761_vm1, %v3082_v51, 0 }
  0x20   : > { %2836 = vmatmul.mubr.msk.bf16.gmra.mrb[4].mxu0 %vm568_vm0, %v3073_v8 }
  0x21   : > { %2857 = vmatprep.mubr.msk.bf16.mxu0 %vm3192_vm2, %v3880_v2 }
  0x28   : > { %2858 = vmatmul.mubr.msk.bf16.vlgmr.msra.gmra.mrb[8].mxu0 %vm761_vm1, %v3308_v10 }
  0x29   : > { %2868 = vmatpush3.bf16.xpose.msra.mxu0 %v937_v11  ;;  %2869 = vmatprep.mubr.msk.bf16.mxu0 %vm3192_vm2, %v3880_v2 }
  0x2a   : > { %2879 = vmatprep.subr.bf16.mxu0 %v3880_v2 }
  0x30   : > { %2870 = vmatmul.mubr.msk.bf16.vlgmr.msra.gmra.mrb[12].mxu0 %vm761_vm1, %v3316_v12 }
  0x31   : > { %2880 = vmatpush3.bf16.xpose.msra.mxu0 %v823_v7  ;;  %2881 = vmatprep.mubr.msk.bf16.mxu0 %vm3192_vm2, %v3880_v2 }
  0x32   : > { %2891 = vmatprep.subr.bf16.mxu0 %v3880_v2 }
  0x38   : > { %2882 = vmatmul.mubr.msk.bf16.vlgmr.msra.gmra.mrb[16].mxu0 %vm761_vm1, %v3323_v13 }
  0x39   : > { %2892 = vmatpush3.bf16.xpose.msra.mxu0 %v937_v11  ;;  %2893 = vmatprep.mubr.msk.bf16.mxu0 %vm3192_vm2, %v3880_v2 }
  0x3a   : > { %2903 = vmatprep.subr.bf16.mxu0 %v3880_v2 }
  0x40   : > { %2894 = vmatmul.mubr.msk.bf16.vlgmr.msra.gmra.mrb[20].mxu0 %vm761_vm1, %v3330_v14 }
  0x41   : > { %2904 = vmatpush3.bf16.xpose.msra.mxu0 %v823_v7  ;;  %2905 = vmatprep.mubr.msk.bf16.mxu0 %vm3192_vm2, %v3880_v2 }
  0x42   : > { %2915 = vmatprep.subr.bf16.mxu0 %v3880_v2 }
  0x48   : > { %2906 = vmatmul.mubr.msk.bf16.vlgmr.msra.gmra.mrb[24].mxu0 %vm761_vm1, %v3330_v14 }
  0x49   : > { %2916 = vmatpush3.bf16.xpose.msra.mxu0 %v937_v11  ;;  %2917 = vmatprep.mubr.msk.bf16.mxu0 %vm3192_vm2, %v3880_v2 }
  0x4a   : > { %2927 = vmatprep.subr.bf16.mxu0 %v3880_v2 }
  0x50   : > { %2918 = vmatmul.mubr.msk.bf16.vlgmr.msra.gmra.mrb[28].mxu0 %vm761_vm1, %v3323_v13 }
  0x51   : > { %2929 = vmatprep.mubr.msk.bf16.mxu0 %vm3192_vm2, %v3880_v2 }
  0xeb   : > { %v2833_v17 = vpop.f32.mrb[0].mxu0 }
  0xec   : > { %v624_v18 = vadd.f32 %v2833_v17, %v2697_v16  ;;  %v615_v19 = vpop.f32.mrb[1].mxu0 }
  0xed   : > { %v616_v20 = vadd.f32 %v2697_v16, %v615_v19  ;;  %v2834_v21 = vpop.f32.mrb[2].mxu0 }
  0xee   : > { %v627_v22 = vadd.f32 %v2834_v21, %v2697_v16  ;;  %v618_v23 = vpop.f32.mrb[3].mxu0  ;;  %v648_v25 = vmax.f32 %v624_v18, 0.0 }
  0xef   : > { %v619_v24 = vadd.f32 %v2697_v16, %v618_v23  ;;  %v646_v28 = vmax.f32 %v616_v20, 0.0 }
  0xf0   : > { %v649_v26 = vmax.f32 %v627_v22, 0.0 }
  0xf1   : > { %v647_v29 = vmax.f32 %v619_v24, 0.0 }
  0xf2   : > { %v655_v30 = vpack.c.bf16 %v649_v26, %v648_v25 }
  0xf3   : > { %v2837_v31 = vpop.f32.mrb[4].mxu0  ;;  %v654_v32 = vpack.c.bf16 %v647_v29, %v646_v28 }
  0xf4   : > { %v640_v33 = vadd.f32 %v2837_v31, %v2697_v16  ;;  %v631_v34 = vpop.f32.mrb[5].mxu0 }
  0xf5   : > { %v632_v36 = vadd.f32 %v2697_v16, %v631_v34  ;;  %v2838_v37 = vpop.f32.mrb[6].mxu0  ;;  %2841 = vmatprep.mubr.msk.bf16.mxu1 %vm673_vm3, %v654_v32 }
  0xf6   : > { %v643_v38 = vadd.f32 %v2838_v37, %v2697_v16  ;;  %v634_v39 = vpop.f32.mrb[7].mxu0  ;;  %2842 = vmatmul.mubr.msk.bf16.vlgmr.msra.gmra.mrb[0].mxu1 %vm673_vm3, %v655_v30  ;;  %v652_v41 = vmax.f32 %v640_v33, 0.0 }
  0xf7   : > { %v635_v40 = vadd.f32 %v2697_v16, %v634_v39  ;;  %2850 = vmatpush3.bf16.xpose.msra.mxu1 %v766_v35  ;;  %v650_v43 = vmax.f32 %v632_v36, 0.0 }
  0xf8   : > { %v653_v42 = vmax.f32 %v643_v38, 0.0  ;;  %2861 = vmatprep.subr.bf16.mxu1 %v3880_v2 }
  0xf9   : > { %v651_v44 = vmax.f32 %v635_v40, 0.0 }
  0xfa   : > { %v657_v45 = vpack.c.bf16 %v653_v42, %v652_v41 }
  0xfb   : > { %v656_v46 = vpack.c.bf16 %v651_v44, %v650_v43  ;;  %v859_v47 = vpop.f32.mrb[8].mxu0 }
  0xfc   : > { %v2859_v48 = vpop.f32.mrb[9].mxu0 }
  0xfd   : > { %2845 = vmatprep.mubr.msk.bf16.mxu1 %vm673_vm3, %v656_v46  ;;  %v862_v49 = vpop.f32.mrb[10].mxu0 }
  0xfe   : > { %2846 = vmatmul.mubr.msk.bf16.gmra.mrb[4].mxu1 %vm673_vm3, %v657_v45  ;;  %v2860_v50 = vpop.f32.mrb[11].mxu0 }
  0xff   : > { %2851 = vmatprep.mubr.msk.bf16.mxu1 %vm3192_vm2, %v3880_v2 }
 0x103   : > { %v3363_v52 = vpop.f32.mrb[12].mxu0 }
 0x104   : > { %v2871_v54 = vpop.f32.mrb[13].mxu0 }
 0x105   : > { %v3366_v55 = vpop.f32.mrb[14].mxu0 }
 0x106   : > { %2852 = vmatmul.mubr.msk.bf16.vlgmr.msra.gmra.mrb[8].mxu1 %vm761_vm1, %v3323_v13  ;;  %v2872_v56 = vpop.f32.mrb[15].mxu0 }
 0x107   : > { %2862 = vmatpush3.bf16.xpose.msra.mxu1 %v880_v53  ;;  %2863 = vmatprep.mubr.msk.bf16.mxu1 %vm3192_vm2, %v3880_v2 }
 0x108   : > { %2873 = vmatprep.subr.bf16.mxu1 %v3880_v2 }
 0x10b   : > { %v1055_v57 = vpop.f32.mrb[16].mxu0 }
 0x10c   : > { %v2883_v58 = vpop.f32.mrb[17].mxu0 }
 0x10d   : > { %v1058_v59 = vpop.f32.mrb[18].mxu0 }
 0x10e   : > { %2864 = vmatmul.mubr.msk.bf16.vlgmr.msra.gmra.mrb[12].mxu1 %vm761_vm1, %v3330_v14  ;;  %v2884_v60 = vpop.f32.mrb[19].mxu0 }
 0x10f   : > { %2874 = vmatpush3.bf16.xpose.msra.mxu1 %v766_v35  ;;  %2875 = vmatprep.mubr.msk.bf16.mxu1 %vm3192_vm2, %v3880_v2 }
 0x110   : > { %2885 = vmatprep.subr.bf16.mxu1 %v3880_v2 }
 0x113   : > { %v1137_v61 = vpop.f32.mrb[20].mxu0 }
 0x114   : > { %v2895_v62 = vpop.f32.mrb[21].mxu0 }
 0x115   : > { %v3378_v63 = vpop.f32.mrb[22].mxu0 }
 0x116   : > { %2876 = vmatmul.mubr.msk.bf16.vlgmr.msra.gmra.mrb[16].mxu1 %vm761_vm1, %v3316_v12  ;;  %v2896_v0 = vpop.f32.mrb[23].mxu0 }
 0x117   : > { %2886 = vmatpush3.bf16.xpose.msra.mxu1 %v880_v53  ;;  %2887 = vmatprep.mubr.msk.bf16.mxu1 %vm3192_vm2, %v3880_v2 }
 0x118   : > { %2897 = vmatprep.subr.bf16.mxu1 %v3880_v2 }
 0x11b   : > { %v1219_v1 = vpop.f32.mrb[24].mxu0 }
 0x11c   : > { %v2907_v3 = vpop.f32.mrb[25].mxu0 }
 0x11d   : > { %v1222_v4 = vpop.f32.mrb[26].mxu0 }
 0x11e   : > { %2888 = vmatmul.mubr.msk.bf16.vlgmr.msra.gmra.mrb[20].mxu1 %vm761_vm1, %v3308_v10  ;;  %v2908_v5 = vpop.f32.mrb[27].mxu0 }
 0x11f   : > { %2898 = vmatpush3.bf16.xpose.msra.mxu1 %v766_v35  ;;  %2899 = vmatprep.mubr.msk.bf16.mxu1 %vm3192_vm2, %v3880_v2 }
 0x120   : > { %2909 = vmatprep.subr.bf16.mxu1 %v3880_v2 }
 0x123   : > { %v1301_v6 = vpop.f32.mrb[28].mxu0 }
 0x124   : > { %v2919_v7 = vpop.f32.mrb[29].mxu0 }
 0x125   : > { %v1304_v8 = vpop.f32.mrb[30].mxu0 }
 0x126   : > { %2900 = vmatmul.mubr.msk.bf16.vlgmr.msra.gmra.mrb[24].mxu1 %vm761_vm1, %v3308_v10  ;;  %v2920_v9 = vpop.f32.mrb[31].mxu0  ;;  %v2708_v10 = vld [vmem:[%s3877_s7] ss:$0 sm:$0xff] }
 0x127   : > { %2910 = vmatpush3.bf16.xpose.msra.mxu1 %v880_v53  ;;  %2911 = vmatprep.mubr.msk.bf16.mxu1 %vm3192_vm2, %v3880_v2 }
 0x128   : > { %2921 = vmatprep.subr.bf16.mxu1 %v3880_v2 }
 0x12e   : > { %2912 = vmatmul.mubr.msk.bf16.vlgmr.msra.gmra.mrb[28].mxu1 %vm761_vm1, %v3316_v12 }
 0x12f   : > { %2923 = vmatprep.mubr.msk.bf16.mxu1 %vm3192_vm2, %v3880_v2 }
 0x1c9   : > { %v2843_v11 = vpop.f32.mrb[0].mxu1 }
 0x1ca   : > { %v3402_v13 = vadd.f32 %v2843_v11, %v2708_v10  ;;  %v720_v14 = vpop.f32.mrb[1].mxu1 }
 0x1cb   : > { %v721_v15 = vadd.f32 %v2708_v10, %v720_v14  ;;  %v2844_v16 = vpop.f32.mrb[2].mxu1 }
 0x1cc   : > { %v3405_v12 = vadd.f32 %v859_v47, %v3402_v13  ;;  %v3407_v17 = vadd.f32 %v2844_v16, %v2708_v10  ;;  %v723_v18 = vpop.f32.mrb[3].mxu1 }
 0x1cd   : > { %v3409_v19 = vadd.f32 %v1055_v57, %v721_v15  ;;  %v724_v20 = vadd.f32 %v2708_v10, %v723_v18  ;;  %v3411_v21 = vadd.f32 %v1301_v6, %v721_v15 }
 0x1ce   : > { %v3414_v22 = vadd.f32 %v862_v49, %v3407_v17  ;;  %v1317_v25 = vsel %vm673_vm3, %v3405_v12, -inf }
 0x1cf   : > { %v3416_v23 = vadd.f32 %v1058_v59, %v724_v20  ;;  %v3418_v24 = vadd.f32 %v1304_v8, %v724_v20  ;;  %v1353_v26 = vsel %vm673_vm3, %v3409_v19, -inf  ;;  %v1411_v30 = vsel %vm673_vm3, %v3411_v21, -inf }
 0x1d0   : > { %v1318_v27 = vsel %vm673_vm3, %v3414_v22, -inf }
 0x1d1   : > { %v1319_v28 = vmax.f32 %v1317_v25, %v1318_v27  ;;  %v1354_v29 = vsel %vm673_vm3, %v3416_v23, -inf  ;;  %v1412_v31 = vsel %vm673_vm3, %v3418_v24, -inf  ;;  %v2847_v32 = vpop.f32.mrb[4].mxu1 }
 0x1d2   : > { %v1355_v33 = vmax.f32 %v1353_v26, %v1354_v29  ;;  %v1413_v34 = vmax.f32 %v1411_v30, %v1412_v31  ;;  %v3432_v35 = vadd.f32 %v2847_v32, %v2708_v10  ;;  %v736_v36 = vpop.f32.mrb[5].mxu1 }
 0x1d3   : > { %v1320_v37 = vrot.slane %v1319_v28, 4  ;;  %v737_v38 = vadd.f32 %v2708_v10, %v736_v36  ;;  %v2848_v39 = vpop.f32.mrb[6].mxu1 }
 0x1d4   : > { %v1356_v40 = vrot.slane %v1355_v33, 4  ;;  %v1414_v41 = vrot.slane %v1413_v34, 4  ;;  %v3436_v42 = vadd.f32 %v3363_v52, %v3432_v35  ;;  %v3438_v43 = vadd.f32 %v2848_v39, %v2708_v10  ;;  %v739_v44 = vpop.f32.mrb[7].mxu1 }
 0x1d5   : > { %v1321_v45 = vmax.f32 %v1319_v28, %v1320_v37  ;;  %v3440_v46 = vadd.f32 %v1137_v61, %v737_v38  ;;  %v3442_v47 = vadd.f32 %v1219_v1, %v737_v38  ;;  %v740_v48 = vadd.f32 %v2708_v10, %v739_v44 }
 0x1d6   : > { %v1357_v49 = vmax.f32 %v1355_v33, %v1356_v40  ;;  %v3446_v50 = vadd.f32 %v3366_v55, %v3438_v43  ;;  %v1415_v53 = vmax.f32 %v1413_v34, %v1414_v41  ;;  %v1335_v56 = vsel %vm673_vm3, %v3436_v42, -inf }
 0x1d7   : > { %v1322_v51 = vrot.slane %v1321_v45, 2  ;;  %v3449_v54 = vadd.f32 %v3378_v63, %v740_v48  ;;  %v3455_v58 = vadd.f32 %v1222_v4, %v740_v48  ;;  %v1371_v60 = vsel %vm673_vm3, %v3440_v46, -inf }
 0x1d8   : > { %v1358_v52 = vrot.slane %v1357_v49, 2  ;;  %v1336_v57 = vsel %vm673_vm3, %v3446_v50, -inf  ;;  %v1393_v0 = vsel %vm673_vm3, %v3442_v47, -inf  ;;  %v1416_v11 = vrot.slane %v1415_v53, 2 }
 0x1d9   : > { %v1323_v59 = vmax.f32 %v1321_v45, %v1322_v51  ;;  %v1337_v55 = vmax.f32 %v1335_v56, %v1336_v57  ;;  %v1372_v61 = vsel %vm673_vm3, %v3449_v54, -inf  ;;  %v802_v62 = vpop.f32.mrb[8].mxu1  ;;  %v1394_v3 = vsel %vm673_vm3, %v3455_v58, -inf }
 0x1da   : > { %v1359_v63 = vmax.f32 %v1357_v49, %v1358_v52  ;;  %v1373_v1 = vmax.f32 %v1371_v60, %v1372_v61  ;;  %v2853_v5 = vpop.f32.mrb[9].mxu1  ;;  %v1395_v7 = vmax.f32 %v1393_v0, %v1394_v3  ;;  %v3465_v8 = vadd.f32 %v802_v62, %v721_v15  ;;  %v3484_v60 = vld [vmem:[%s3479_s29 + $0x18] sm:$0xff]   ;;  %v3487_v62 = vld [vmem:[%s3479_s29] sm:$0xff]  }
 0x1db   : > { %v1324_v4 = vrot.slane %v1323_v59, 1  ;;  %v1338_v6 = vrot.slane %v1337_v55, 4  ;;  %v805_v9 = vpop.f32.mrb[10].mxu1  ;;  %v1417_v36 = vmax.f32 %v1415_v53, %v1416_v11  ;;  %2922 = vmatpush3.bf16.msra.mxu1 %v3484_v60  ;;  %2928 = vmatpush3.bf16.msra.mxu0 %v3487_v62 }
 0x1dc   : > { %v1360_v10 = vrot.slane %v1359_v63, 1  ;;  %v1374_v14 = vrot.slane %v1373_v1, 4  ;;  %v3467_v16 = vadd.f32 %v805_v9, %v724_v20  ;;  %v2854_v18 = vpop.f32.mrb[11].mxu1  ;;  %v1396_v27 = vrot.slane %v1395_v7, 4  ;;  %2933 = vmatprep.subr.bf16.mxu1 %v3880_v2  ;;  %2939 = vmatprep.subr.bf16.mxu0 %v3880_v2 }
 0x1dd   : > { %v1325_v25 = vmax.f32 %v1323_v59, %v1324_v4  ;;  %v1339_v26 = vmax.f32 %v1337_v55, %v1338_v6  ;;  %v1308_v30 = vsel %vm673_vm3, %v3465_v8, -inf  ;;  %v1418_v56 = vrot.slane %v1417_v36, 1 }
 0x1de   : > { %v1361_v28 = vmax.f32 %v1359_v63, %v1360_v10  ;;  %v1375_v29 = vmax.f32 %v1373_v1, %v1374_v14  ;;  %v1309_v15 = vsel %vm673_vm3, %v3467_v16, -inf  ;;  %v1397_v32 = vmax.f32 %v1395_v7, %v1396_v27 }
 0x1df   : > { %v1340_v31 = vrot.slane %v1339_v26, 2  ;;  %v1310_v33 = vmax.f32 %v1308_v30, %v1309_v15  ;;  %v1419_v5 = vmax.f32 %v1417_v36, %v1418_v56 }
 0x1e0   : > { %v1381_v34 = vmax.f32 %v1325_v25, %v1361_v28  ;;  %v1376_v20 = vrot.slane %v1375_v29, 2  ;;  %v1398_v39 = vrot.slane %v1397_v32, 2 }
 0x1e1   : > { %v1341_v37 = vmax.f32 %v1339_v26, %v1340_v31  ;;  %v916_v40 = vpop.f32.mrb[12].mxu1  ;;  %v1311_v61 = vrot.slane %v1310_v33, 4 }
 0x1e2   : > { %v1377_v41 = vmax.f32 %v1375_v29, %v1376_v20  ;;  %v3473_v44 = vadd.f32 %v916_v40, %v737_v38  ;;  %v2865_v45 = vpop.f32.mrb[13].mxu1  ;;  %v1399_v51 = vmax.f32 %v1397_v32, %v1398_v39 }
 0x1e3   : > { %v1342_v49 = vrot.slane %v1341_v37, 1  ;;  %v919_v52 = vpop.f32.mrb[14].mxu1  ;;  %v1312_v10 = vmax.f32 %v1310_v33, %v1311_v61 }
 0x1e4   : > { %v1378_v53 = vrot.slane %v1377_v41, 1  ;;  %v3481_v57 = vadd.f32 %v919_v52, %v740_v48  ;;  %v2866_v59 = vpop.f32.mrb[15].mxu1  ;;  %v1400_v55 = vrot.slane %v1399_v51, 1  ;;  %v1326_v0 = vsel %vm673_vm3, %v3473_v44, -inf }
 0x1e5   : > { %v1343_v38 = vmax.f32 %v1341_v37, %v1342_v49  ;;  %v1313_v20 = vrot.slane %v1312_v10, 2 }
 0x1e6   : > { %v1379_v63 = vmax.f32 %v1377_v41, %v1378_v53  ;;  %v1327_v1 = vsel %vm673_vm3, %v3481_v57, -inf  ;;  %v1401_v3 = vmax.f32 %v1399_v51, %v1400_v55 }
 0x1e7   : > { %v1328_v48 = vmax.f32 %v1326_v0, %v1327_v1 }
 0x1e8   : > { %v1383_v4 = vmax.f32 %v1343_v38, %v1379_v63  ;;  %v3497_v6 = vmax.f32 %v1381_v34, %v1401_v3  ;;  %v1314_v38 = vmax.f32 %v1312_v10, %v1313_v20 }
 0x1e9   : > { %v1014_v7 = vpop.f32.mrb[16].mxu1  ;;  %v1329_v11 = vrot.slane %v1328_v48, 4 }
 0x1ea   : > { %v3499_v9 = vmax.f32 %v1383_v4, %v1419_v5  ;;  %v3502_v14 = vadd.f32 %v1014_v7, %v3432_v35  ;;  %v2877_v18 = vpop.f32.mrb[17].mxu1  ;;  %v1426_v25 = vsub.f32 %v3405_v12, %v3497_v6  ;;  %v1427_v26 = vsub.f32 %v3414_v22, %v3497_v6 }
 0x1eb   : > { %v1474_v27 = vsub.f32 %v3442_v47, %v3497_v6  ;;  %v1475_v28 = vsub.f32 %v3455_v58, %v3497_v6  ;;  %v1017_v29 = vpop.f32.mrb[18].mxu1  ;;  %v1330_v37 = vmax.f32 %v1328_v48, %v1329_v11  ;;  %v1450_v39 = vsub.f32 %v3409_v19, %v3497_v6 }
 0x1ec   : > { %v1430_v30 = vsub.f32 %v3436_v42, %v3499_v9  ;;  %v1431_v15 = vsub.f32 %v3446_v50, %v3499_v9  ;;  %v1455_v31 = vsub.f32 %v3449_v54, %v3499_v9  ;;  %v1478_v12 = vsub.f32 %v3411_v21, %v3499_v9  ;;  %v2878_v22 = vpop.f32.mrb[19].mxu1 }
 0x1ed   : > { %v1436_v32 = vmul.f32 1.442695, %v1426_v25  ;;  %v1438_v33 = vmul.f32 1.442695, %v1427_v26  ;;  %v1479_v47 = vsub.f32 %v3418_v24, %v3499_v9  ;;  %v1484_v42 = vmul.f32 1.442695, %v1474_v27 }
 0x1ee   : > { %v1444_v58 = vmul.f32 1.442695, %v1430_v30  ;;  %v1446_v34 = vmul.f32 1.442695, %v1431_v15  ;;  %v1470_v36 = vmul.f32 1.442695, %v1455_v31  ;;  %v3523_v54 = vadd.f32 %v1017_v29, %v3438_v43 }
 0x1ef   : > { %3087 = vpow2.f32 %v1436_v32  ;;  %v1486_v50 = vmul.f32 1.442695, %v1475_v28  ;;  %v1451_v24 = vsub.f32 %v3416_v23, %v3497_v6  ;;  %v1454_v40 = vsub.f32 %v3440_v46, %v3499_v9 }
 0x1f0   : > { %3089 = vpow2.f32 %v1438_v33  ;;  %v1344_v41 = vsel %vm673_vm3, %v3502_v14, -inf  ;;  %v1345_v45 = vsel %vm673_vm3, %v3523_v54, -inf  ;;  %v1492_v52 = vmul.f32 1.442695, %v1478_v12 }
 0x1f1   : > { %3091 = vpow2.f32 %v1444_v58  ;;  %v1096_v21 = vpop.f32.mrb[20].mxu1  ;;  %v1346_v19 = vmax.f32 %v1344_v41, %v1345_v45  ;;  %v1331_v23 = vrot.slane %v1330_v37, 2  ;;  %v1460_v59 = vmul.f32 1.442695, %v1450_v39 }
 0x1f2   : > { %3093 = vpow2.f32 %v1446_v34  ;;  %v3536_v49 = vadd.f32 %v1096_v21, %v3402_v13  ;;  %v2889_v51 = vpop.f32.mrb[21].mxu1  ;;  %v1462_v61 = vmul.f32 1.442695, %v1451_v24  ;;  %v1468_v1 = vmul.f32 1.442695, %v1454_v40 }
 0x1f3   : > { %3095 = vpow2.f32 %v1470_v36  ;;  %v1099_v56 = vpop.f32.mrb[22].mxu1  ;;  %v1347_v55 = vrot.slane %v1346_v19, 4  ;;  %v1494_v3 = vmul.f32 1.442695, %v1479_v47  ;;  %v1332_v4 = vmax.f32 %v1330_v37, %v1331_v23 }
 0x1f4   : > { %3097 = vpow2.f32 %v1484_v42  ;;  %v3539_v53 = vadd.f32 %v1099_v56, %v3407_v17  ;;  %v2890_v46 = vpop.f32.mrb[23].mxu1  ;;  %v1362_v63 = vsel %vm673_vm3, %v3536_v49, -inf  ;;  %v1315_v11 = vrot.slane %v1314_v38, 1 }
 0x1f5   : > { %3099 = vpow2.f32 %v1486_v50  ;;  %v1348_v48 = vmax.f32 %v1346_v19, %v1347_v55  ;;  %v1333_v33 = vrot.slane %v1332_v4, 1 }
 0x1f6   : > { %v1363_v0 = vsel %vm673_vm3, %v3539_v53, -inf  ;;  %3101 = vpow2.f32 %v1492_v52  ;;  %v3567_v42 = vmax.f32 %v1314_v38, %v1315_v11 }
 0x1f7   : > { %v1364_v5 = vmax.f32 %v1362_v63, %v1363_v0  ;;  %3103 = vpow2.f32 %v1460_v59  ;;  %v1349_v18 = vrot.slane %v1348_v48, 2  ;;  %v3583_v23 = vmax.f32 %v1332_v4, %v1333_v33 }
 0x1f8   : > { %3105 = vpow2.f32 %v1462_v61 }
 0x1f9   : > { %v3545_v7 = vpop.eup %3087  ;;  %v1365_v10 = vrot.slane %v1364_v5, 4  ;;  %v1178_v25 = vpop.f32.mrb[24].mxu1  ;;  %3107 = vpow2.f32 %v1468_v1  ;;  %v1350_v15 = vmax.f32 %v1348_v48, %v1349_v18 }
 0x1fa   : > { %v3547_v26 = vpop.eup %3089  ;;  %v3550_v27 = vadd.f32 %v1178_v25, %v3402_v13  ;;  %v2901_v28 = vpop.f32.mrb[25].mxu1  ;;  %v1505_v29 = vsel %vm673_vm3, %v3545_v7, 0.0  ;;  %3109 = vpow2.f32 %v1494_v3 }
 0x1fb   : > { %v3554_v30 = vpop.eup %3091  ;;  %v1366_v31 = vmax.f32 %v1364_v5, %v1365_v10  ;;  %v1181_v12 = vpop.f32.mrb[26].mxu1  ;;  %v1506_v22 = vsel %vm673_vm3, %v3547_v26, 0.0  ;;  %v1351_v20 = vrot.slane %v1350_v15, 1 }
 0x1fc   : > { %v3558_v32 = vpop.eup %3093  ;;  %v3561_v13 = vadd.f32 %v1181_v12, %v3407_v17  ;;  %v2902_v47 = vpop.f32.mrb[27].mxu1  ;;  %v1507_v58 = vadd.f32 %v1506_v22, %v1505_v29  ;;  %v1523_v34 = vsel %vm673_vm3, %v3554_v30, 0.0  ;;  %v1384_v17 = vsel %vm673_vm3, %v3550_v27, -inf }
 0x1fd   : > { %v3565_v36 = vpop.eup %3095  ;;  %v1367_v50 = vrot.slane %v1366_v31, 2  ;;  %v1524_v37 = vsel %vm673_vm3, %v3558_v32, 0.0  ;;  %v1352_v51 = vmax.f32 %v1350_v15, %v1351_v20 }
 0x1fe   : > { %v3571_v21 = vpop.eup %3097  ;;  %v1385_v39 = vsel %vm673_vm3, %v3561_v13, -inf  ;;  %v1508_v24 = vrot.slane %v1507_v58, 4  ;;  %v1525_v40 = vadd.f32 %v1524_v37, %v1523_v34  ;;  %v1560_v48 = vsel %vm673_vm3, %v3565_v36, 0.0 }
 0x1ff   : > { %v3577_v41 = vpop.eup %3099  ;;  %v1581_v45 = vsel %vm673_vm3, %v3571_v21, 0.0  ;;  %v1368_v52 = vmax.f32 %v1366_v31, %v1367_v50  ;;  %v1386_v19 = vmax.f32 %v1384_v17, %v1385_v39  ;;  %v1380_v61 = vmax.f32 %v3567_v42, %v1352_v51 }
 0x200   : > { %v1582_v56 = vsel %vm673_vm3, %v3577_v41, 0.0  ;;  %v1509_v46 = vadd.f32 %v1508_v24, %v1507_v58  ;;  %v1526_v59 = vrot.slane %v1525_v40, 4  ;;  %v3585_v38 = vpop.eup %3101 }
 0x201   : > { %v1583_v55 = vadd.f32 %v1582_v56, %v1581_v45  ;;  %v1369_v63 = vrot.slane %v1368_v52, 1  ;;  %v1387_v0 = vrot.slane %v1386_v19, 4  ;;  %v1260_v1 = vpop.f32.mrb[28].mxu1  ;;  %v3588_v3 = vpop.eup %3103  ;;  %v1599_v58 = vsel %vm673_vm3, %v3585_v38, 0.0 }
 0x202   : > { %v3593_v5 = vadd.f32 %v1260_v1, %v3432_v35  ;;  %v2913_v4 = vpop.f32.mrb[29].mxu1  ;;  %v1510_v11 = vrot.slane %v1509_v46, 2  ;;  %v1527_v18 = vadd.f32 %v1526_v59, %v1525_v40  ;;  %v3595_v10 = vpop.eup %3105  ;;  %v1541_v31 = vsel %vm673_vm3, %v3588_v3, 0.0 }
 0x203   : > { %v1584_v25 = vrot.slane %v1583_v55, 4  ;;  %v3597_v28 = vmax.f32 %v1368_v52, %v1369_v63  ;;  %v1388_v29 = vmax.f32 %v1386_v19, %v1387_v0  ;;  %v1263_v15 = vpop.f32.mrb[30].mxu1  ;;  %v3601_v12 = vpop.eup %3107  ;;  %v1542_v47 = vsel %vm673_vm3, %v3595_v10, 0.0 }
 0x204   : > { %v3604_v22 = vadd.f32 %v1263_v15, %v3438_v43  ;;  %v2914_v35 = vpop.f32.mrb[31].mxu1  ;;  %v1511_v33 = vadd.f32 %v1510_v11, %v1509_v46  ;;  %v3610_v34 = vpop.eup %3109  ;;  %v1543_v37 = vadd.f32 %v1542_v47, %v1541_v31  ;;  %v1402_v43 = vsel %vm673_vm3, %v3593_v5, -inf }
 0x205   : > { %v1585_v42 = vadd.f32 %v1584_v25, %v1583_v55  ;;  %v1389_v50 = vrot.slane %v1388_v29, 2  ;;  %v1528_v39 = vrot.slane %v1527_v18, 2  ;;  %v1559_v24 = vsel %vm673_vm3, %v3601_v12, 0.0 }
 0x206   : > { %v1403_v17 = vsel %vm673_vm3, %v3604_v22, -inf  ;;  %v1544_v52 = vrot.slane %v1543_v37, 4  ;;  %v1561_v19 = vadd.f32 %v1560_v48, %v1559_v24  ;;  %v1600_v56 = vsel %vm673_vm3, %v3610_v34, 0.0 }
 0x207   : > { %v1586_v40 = vrot.slane %v1585_v42, 2  ;;  %v1390_v45 = vmax.f32 %v1388_v29, %v1389_v50  ;;  %v1404_v51 = vmax.f32 %v1402_v43, %v1403_v17  ;;  %v1512_v55 = vrot.slane %v1511_v33, 1 }
 0x208   : > { %v1545_v63 = vadd.f32 %v1544_v52, %v1543_v37  ;;  %v1529_v1 = vadd.f32 %v1528_v39, %v1527_v18  ;;  %v1562_v4 = vrot.slane %v1561_v19, 4  ;;  %v1601_v11 = vadd.f32 %v1600_v56, %v1599_v58 }
 0x209   : > { %v1391_v46 = vrot.slane %v1390_v45, 1  ;;  %v1405_v59 = vrot.slane %v1404_v51, 4  ;;  %v1587_v0 = vadd.f32 %v1586_v40, %v1585_v42  ;;  %v1513_v48 = vadd.f32 %v1512_v55, %v1511_v33 }
 0x20a   : > { %v1546_v31 = vrot.slane %v1545_v63, 2  ;;  %v1563_v35 = vadd.f32 %v1562_v4, %v1561_v19  ;;  %v1602_v47 = vrot.slane %v1601_v11, 4  ;;  %v1530_v24 = vrot.slane %v1529_v1, 1 }
 0x20b   : > { %v1392_v25 = vmax.f32 %v1390_v45, %v1391_v46  ;;  %v1406_v15 = vmax.f32 %v1404_v51, %v1405_v59  ;;  %v1588_v17 = vrot.slane %v1587_v0, 1 }
 0x20c   : > { %v1547_v43 = vadd.f32 %v1546_v31, %v1545_v63  ;;  %v1564_v2 = vrot.slane %v1563_v35, 2  ;;  %v1603_v20 = vadd.f32 %v1602_v47, %v1601_v11  ;;  %v1531_v46 = vadd.f32 %v1530_v24, %v1529_v1 }
 0x20d   : > { %v3622_v29 = vmax.f32 %v1380_v61, %v1392_v25  ;;  %v1407_v50 = vrot.slane %v1406_v15, 2  ;;  %v1589_v55 = vadd.f32 %v1588_v17, %v1587_v0 }
 0x20e   : > { %v1548_v40 = vrot.slane %v1547_v43, 1  ;;  %v1565_v52 = vadd.f32 %v1564_v2, %v1563_v35  ;;  %v3882_v2 = vmax.f32 %v3583_v23, %v3597_v28 }
 0x20f   : > { %v1424_v42 = vsub.f32 %v3465_v8, %v3622_v29  ;;  %v1425_v18 = vsub.f32 %v3467_v16, %v3622_v29  ;;  %v1472_v58 = vsub.f32 %v3550_v27, %v3622_v29  ;;  %v1473_v61 = vsub.f32 %v3561_v13, %v3622_v29 }
 0x210   : > { %v1408_v37 = vmax.f32 %v1406_v15, %v1407_v50  ;;  %v1448_v33 = vsub.f32 %v3502_v14, %v3622_v29  ;;  %v1449_v39 = vsub.f32 %v3523_v54, %v3622_v29  ;;  %v1549_v56 = vadd.f32 %v1548_v40, %v1547_v43 }
 0x211   : > { %v1432_v45 = vmul.f32 1.442695, %v1424_v42  ;;  %v1434_v51 = vmul.f32 1.442695, %v1425_v18  ;;  %v1480_v8 = vmul.f32 1.442695, %v1472_v58 }
 0x212   : > { %v1482_v19 = vmul.f32 1.442695, %v1473_v61  ;;  %v1409_v16 = vrot.slane %v1408_v37, 1  ;;  %v1456_v27 = vmul.f32 1.442695, %v1448_v33  ;;  %v1566_v59 = vrot.slane %v1565_v52, 1 }
 0x213   : > { %3111 = vpow2.f32 %v1432_v45  ;;  %v1604_v13 = vrot.slane %v1603_v20, 2  ;;  %v1569_v14 = vadd.f32 %v1549_v56, %v1513_v48  ;;  %v1458_v4 = vmul.f32 1.442695, %v1449_v39 }
 0x214   : > { %3113 = vpow2.f32 %v1434_v51  ;;  %v1410_v63 = vmax.f32 %v1408_v37, %v1409_v16  ;;  %v1567_v54 = vadd.f32 %v1566_v59, %v1565_v52 }
 0x215   : > { %3115 = vpow2.f32 %v1480_v8  ;;  %v1605_v11 = vadd.f32 %v1604_v13, %v1603_v20  ;;  %v1609_v15 = vadd.f32 %v1589_v55, %v1569_v14 }
 0x216   : > { %3117 = vpow2.f32 %v1482_v19  ;;  %v3639_v25 = vmax.f32 %v3882_v2, %v1410_v63  ;;  %v1571_v1 = vadd.f32 %v1567_v54, %v1531_v46 }
 0x217   : > { %3119 = vpow2.f32 %v1456_v27  ;;  %v1606_v31 = vrot.slane %v1605_v11, 1 }
 0x218   : > { %v1428_v0 = vsub.f32 %v3473_v44, %v3639_v25  ;;  %v1429_v35 = vsub.f32 %v3481_v57, %v3639_v25  ;;  %v1476_v47 = vsub.f32 %v3593_v5, %v3639_v25  ;;  %v1477_v20 = vsub.f32 %v3604_v22, %v3639_v25 }
 0x219   : > { %3121 = vpow2.f32 %v1458_v4  ;;  %v1452_v23 = vsub.f32 %v3536_v49, %v3639_v25  ;;  %v1453_v28 = vsub.f32 %v3539_v53, %v3639_v25  ;;  %v1607_v50 = vadd.f32 %v1606_v31, %v1605_v11 }
 0x21a   : > { %v1440_v48 = vmul.f32 1.442695, %v1428_v0  ;;  %v1442_v43 = vmul.f32 1.442695, %v1429_v35  ;;  %v1488_v44 = vmul.f32 1.442695, %v1476_v47  ;;  %3123 = vlog2.f32 %v1609_v15 }
 0x21b   : > { %v1490_v17 = vmul.f32 1.442695, %v1477_v20  ;;  %3125 = vrcp.f32 %v1609_v15  ;;  %v1464_v57 = vmul.f32 1.442695, %v1452_v23  ;;  %v1611_v5 = vadd.f32 %v1607_v50, %v1571_v1 }
 0x21c   : > { %3127 = vpow2.f32 %v1440_v48  ;;  %v1466_v22 = vmul.f32 1.442695, %v1453_v28 }
 0x21d   : > { %v3653_v24 = vpop.eup %3111  ;;  %3129 = vpow2.f32 %v1442_v43 }
 0x21e   : > { %v3655_v42 = vpop.eup %3113  ;;  %3131 = vpow2.f32 %v1488_v44  ;;  %v1496_v49 = vsel %vm673_vm3, %v3653_v24, 0.0 }
 0x21f   : > { %v3659_v53 = vpop.eup %3115  ;;  %3133 = vpow2.f32 %v1490_v17  ;;  %v1497_v18 = vsel %vm673_vm3, %v3655_v42, 0.0 }
 0x220   : > { %v3663_v58 = vpop.eup %3117  ;;  %v1572_v61 = vsel %vm673_vm3, %v3659_v53, 0.0  ;;  %v1498_v37 = vadd.f32 %v1497_v18, %v1496_v49  ;;  %3135 = vpow2.f32 %v1464_v57 }
 0x221   : > { %v3667_v33 = vpop.eup %3119  ;;  %v1573_v39 = vsel %vm673_vm3, %v3663_v58, 0.0  ;;  %3137 = vpow2.f32 %v1466_v22 }
 0x222   : > { %v1574_v40 = vadd.f32 %v1573_v39, %v1572_v61  ;;  %v1499_v45 = vrot.slane %v1498_v37, 4  ;;  %v1532_v51 = vsel %vm673_vm3, %v3667_v33, 0.0  ;;  %3139 = vlog2.f32 %v1611_v5 }
 0x223   : > { %v3673_v8 = vpop.eup %3121  ;;  %3141 = vrcp.f32 %v1611_v5 }
 0x224   : > { %v3124_v52 = vpop.eup %3123  ;;  %v1575_v19 = vrot.slane %v1574_v40, 4  ;;  %v1500_v16 = vadd.f32 %v1499_v45, %v1498_v37  ;;  %v1533_v56 = vsel %vm673_vm3, %v3673_v8, 0.0 }
 0x225   : > { %v3126_v46 = vpop.eup %3125  ;;  %v1534_v27 = vadd.f32 %v1533_v56, %v1532_v51  ;;  %v1615_v59 = vmul.f32 0.6931472, %v3124_v52 }
 0x226   : > { %v3677_v13 = vpop.eup %3127  ;;  %v1576_v55 = vadd.f32 %v1575_v19, %v1574_v40  ;;  %v1501_v63 = vrot.slane %v1500_v16, 2  ;;  %v3680_v14 = vmul.f32 %v3126_v46, %v3588_v3  ;;  %v3683_v4 = vmul.f32 %v3126_v46, %v3595_v10 }
 0x227   : > { %v3685_v54 = vpop.eup %3129  ;;  %v1535_v11 = vrot.slane %v1534_v27, 4  ;;  %v3688_v2 = vadd.f32 %v1615_v59, %v3497_v6  ;;  %v1514_v15 = vsel %vm673_vm3, %v3677_v13, 0.0  ;;  %v3693_v1 = vmul.f32 %v3126_v46, %v3545_v7 }
 0x228   : > { %v3695_v31 = vpop.eup %3131  ;;  %v1577_v0 = vrot.slane %v1576_v55, 2  ;;  %v1502_v3 = vadd.f32 %v1501_v63, %v1500_v16  ;;  %v1649_v10 = vpack.c.bf16 %v3683_v4, %v3680_v14  ;;  %v1515_v35 = vsel %vm673_vm3, %v3685_v54, 0.0 }
 0x229   : > { %v3701_v47 = vpop.eup %3133  ;;  %v1590_v6 = vsel %vm673_vm3, %v3695_v31, 0.0  ;;  %v1536_v20 = vadd.f32 %v1535_v11, %v1534_v27  ;;  %v1516_v23 = vadd.f32 %v1515_v35, %v1514_v15  ;;  %v3706_v7 = vmul.f32 %v3126_v46, %v3547_v26 }
 0x22a   : > { %v3708_v28 = vpop.eup %3135  ;;  %v1578_v50 = vadd.f32 %v1577_v0, %v1576_v55  ;;  %v1591_v48 = vsel %vm673_vm3, %v3701_v47, 0.0  ;;  %v1503_v43 = vrot.slane %v1502_v3, 1  ;;  %v3713_v44 = vmul.f32 %v3126_v46, %v3571_v21 }
 0x22b   : > { %v3715_v17 = vpop.eup %3137  ;;  %v1592_v57 = vadd.f32 %v1591_v48, %v1590_v6  ;;  %v1537_v5 = vrot.slane %v1536_v20, 2  ;;  %v1517_v22 = vrot.slane %v1516_v23, 4  ;;  %v1550_v49 = vsel %vm673_vm3, %v3708_v28, 0.0 }
 0x22c   : > { %v3140_v26 = vpop.eup %3139  ;;  %v1579_v18 = vrot.slane %v1578_v50, 1  ;;  %v1504_v61 = vadd.f32 %v1503_v43, %v1502_v3  ;;  %v1551_v37 = vsel %vm673_vm3, %v3715_v17, 0.0  ;;  %v1637_v39 = vpack.c.bf16 %v3706_v7, %v3693_v1 }
 0x22d   : > { %v3142_v40 = vpop.eup %3141  ;;  %v1593_v21 = vrot.slane %v1592_v57, 4  ;;  %v1538_v45 = vadd.f32 %v1537_v5, %v1536_v20  ;;  %v1518_v51 = vadd.f32 %v1517_v22, %v1516_v23  ;;  %v1552_v52 = vadd.f32 %v1551_v37, %v1550_v49 }
 0x22e   : > { %v1580_v19 = vadd.f32 %v1579_v18, %v1578_v50  ;;  %v1619_v16 = vmul.f32 0.6931472, %v3140_v26  ;;  %v3724_v56 = vmul.f32 %v3142_v40, %v3601_v12  ;;  %v3727_v27 = vmul.f32 %v3142_v40, %v3565_v36 }
 0x22f   : > { %v1594_v59 = vadd.f32 %v1593_v21, %v1592_v57  ;;  %v1539_v55 = vrot.slane %v1538_v45, 1  ;;  %v1519_v63 = vrot.slane %v1518_v51, 2  ;;  %v1553_v11 = vrot.slane %v1552_v52, 4 }
 0x230   : > { %v3730_v15 = vadd.f32 %v1619_v16, %v3499_v9  ;;  %v1651_v0 = vpack.c.bf16 %v3727_v27, %v3724_v56  ;;  %v3735_v3 = vmul.f32 %v3142_v40, %v3554_v30  ;;  %v3738_v35 = vmul.f32 %v3142_v40, %v3558_v32 }
 0x231   : > { %v1595_v12 = vrot.slane %v1594_v59, 2  ;;  %v1540_v6 = vadd.f32 %v1539_v55, %v1538_v45  ;;  %v1520_v36 = vadd.f32 %v1519_v63, %v1518_v51  ;;  %v1554_v20 = vadd.f32 %v1553_v11, %v1552_v52 }
 0x232   : > { %v1639_v23 = vpack.c.bf16 %v3738_v35, %v3735_v3  ;;  %v3743_v50 = vmul.f32 %v3126_v46, %v3577_v41  ;;  %v3746_v9 = vmul.f32 %v3142_v40, %v3585_v38  ;;  %v3749_v48 = vmul.f32 %v3142_v40, %v3610_v34 }
 0x233   : > { %v1596_v30 = vadd.f32 %v1595_v12, %v1594_v59  ;;  %v1568_v43 = vadd.f32 %v1540_v6, %v1504_v61  ;;  %v1521_v32 = vrot.slane %v1520_v36, 1  ;;  %v1555_v57 = vrot.slane %v1554_v20, 2 }
 0x234   : > { %v2165_v5 = vpack.c.bf16 %v3743_v50, %v3713_v44  ;;  %v2167_v22 = vpack.c.bf16 %v3749_v48, %v3746_v9 }
 0x235   : > { %v1608_v49 = vadd.f32 %v1580_v19, %v1568_v43  ;;  %v1556_v26 = vadd.f32 %v1555_v57, %v1554_v20  ;;  %v1597_v41 = vrot.slane %v1596_v30, 1  ;;  %v1522_v46 = vadd.f32 %v1521_v32, %v1520_v36 }
 0x237   : > { %3143 = vrcp.f32 %v1608_v49  ;;  %v1557_v38 = vrot.slane %v1556_v26, 1  ;;  %v1598_v34 = vadd.f32 %v1597_v41, %v1596_v30 }
 0x238   : > { %3145 = vlog2.f32 %v1608_v49 }
 0x239   : > { %v1558_v18 = vadd.f32 %v1557_v38, %v1556_v26 }
 0x23b   : > { %v1570_v37 = vadd.f32 %v1558_v18, %v1522_v46 }
 0x23d   : > { %v1610_v40 = vadd.f32 %v1598_v34, %v1570_v37 }
 0x23f   : > { %3147 = vrcp.f32 %v1610_v40 }
 0x240   : > { %3149 = vlog2.f32 %v1610_v40 }
 0x241   : > { %v3144_v61 = vpop.eup %3143 }
 0x242   : > { %v3146_v21 = vpop.eup %3145  ;;  %v1640_v44 = vmul.f32 %v3144_v61, %v3667_v33  ;;  %v1641_v45 = vmul.f32 %v3144_v61, %v3673_v8  ;;  %v1628_v51 = vmul.f32 %v3144_v61, %v3653_v24  ;;  %v1629_v52 = vmul.f32 %v3144_v61, %v3655_v42 }
 0x243   : > { %v1613_v19 = vmul.f32 0.6931472, %v3146_v21  ;;  %v2156_v16 = vmul.f32 %v3144_v61, %v3659_v53  ;;  %v2157_v59 = vmul.f32 %v3144_v61, %v3663_v58 }
 0x244   : > { %v1648_v55 = vpack.c.bf16 %v1641_v45, %v1640_v44  ;;  %v1636_v63 = vpack.c.bf16 %v1629_v52, %v1628_v51 }
 0x245   : > { %v1620_v11 = vadd.f32 %v1613_v19, %v3622_v29  ;;  %v2164_v12 = vpack.c.bf16 %v2157_v59, %v2156_v16 }
 0x246   : > { %1652 = vxpose.xlu0.c.b16.start.end [1/1] (short) (narrow) %v1648_v55, 16 }
 0x247   : > { %v2462_v33 = vsel %vm2461_vm4, %v3688_v2, %v1620_v11 }
 0x249   : > { %v3148_v8 = vpop.eup %3147 }
 0x24a   : > { %v3150_v6 = vpop.eup %3149  ;;  %1718 = vxpose.xlu0.c.b16.start.end [1/1] (short) (narrow) %v1649_v10, 16  ;;  %v1644_v24 = vmul.f32 %v3148_v8, %v3708_v28  ;;  %v1645_v42 = vmul.f32 %v3148_v8, %v3715_v17  ;;  %v1632_v53 = vmul.f32 %v3148_v8, %v3677_v13  ;;  %v1633_v58 = vmul.f32 %v3148_v8, %v3685_v54  ;;  %v3086_v10 = vld [vmem:[%s3479_s29 + $0x10] sm:$0xff]  }
 0x24b   : > { %v1617_v29 = vmul.f32 0.6931472, %v3150_v6  ;;  %v2160_v36 = vmul.f32 %v3148_v8, %v3695_v31  ;;  %v2161_v2 = vmul.f32 %v3148_v8, %v3701_v47  ;;  %v3883_v47 = vmov 0.0  }
 0x24c   : > { %v1650_v20 = vpack.c.bf16 %v1645_v42, %v1644_v24  ;;  %v1638_v50 = vpack.c.bf16 %v1633_v58, %v1632_v53 }
 0x24d   : > { %v1622_v14 = vadd.f32 %v1617_v29, %v3639_v25  ;;  %v2166_v4 = vpack.c.bf16 %v2161_v2, %v2160_v36  ;;  %v3085_v25 = vld [vmem:[%s3479_s29 + $0x8] sm:$0xff]  }
 0x24e   : > { %1916 = vxpose.xlu0.c.b16.start.end [1/1] (short) (narrow) %v1636_v63, 16  ;;  %1784 = vxpose.xlu1.c.b16.start.end [1/1] (short) (narrow) %v1650_v20, 16 }
 0x24f   : > { %v2464_v13 = vsel %vm2463_vm5, %v1622_v14, %v2462_v33 }
 0x250   : > { %v2466_v54 = vsel %vm2465_vm6, %v3730_v15, %v2464_v13 }
 0x251   : > { %2469 = vst.msk [vmem:[%s491_s17] sm:$0xf] %vm2468_vm7, %v2466_v54 }
 0x252   : > { %1850 = vxpose.xlu1.c.b16.start.end [1/1] (short) (narrow) %v1651_v0, 16  ;;  %2036 = vxpose.xlu0.c.b16.start.end [1/1] (short) (narrow) %v1638_v50, 16 }
 0x256   : > { %1976 = vxpose.xlu1.c.b16.start.end [1/1] (short) (narrow) %v1637_v39, 16  ;;  %2168 = vxpose.xlu0.c.b16.start.end [1/1] (short) (narrow) %v2164_v12, 16 }
 0x25a   : > { %2096 = vxpose.xlu1.c.b16.start.end [1/1] (short) (narrow) %v1639_v23, 16  ;;  %2288 = vxpose.xlu0.c.b16.start.end [1/1] (short) (narrow) %v2166_v4, 16 }
 0x25e   : > { %2228 = vxpose.xlu1.c.b16.start.end [1/1] (short) (narrow) %v2165_v5, 16 }
 0x262   : > { %2348 = vxpose.xlu1.c.b16.start.end [1/1] (short) (narrow) %v2167_v22, 16 }
 0x2ac   : > { %v1660_v31 = vpop.trf.xlu0 }
 0x2ad   : > { %2924 = vmatmul.mubr.msk.bf16.vlgmr.msra.gmra.mrb[32].mxu1 %vm673_vm3, %v1660_v31 }
 0x2ae   : > { %2934 = vmatpush3.bf16.msra.mxu1 %v3085_v25  ;;  %2935 = vmatprep.mubr.msk.bf16.mxu1 %vm3192_vm2, %v3883_v47 }
 0x2af   : > { %2945 = vmatprep.subr.bf16.mxu1 %v3883_v47 }
 0x2b0   : > { %v1726_v1 = vpop.trf.xlu0 }
 0x2b1   : > { %2930 = vmatmul.mubr.msk.bf16.vlgmr.msra.gmra.mrb[32].mxu0 %vm673_vm3, %v1726_v1 }
 0x2b2   : > { %2940 = vmatpush3.bf16.msra.mxu0 %v3086_v10  ;;  %2941 = vmatprep.mubr.msk.bf16.mxu0 %vm3192_vm2, %v3883_v47 }
 0x2b3   : > { %2951 = vmatprep.subr.bf16.mxu0 %v3883_v47 }
 0x2b4   : > { %v1792_v7 = vpop.trf.xlu1  ;;  %v1924_v17 = vpop.trf.xlu0 }
 0x2b5   : > { %2936 = vmatmul.mubr.msk.bf16.vlgmr.msra.gmra.mrb[36].mxu1 %vm673_vm3, %v1792_v7 }
 0x2b6   : > { %2946 = vmatpush3.bf16.msra.mxu1 %v3487_v62  ;;  %2947 = vmatprep.mubr.msk.bf16.mxu1 %vm3192_vm2, %v3883_v47 }
 0x2b7   : > { %2957 = vmatprep.subr.bf16.mxu1 %v3883_v47 }
 0x2b8   : > { %v1858_v28 = vpop.trf.xlu1  ;;  %v2044_v56 = vpop.trf.xlu0 }
 0x2b9   : > { %2942 = vmatmul.mubr.msk.bf16.vlgmr.msra.gmra.mrb[36].mxu0 %vm673_vm3, %v1858_v28 }
 0x2ba   : > { %2952 = vmatpush3.bf16.msra.mxu0 %v3085_v25  ;;  %2953 = vmatprep.mubr.msk.bf16.mxu0 %vm3192_vm2, %v3883_v47 }
 0x2bb   : > { %2963 = vmatprep.subr.bf16.mxu0 %v3883_v47 }
 0x2bc   : > { %v1984_v39 = vpop.trf.xlu1  ;;  %v2176_v15 = vpop.trf.xlu0 }
 0x2bd   : > { %2948 = vmatmul.mubr.msk.bf16.vlgmr.msra.gmra.mrb[32].mxu1 %vm673_vm3, %v1924_v17 }
 0x2be   : > { %2958 = vmatpush3.bf16.msra.mxu1 %v3086_v10  ;;  %2959 = vmatprep.mubr.msk.bf16.mxu1 %vm3192_vm2, %v3883_v47 }
 0x2bf   : > { %2969 = vmatprep.subr.bf16.mxu1 %v3883_v47 }
 0x2c0   : > { %v2104_v27 = vpop.trf.xlu1  ;;  %v2296_v3 = vpop.trf.xlu0 }
 0x2c1   : > { %2954 = vmatmul.mubr.msk.bf16.vlgmr.msra.gmra.mrb[32].mxu0 %vm673_vm3, %v1984_v39 }
 0x2c2   : > { %2964 = vmatpush3.bf16.msra.mxu0 %v3484_v60  ;;  %2965 = vmatprep.mubr.msk.bf16.mxu0 %vm3192_vm2, %v3883_v47 }
 0x2c3   : > { %2975 = vmatprep.subr.bf16.mxu0 %v3883_v47 }
 0x2c4   : > { %v2236_v0 = vpop.trf.xlu1 }
 0x2c5   : > { %2960 = vmatmul.mubr.msk.bf16.vlgmr.msra.gmra.mrb[36].mxu1 %vm673_vm3, %v2044_v56 }
 0x2c6   : > { %2970 = vmatpush3.bf16.msra.mxu1 %v3085_v25  ;;  %2971 = vmatprep.mubr.msk.bf16.mxu1 %vm3192_vm2, %v3883_v47 }
 0x2c7   : > { %2981 = vmatprep.subr.bf16.mxu1 %v3883_v47 }
 0x2c8   : > { %v2356_v35 = vpop.trf.xlu1 }
 0x2c9   : > { %2966 = vmatmul.mubr.msk.bf16.vlgmr.msra.gmra.mrb[36].mxu0 %vm673_vm3, %v2104_v27 }
 0x2ca   : > { %2976 = vmatpush3.bf16.msra.mxu0 %v3086_v10  ;;  %2977 = vmatprep.mubr.msk.bf16.mxu0 %vm3192_vm2, %v3883_v47 }
 0x2cb   : > { %2987 = vmatprep.subr.bf16.mxu0 %v3883_v47 }
 0x2cd   : > { %2972 = vmatmul.mubr.msk.bf16.vlgmr.msra.gmra.mrb[32].mxu1 %vm673_vm3, %v2176_v15 }
 0x2ce   : > { %2982 = vmatpush3.bf16.msra.mxu1 %v3484_v60  ;;  %2983 = vmatprep.mubr.msk.bf16.mxu1 %vm3192_vm2, %v3883_v47 }
 0x2d1   : > { %2978 = vmatmul.mubr.msk.bf16.vlgmr.msra.gmra.mrb[32].mxu0 %vm673_vm3, %v2236_v0 }
 0x2d2   : > { %2988 = vmatpush3.bf16.msra.mxu0 %v3487_v62  ;;  %2989 = vmatprep.mubr.msk.bf16.mxu0 %vm3192_vm2, %v3883_v47 }
 0x2d5   : > { %2984 = vmatmul.mubr.msk.bf16.vlgmr.msra.gmra.mrb[36].mxu1 %vm673_vm3, %v2296_v3 }
 0x2d9   : > { %2990 = vmatmul.mubr.msk.bf16.vlgmr.msra.gmra.mrb[36].mxu0 %vm673_vm3, %v2356_v35 }
 0x3a0   : > { %v2221_v60 = vpop.f32.mrb[32].mxu1 }
 0x3a1   : > { %v2760_v62 = vpack.c.bf16 %v2221_v60, %v2221_v60  ;;  %v2973_v23 = vpop.f32.mrb[33].mxu1 }
 0x3a2   : > { %v2224_v9 = vpop.f32.mrb[34].mxu1 }
 0x3a3   : > { %2449 = vst.msk [vmem:[%s3837_s19] sm:$0xf] %vm2448_vm8, %v2760_v62  ;;  %v2761_v48 = vpack.c.bf16 %v2224_v9, %v2224_v9  ;;  %v2974_v30 = vpop.f32.mrb[35].mxu1 }
 0x3a4   : > { %v2281_v43 = vpop.f32.mrb[32].mxu0 }
 0x3a5   : > { %2450 = vst.msk [vmem:[%s3837_s19 + $0x4] sm:$0xf] %vm2448_vm8, %v2761_v48  ;;  %v2762_v32 = vpack.c.bf16 %v2281_v43, %v2281_v43  ;;  %v2979_v57 = vpop.f32.mrb[33].mxu0 }
 0x3a6   : > { %v2284_v5 = vpop.f32.mrb[34].mxu0 }
 0x3a7   : > { %2451 = vst.msk [vmem:[%s3837_s19 + $0x8] sm:$0xf] %vm2448_vm8, %v2762_v32  ;;  %v2763_v22 = vpack.c.bf16 %v2284_v5, %v2284_v5  ;;  %v2980_v49 = vpop.f32.mrb[35].mxu0 }
 0x3a8   : > { %v2341_v26 = vpop.f32.mrb[36].mxu1 }
 0x3a9   : > { %2452 = vst.msk [vmem:[%s3837_s19 + $0xc] sm:$0xf] %vm2448_vm8, %v2763_v22  ;;  %v2764_v41 = vpack.c.bf16 %v2341_v26, %v2341_v26  ;;  %v2985_v46 = vpop.f32.mrb[37].mxu1 }
 0x3aa   : > { %v2344_v38 = vpop.f32.mrb[38].mxu1 }
 0x3ab   : > { %2453 = vst.msk [vmem:[%s3837_s19 + $0x10] sm:$0xf] %vm2448_vm8, %v2764_v41  ;;  %v2765_v18 = vpack.c.bf16 %v2344_v38, %v2344_v38  ;;  %v2986_v34 = vpop.f32.mrb[39].mxu1 }
 0x3ac   : > { %v2401_v37 = vpop.f32.mrb[36].mxu0 }
 0x3ad   : > { %2454 = vst.msk [vmem:[%s3837_s19 + $0x14] sm:$0xf] %vm2448_vm8, %v2765_v18  ;;  %v2766_v40 = vpack.c.bf16 %v2401_v37, %v2401_v37  ;;  %v2991_v61 = vpop.f32.mrb[37].mxu0 }
 0x3ae   : > { %v2404_v21 = vpop.f32.mrb[38].mxu0 }
 0x3af   : > { %2455 = vst.msk [vmem:[%s3837_s19 + $0x18] sm:$0xf] %vm2448_vm8, %v2766_v40  ;;  %v2767_v44 = vpack.c.bf16 %v2404_v21, %v2404_v21  ;;  %v2992_v45 = vpop.f32.mrb[39].mxu0 }
 0x3b1   : > { %2456 = vst.msk [vmem:[%s3837_s19 + $0x1c] sm:$0xf] %vm2448_vm8, %v2767_v44 }
 0x3b2 PF: > { %s20_s13 = sadd.s32 1, %s3189_s13   ;;  %s3884_s30 = smov %s3181_s11 }
 0x3b3   : > { %p17_p7 = scmp.ge.s32.totalorder %s20_s13, 6   ;;  %s3885_s10 = smov %s3185_s12 }
 0x3b4   : > { %s3886_s11 = smov %s3889_s14  ;;  %s3887_s12 = smov %s3893_s15 }
 0x3b5   :  { %19 = sbr.rel (!%p17_p7) target bundleno = 3 (0x3), region = 103 }

// kernel: glam_forward.5
= control target key start
LH: loop header
LB: loop body
LE: loop exit
PB: predicated region body
PF: predicated region fallthrough
CT: control target
= control target key end

     0   :  { %s2584_s12 = smov 0   ;;  %s3054_s0 = inlined_call_operand.vmem [shape: bf16[2,176,32], index: 0, kind: input, shape index: {}]   ;;  %s3055_s1 = inlined_call_operand.vmem [shape: bf16[9,32,32], index: 1, kind: input, shape index: {}]   ;;  %s3056_s2 = inlined_call_operand.vmem [shape: f32[1,32], index: 2, kind: input, shape index: {}]   ;;  %s3057_s3 = inlined_call_operand.vmem [shape: f32[2,8,8,32], index: 3, kind: output, shape index: {}]  }
   0x1 LB: > { %s2029_s13 = sadd.s32 4294967295, %s2562_s12   ;;  %p2033_p0 = scmp.ge.s32.totalorder %s2562_s12, 1  ;;  %s2562_s12 = sphi %s2584_s12, %s13_s12  }
   0x2   : > { %p137_p1 = scmp.lt.s32.totalorder %s2562_s12, 3 }
   0x4   : > { %p138_p2 = pnand %p2033_p0, %p137_p1 }
   0x5   : > { %v2492_v0 = vld [vmem:[%s3055_s1 + $0x10] sm:$0xff] (!%p138_p2)   ;;  %p161_p3 = scmp.lt.s32.totalorder (!%p138_p2), %s2029_s13, 1  ;;  %v2493_v1 = vld [vmem:[%s3055_s1 + $0x18] sm:$0xff] (!%p138_p2)   ;;  %v2603_v2 = vld [vmem:[%s3055_s1] sm:$0xff] (!%p138_p2)   ;;  %vm241_vm0 = vsmask.f32 (!%p138_p2), 7424 }
   0x6   : > { %141 = sbr.rel (%p138_p2) target bundleno = 383 (0x17f), region = 32  ;;  %2479 = vmatprep.subr.bf16.mxu1 (!%p138_p2), %v2492_v0  ;;  %2299 = vmatprep.subr.bf16.mxu0 (!%p138_p2), %v2492_v0  ;;  %v2501_v3 = vld [vmem:[%s3055_s1 + $0x20] sm:$0xff] (!%p138_p2)   ;;  %vm322_vm1 = vcmask (!%p138_p2), 261120   ;;  %v2506_v37 = vld [vmem:[%s3055_s1 + $0x28] sm:$0xff] (!%p138_p2)   ;;  %vm562_vm2 = vcmask (!%p138_p2), 1046528   ;;  %v2508_v62 = vld [vmem:[%s3055_s1 + $0x30] sm:$0xff] (!%p138_p2)  }
   0x7   : > { %2481 = vmatpush3.bf16.msra.mxu1 (!%p138_p2), %v2492_v0  ;;  %2300 = vmatpush3.bf16.msra.mxu0 (!%p138_p2), %v2492_v0  ;;  %v2504_v46 = vld [vmem:[%s3055_s1 + $0x8] sm:$0xff] (!%p138_p2)   ;;  %v2509_v57 = vld [vmem:[%s3055_s1 + $0x40] sm:$0xff] (!%p138_p2)  }
   0x8   : > { %2480 = vmatprep.subr.bf16.mxu1 (!%p138_p2), %v2493_v1  ;;  %2301 = vmatprep.subr.bf16.mxu0 (!%p138_p2), %v2493_v1 }
   0xb   : > { %2482 = vmatpush3.bf16.msra.mxu1 (!%p138_p2), %v2493_v1  ;;  %2302 = vmatpush3.bf16.msra.mxu0 (!%p138_p2), %v2493_v1 }
   0xc   : > { %2319 = vmatprep.subr.bf16.mxu1 (!%p138_p2), %v2603_v2  ;;  %2339 = vmatprep.subr.bf16.mxu0 (!%p138_p2), %v2501_v3 }
   0xd   : > { %s3059_s13 = smov (!%p161_p3, %s2029_s13), 1 }
   0xe   : > { %s2483_s20 = smul.u32 88, %s3059_s13 }
  0x10   : > { %s2612_s25 = scalar_lea.vmem %s3054_s0, %s2483_s20 }
  0x11   : > { %v172_v4 = vld [vmem:[%s2612_s25] sm:$0xf]  ;;  %v2616_v5 = vld [vmem:[%s2612_s25 + $0x4] sm:$0xf]  ;;  %v2622_v7 = vld [vmem:[%s2612_s25 + $0x8] sm:$0xff]  }
  0x12   : > { %v2619_v6 = vcombine.low %v172_v4, %v2616_v5  ;;  %v250_v10 = vshll.u32 %v2622_v7, 16  ;;  %v254_v11 = vshrl.u32 %v2622_v7, 16  ;;  %v2630_v12 = vld [vmem:[%s2612_s25 + $0x20] sm:$0xff]   ;;  %v2633_v13 = vld [vmem:[%s2612_s25 + $0x28] sm:$0xff]   ;;  %v2636_v14 = vld [vmem:[%s2612_s25 + $0x10] sm:$0xff]   ;;  %v564_v15 = vrot.slane %v2622_v7, 1 }
  0x13   : > { %v274_v18 = vshll.u32 %v2630_v12, 16  ;;  %v278_v19 = vshrl.u32 %v2630_v12, 16  ;;  %v282_v20 = vshll.u32 %v2633_v13, 16  ;;  %v286_v21 = vshrl.u32 %v2633_v13, 16  ;;  %v2645_v23 = vld [vmem:[%s2612_s25 + $0x30] sm:$0xff]   ;;  %v2648_v27 = vld [vmem:[%s2612_s25 + $0x18] sm:$0xff]  }
  0x14   : > { %v243_v8 = vshrl.u32 %v2619_v6, 16  ;;  %v245_v9 = vshll.u32 %v2619_v6, 16  ;;  %v252_v17 = vrot.slane %v250_v10, 1  ;;  %v258_v22 = vshll.u32 %v2636_v14, 16  ;;  %v2655_v35 = vld [vmem:[%s2612_s25 + $0x38] sm:$0xff]  }
  0x15   : > { %v276_v26 = vrot.slane %v274_v18, 1  ;;  %v284_v28 = vrot.slane %v282_v20, 1  ;;  %v290_v30 = vshll.u32 %v2645_v23, 16  ;;  %v262_v31 = vshrl.u32 %v2636_v14, 16  ;;  %v553_v48 = vld [vmem:[%s2612_s25] sm:$0xe] }
  0x16   : > { %v247_v16 = vrot.slane %v245_v9, 1  ;;  %v256_v25 = vor.u32 %v254_v11, %v252_v17  ;;  %v260_v29 = vrot.slane %v258_v22, 1  ;;  %v266_v34 = vshll.u32 %v2648_v27, 16  ;;  %v2664_v42 = vld [vmem:[%s2612_s25 + $0x40] ss:$0 sps:$4 sm:$0x11]  }
  0x17   : > { %v280_v33 = vor.u32 %v278_v19, %v276_v26  ;;  %v294_v36 = vshrl.u32 %v2645_v23, 16  ;;  %v288_v38 = vor.u32 %v286_v21, %v284_v28  ;;  %v292_v40 = vrot.slane %v290_v30, 1  ;;  %v2701_v4 = vld [vmem:[%s2612_s25 + $0xc] sm:$0xf]  ;;  %v2510_v11 = vld [vmem:[%s3055_s1 + $0x38] sm:$0xff]   ;;  %v2736_v22 = vld [vmem:[%s3055_s1 + $0x50] sm:$0xff]  }
  0x18   : > { %v248_v24 = vor.u32 %v247_v16, %v243_v8  ;;  %v261_v39 = vsel %vm241_vm0, %v256_v25, %v260_v29  ;;  %v264_v41 = vor.u32 %v262_v31, %v260_v29  ;;  %v268_v44 = vrot.slane %v266_v34, 1  ;;  %v2511_v16 = vld [vmem:[%s3055_s1 + $0x48] sm:$0xff]   ;;  %v2744_v25 = vld [vmem:[%s2612_s25 + $0x30] sm:$0xff]   ;;  %v2752_v29 = vld [vmem:[%s2612_s25 + $0x18] sm:$0xff]  }
  0x19   : > { %v285_v43 = vsel %vm241_vm0, %v280_v33, %v284_v28  ;;  %v298_v45 = vshll.u32 %v2655_v35, 16  ;;  %v270_v47 = vshrl.u32 %v2648_v27, 16  ;;  %v293_v49 = vsel %vm241_vm0, %v288_v38, %v292_v40  ;;  %v2527_v31 = vld [vmem:[%s2612_s25 + $0x38] sm:$0xff]  }
  0x1a   : > { %v253_v32 = vsel %vm241_vm0, %v248_v24, %v252_v17  ;;  %2311 = vmatprep.mubr.msk.bf16.mxu1 %vm322_vm1, %v285_v43  ;;  %v296_v50 = vor.u32 %v294_v36, %v292_v40  ;;  %v302_v51 = vshrl.u32 %v2655_v35, 16  ;;  %v306_v52 = vshll.u32 %v2664_v42, 16  ;;  %v2721_v17 = vld [vmem:[%s2612_s25 + $0x10] sm:$0xff]   ;;  %v2741_v24 = vld [vmem:[%s3055_s1 + $0x60] sm:$0xff]  }
  0x1b   : > { %2303 = vmatprep.mubr.msk.bf16.mxu0 %vm322_vm1, %v253_v32  ;;  %2312 = vmatmul.mubr.msk.bf16.vlgmr.msra.gmra.mrb[0].mxu1 %vm322_vm1, %v293_v49  ;;  %v269_v53 = vsel %vm241_vm0, %v264_v41, %v268_v44  ;;  %v300_v54 = vrot.slane %v298_v45, 1  ;;  %v272_v55 = vor.u32 %v270_v47, %v268_v44  ;;  %v2074_v56 = vcombine.low %v553_v48, %v2616_v5  ;;  %v2530_v43 = vld [vmem:[%s2612_s25 + $0x40] sm:$0xff]   ;;  %v2532_v49 = vld [vmem:[%s2612_s25 + $0x48] ss:$0 sps:$4 sm:$0x11]  }
  0x1c   : > { %2304 = vmatmul.mubr.msk.bf16.vlgmr.msra.gmra.mrb[0].mxu0 %vm322_vm1, %v261_v39  ;;  %2320 = vmatpush3.bf16.msra.mxu1 %v2603_v2  ;;  %v308_v58 = vrot.slane %v306_v52, 1  ;;  %v566_v2 = vrot.slane %v2636_v14, 1  ;;  %v568_v5 = vrot.slane %v2648_v27, 1  ;;  %v572_v18 = vrot.slane %v2633_v13, 1  ;;  %v2769_v45 = vld [vmem:[%s2612_s25 + $0x20] sm:$0xff]  }
  0x1d   : > { %2340 = vmatpush3.bf16.msra.mxu0 %v2501_v3  ;;  %2307 = vmatprep.mubr.msk.bf16.mxu0 %vm322_vm1, %v269_v53  ;;  %v301_v59 = vsel %vm241_vm0, %v296_v50, %v300_v54  ;;  %v304_v60 = vor.u32 %v302_v51, %v300_v54  ;;  %v563_v61 = vrot.slane %v2074_v56, 1  ;;  %v277_v63 = vsel %vm241_vm0, %v272_v55, %v276_v26  ;;  %v907_v3 = vld [vmem:[%s2612_s25 + $0x8] sm:$0xf] }
  0x1e   : > { %2341 = vmatprep.subr.bf16.mxu0 %v2506_v37  ;;  %2321 = vmatprep.subr.bf16.mxu1 %v2504_v46  ;;  %v2708_v8 = vcombine.low %v907_v3, %v2701_v4  ;;  %v567_v9 = vsel %vm562_vm2, %v564_v15, %v566_v2  ;;  %v569_v10 = vsel %vm562_vm2, %v566_v2, %v568_v5  ;;  %v576_v20 = vrot.slane %v2655_v35, 1  ;;  %v1173_v51 = vld [vmem:[%s2612_s25 + $0x8] sm:$0xe] }
  0x1f   : > { %2315 = vmatprep.mubr.msk.bf16.mxu1 %vm322_vm1, %v301_v59  ;;  %v565_v0 = vsel %vm562_vm2, %v563_v61, %v564_v15  ;;  %v309_v1 = vsel %vm241_vm0, %v304_v60, %v308_v58  ;;  %v574_v15 = vrot.slane %v2645_v23, 1  ;;  %v578_v21 = vrot.slane %v2664_v42, 1  ;;  %v2789_v59 = vld [vmem:[%s2612_s25 + $0x28] sm:$0xff]  }
  0x20   : > { %2322 = vmatpush3.bf16.msra.mxu1 %v2504_v46  ;;  %v975_v19 = vshll.u32 %v2708_v8, 16  ;;  %v980_v26 = vshll.u32 %v2721_v17, 16  ;;  %v984_v28 = vshrl.u32 %v2721_v17, 16  ;;  %v1012_v30 = vshll.u32 %v2744_v25, 16 }
  0x21   : > { %2342 = vmatpush3.bf16.msra.mxu0 %v2506_v37  ;;  %2359 = vmatprep.subr.bf16.mxu1 %v2508_v62  ;;  %v1020_v37 = vshll.u32 %v2527_v31, 16  ;;  %v1024_v39 = vshrl.u32 %v2527_v31, 16  ;;  %v988_v44 = vshll.u32 %v2752_v29, 16  ;;  %v1028_v48 = vshll.u32 %v2530_v43, 16 }
  0x22   : > { %2379 = vmatprep.subr.bf16.mxu0 %v2509_v57  ;;  %v977_v33 = vrot.slane %v975_v19, 1  ;;  %v2760_v36 = vrot.slane %v1012_v30, 1  ;;  %v982_v38 = vrot.slane %v980_v26, 1  ;;  %v1032_v50 = vshrl.u32 %v2530_v43, 16  ;;  %v2512_v30 = vld [vmem:[%s2612_s25 + $0x8] sm:$0xff]  }
  0x23   : > { %2316 = vmatmul.mubr.msk.bf16.gmra.mrb[4].mxu1 %vm322_vm1, %v309_v1  ;;  %v1022_v41 = vrot.slane %v1020_v37, 1  ;;  %v1183_v52 = vrot.slane %v2721_v17, 1  ;;  %v1030_v53 = vrot.slane %v1028_v48, 1  ;;  %v1036_v54 = vshll.u32 %v2532_v49, 16 }
  0x24   : > { %2308 = vmatmul.mubr.msk.bf16.gmra.mrb[4].mxu0 %vm322_vm1, %v277_v63  ;;  %2323 = vmatprep.mubr.msk.bf16.mxu1 %vm322_vm1, %v2619_v6  ;;  %v570_v6 = vrot.slane %v2630_v12, 1  ;;  %v2134_v55 = vcombine.low %v1173_v51, %v2701_v4  ;;  %v577_v56 = vsel %vm562_vm2, %v574_v15, %v576_v20  ;;  %v996_v58 = vshll.u32 %v2769_v45, 16 }
  0x25   : > { %2343 = vmatprep.mubr.msk.bf16.mxu0 %vm322_vm1, %v565_v0  ;;  %v1026_v47 = vor.u32 %v1024_v39, %v1022_v41  ;;  %v1034_v60 = vor.u32 %v1032_v50, %v1030_v53  ;;  %v1038_v61 = vrot.slane %v1036_v54, 1  ;;  %v1000_v63 = vshrl.u32 %v2769_v45, 16  ;;  %v2549_v39 = vld [vmem:[%s2612_s25 + $0x20] sm:$0xff]   ;;  %v2551_v54 = vld [vmem:[%s2612_s25 + $0x30] sm:$0xff]  }
  0x26   : > { %v571_v32 = vsel %vm562_vm2, %v568_v5, %v570_v6  ;;  %v573_v34 = vsel %vm562_vm2, %v570_v6, %v572_v18  ;;  %v1191_v2 = vrot.slane %v2744_v25, 1  ;;  %v998_v3 = vrot.slane %v996_v58, 1 }
  0x27   : > { %v2797_v0 = vsel %vm241_vm0, %v1034_v60, %v1038_v61  ;;  %v1193_v4 = vrot.slane %v2527_v31, 1  ;;  %v1526_v31 = vld [vmem:[%s2612_s25 + $0x10] sm:$0xf]  ;;  %v1607_v50 = vshll.u32 %v2549_v39, 16  ;;  %v1804_v51 = vrot.slane %v2549_v39, 1  ;;  %v2552_v60 = vld [vmem:[%s2612_s25 + $0x38] sm:$0xff]  }
  0x28   : > { %v1002_v26 = vor.u32 %v1000_v63, %v998_v3  ;;  %v1611_v58 = vshrl.u32 %v2549_v39, 16  ;;  %v2525_v61 = vld [vmem:[%s3055_s1 + $0x58] sm:$0xff]   ;;  %v2535_v39 = vld [vmem:[%s3055_s1 + $0x70] sm:$0xff]   ;;  %v1189_v17 = vrot.slane %v2789_v59, 1 }
  0x29   : > { %v1609_v63 = vrot.slane %v1607_v50, 1  ;;  %v2521_v50 = vld [vmem:[%s2612_s25 + $0x20] sm:$0xff]  }
  0x2b   : > { %2324 = vmatmul.mubr.msk.bf16.vlgmr.msra.gmra.mrb[8].mxu1 %vm322_vm1, %v2622_v7  ;;  %v973_v7 = vshrl.u32 %v2708_v8, 16  ;;  %v1004_v8 = vshll.u32 %v2789_v59, 16 }
  0x2c   : > { %2344 = vmatmul.mubr.msk.bf16.vlgmr.msra.gmra.mrb[8].mxu0 %vm322_vm1, %v567_v9  ;;  %2360 = vmatpush3.bf16.msra.mxu1 %v2508_v62  ;;  %v1182_v62 = vrot.slane %v2134_v55, 1  ;;  %v1195_v9 = vrot.slane %v2530_v43, 1  ;;  %v2519_v55 = vld [vmem:[%s2612_s25 + $0x18] sm:$0xff]  }
  0x2d   : > { %2380 = vmatpush3.bf16.msra.mxu0 %v2509_v57  ;;  %2347 = vmatprep.mubr.msk.bf16.mxu0 %vm322_vm1, %v569_v10  ;;  %v992_v57 = vshrl.u32 %v2752_v29, 16  ;;  %v978_v5 = vor.u32 %v977_v33, %v973_v7  ;;  %v2814_v10 = vsel %vm562_vm2, %v1191_v2, %v1193_v4  ;;  %v1006_v42 = vrot.slane %v1004_v8, 1  ;;  %v1792_v33 = vld [vmem:[%s2612_s25 + $0x10] sm:$0xe] }
  0x2e   : > { %2381 = vmatprep.subr.bf16.mxu0 %v2511_v16  ;;  %2327 = vmatprep.mubr.msk.bf16.mxu1 %vm322_vm1, %v2636_v14  ;;  %v1016_v14 = vshrl.u32 %v2744_v25, 16  ;;  %v2802_v1 = vsel %vm562_vm2, %v1182_v62, %v1183_v52  ;;  %v2817_v6 = vsel %vm562_vm2, %v1193_v4, %v1195_v9  ;;  %v2545_v25 = vld [vmem:[%s2612_s25 + $0x48] sm:$0xff]  }
  0x2f   : > { %2361 = vmatprep.subr.bf16.mxu1 %v2510_v11  ;;  %v983_v19 = vsel %vm241_vm0, %v978_v5, %v982_v38  ;;  %v2843_v37 = vsel %vm241_vm0, %v1002_v26, %v1006_v42 }
  0x30   : > { %2362 = vmatpush3.bf16.msra.mxu1 %v2510_v11  ;;  %v1018_v40 = vor.u32 %v1016_v14, %v2760_v36  ;;  %v1197_v11 = vrot.slane %v2532_v49, 1 }
  0x31   : > { %2382 = vmatpush3.bf16.msra.mxu0 %v2511_v16  ;;  %2399 = vmatprep.subr.bf16.mxu1 %v2736_v22  ;;  %v990_v16 = vrot.slane %v988_v44, 1 }
  0x32   : > { %2419 = vmatprep.subr.bf16.mxu0 %v2741_v24  ;;  %v2774_v46 = vsel %vm241_vm0, %v1018_v40, %v1022_v41 }
  0x33   : > { %2328 = vmatmul.mubr.msk.bf16.gmra.mrb[12].mxu1 %vm322_vm1, %v2648_v27  ;;  %v575_v27 = vsel %vm562_vm2, %v572_v18, %v574_v15  ;;  %v1008_v18 = vshrl.u32 %v2789_v59, 16  ;;  %v2828_v15 = vsel %vm562_vm2, %v1195_v9, %v1197_v11  ;;  %v994_v7 = vor.u32 %v992_v57, %v990_v16  ;;  %v2872_v11 = vld [vmem:[%s3055_s1 + $0x80] sm:$0xff]   ;;  %v2542_v59 = vld [vmem:[%s2612_s25 + $0x38] sm:$0xff]  }
  0x34   : > { %2348 = vmatmul.mubr.msk.bf16.gmra.mrb[12].mxu0 %vm322_vm1, %v571_v32  ;;  %2331 = vmatprep.mubr.msk.bf16.mxu1 %vm322_vm1, %v2630_v12  ;;  %v2792_v12 = vsel %vm241_vm0, %v1026_v47, %v1030_v53  ;;  %v2547_v32 = vld [vmem:[%s2612_s25 + $0x18] sm:$0xff]   ;;  %v2528_v47 = vld [vmem:[%s3055_s1 + $0x68] sm:$0xff]  }
  0x35   : > { %2351 = vmatprep.mubr.msk.bf16.mxu0 %vm322_vm1, %v573_v34  ;;  %v999_v34 = vsel %vm241_vm0, %v994_v7, %v998_v3  ;;  %v1599_v43 = vshll.u32 %v2547_v32, 16  ;;  %v1603_v44 = vshrl.u32 %v2547_v32, 16  ;;  %v1802_v49 = vrot.slane %v2547_v32, 1  ;;  %v2550_v53 = vld [vmem:[%s2612_s25 + $0x28] sm:$0xff]  }
  0x36   : > { %v1615_v4 = vshll.u32 %v2550_v53, 16  ;;  %v1806_v8 = vrot.slane %v2550_v53, 1  ;;  %v1619_v9 = vshrl.u32 %v2550_v53, 16  ;;  %v2555_v32 = vld [vmem:[%s2612_s25 + $0x50] ss:$0 sps:$4 sm:$0x11]  }
  0x37   : > { %v1601_v57 = vrot.slane %v1599_v43, 1  ;;  %v2866_v3 = vsel %vm562_vm2, %v1802_v49, %v1804_v51 }
  0x3b   : > { %2332 = vmatmul.mubr.msk.bf16.gmra.mrb[16].mxu1 %vm322_vm1, %v2633_v13  ;;  %v579_v13 = vsel %vm562_vm2, %v576_v20, %v578_v21  ;;  %v1527_v20 = vld [vmem:[%s2612_s25 + $0x14] sm:$0xf]  ;;  %v1010_v21 = vor.u32 %v1008_v18, %v1006_v42  ;;  %v1808_v18 = vrot.slane %v2551_v54, 1  ;;  %v2884_v42 = vsel %vm562_vm2, %v1804_v51, %v1806_v8 }
  0x3c   : > { %2352 = vmatmul.mubr.msk.bf16.gmra.mrb[16].mxu0 %vm322_vm1, %v575_v27  ;;  %2335 = vmatprep.mubr.msk.bf16.mxu1 %vm322_vm1, %v2645_v23  ;;  %v986_v23 = vor.u32 %v984_v28, %v982_v38  ;;  %v2171_v28 = vcombine.low %v1526_v31, %v1527_v20  ;;  %v2194_v38 = vcombine.low %v1792_v33, %v1527_v20  ;;  %v2554_v31 = vld [vmem:[%s2612_s25 + $0x48] sm:$0xff]   ;;  %v1631_v33 = vshll.u32 %v2552_v60, 16 }
  0x3d   : > { %2355 = vmatprep.mubr.msk.bf16.mxu0 %vm322_vm1, %v577_v56  ;;  %v2856_v27 = vsel %vm241_vm0, %v1010_v21, %v2760_v36  ;;  %v1605_v36 = vor.u32 %v1603_v44, %v1601_v57  ;;  %v1814_v53 = vrot.slane %v2554_v31, 1 }
  0x3e   : > { %v991_v14 = vsel %vm241_vm0, %v986_v23, %v990_v16  ;;  %v1592_v40 = vshrl.u32 %v2171_v28, 16  ;;  %v1594_v41 = vshll.u32 %v2171_v28, 16  ;;  %v1801_v48 = vrot.slane %v2194_v38, 1 }
  0x3f   : > { %v1613_v16 = vor.u32 %v1611_v58, %v1609_v63  ;;  %v1623_v23 = vshll.u32 %v2551_v54, 16  ;;  %v2881_v26 = vsel %vm241_vm0, %v1605_v36, %v1609_v63  ;;  %v2892_v28 = vsel %vm562_vm2, %v1806_v8, %v1808_v18 }
  0x40   : > { %v1596_v56 = vrot.slane %v1594_v41, 1  ;;  %v2863_v62 = vsel %vm562_vm2, %v1801_v48, %v1802_v49  ;;  %v1647_v49 = vshll.u32 %v2554_v31, 16 }
  0x41   : > { %v1625_v21 = vrot.slane %v1623_v23, 1  ;;  %v2531_v23 = vld [vmem:[%s2612_s25 + $0x40] sm:$0xff]  }
  0x42   : > { %v1597_v5 = vor.u32 %v1596_v56, %v1592_v40  ;;  %v2523_v56 = vld [vmem:[%s2612_s25 + $0x28] sm:$0xff]  }
  0x43   : > { %2336 = vmatmul.mubr.msk.bf16.gmra.mrb[20].mxu1 %vm322_vm1, %v2655_v35  ;;  %v2516_v35 = vld [vmem:[%s2612_s25 + $0x10] sm:$0xff]  }
  0x44   : > { %2356 = vmatmul.mubr.msk.bf16.gmra.mrb[20].mxu0 %vm322_vm1, %v579_v13  ;;  %2363 = vmatprep.mubr.msk.bf16.mxu1 %vm322_vm1, %v2512_v30  ;;  %v1617_v13 = vrot.slane %v1615_v4, 1  ;;  %v2878_v7 = vsel %vm241_vm0, %v1597_v5, %v1601_v57  ;;  %v1627_v30 = vshrl.u32 %v2551_v54, 16  ;;  %v1651_v54 = vshrl.u32 %v2554_v31, 16 }
  0x45   : > { %2383 = vmatprep.mubr.msk.bf16.mxu0 %vm322_vm1, %v983_v19  ;;  %v2553_v19 = vld [vmem:[%s2612_s25 + $0x40] sm:$0xff]   ;;  %v1816_v5 = vrot.slane %v2555_v32, 1 }
  0x46   : > { %v2889_v20 = vsel %vm241_vm0, %v1613_v16, %v1617_v13  ;;  %v1639_v38 = vshll.u32 %v2553_v19, 16  ;;  %v1629_v41 = vor.u32 %v1627_v30, %v1625_v21  ;;  %v1812_v43 = vrot.slane %v2553_v19, 1  ;;  %v2529_v16 = vld [vmem:[%s2612_s25 + $0x38] sm:$0xff]   ;;  %v2543_v30 = vld [vmem:[%s3055_s1 + $0x88] sm:$0xff]  }
  0x47   : > { %v1643_v44 = vshrl.u32 %v2553_v19, 16  ;;  %v2538_v19 = vld [vmem:[%s2612_s25 + $0x20] sm:$0xff]  }
  0x48   : > { %v1641_v48 = vrot.slane %v1639_v38, 1  ;;  %v2918_v63 = vsel %vm562_vm2, %v1812_v43, %v1814_v53 }
  0x4a   : > { %v1645_v58 = vor.u32 %v1643_v44, %v1641_v48 }
  0x4b   : > { %2364 = vmatmul.mubr.msk.bf16.vlgmr.msra.gmra.mrb[24].mxu1 %vm322_vm1, %v2516_v35 }
  0x4c   : > { %2384 = vmatmul.mubr.msk.bf16.vlgmr.msra.gmra.mrb[24].mxu0 %vm322_vm1, %v991_v14  ;;  %2400 = vmatpush3.bf16.msra.mxu1 %v2736_v22  ;;  %v1810_v14 = vrot.slane %v2552_v60, 1  ;;  %v1633_v22 = vrot.slane %v1631_v33, 1 }
  0x4d   : > { %2420 = vmatpush3.bf16.msra.mxu0 %v2741_v24  ;;  %2387 = vmatprep.mubr.msk.bf16.mxu0 %vm322_vm1, %v999_v34  ;;  %v1621_v24 = vor.u32 %v1619_v9, %v1617_v13  ;;  %v1635_v34 = vshrl.u32 %v2552_v60, 16  ;;  %v1649_v60 = vrot.slane %v1647_v49, 1  ;;  %v2534_v13 = vld [vmem:[%s2612_s25 + $0x10] sm:$0xff]  }
  0x4e   : > { %2421 = vmatprep.subr.bf16.mxu0 %v2528_v47  ;;  %2367 = vmatprep.mubr.msk.bf16.mxu1 %vm322_vm1, %v2519_v55  ;;  %v2904_v35 = vsel %vm562_vm2, %v1808_v18, %v1810_v14  ;;  %v2909_v51 = vsel %vm562_vm2, %v1810_v14, %v1812_v43  ;;  %v1655_v55 = vshll.u32 %v2555_v32, 16  ;;  %v2913_v57 = vsel %vm241_vm0, %v1629_v41, %v1633_v22 }
  0x4f   : > { %2401 = vmatprep.subr.bf16.mxu1 %v2525_v61  ;;  %v2901_v40 = vsel %vm241_vm0, %v1621_v24, %v1625_v21  ;;  %v2926_v36 = vsel %vm241_vm0, %v1645_v58, %v1649_v60  ;;  %v1653_v8 = vor.u32 %v1651_v54, %v1649_v60  ;;  %v1187_v18 = vrot.slane %v2769_v45, 1  ;;  %v2539_v45 = vld [vmem:[%s2612_s25 + $0x28] sm:$0xff]   ;;  %v2544_v24 = vld [vmem:[%s2612_s25 + $0x40] sm:$0xff]  }
  0x50   : > { %2402 = vmatpush3.bf16.msra.mxu1 %v2525_v61  ;;  %v1657_v4 = vrot.slane %v1655_v55, 1 }
  0x51   : > { %2422 = vmatpush3.bf16.msra.mxu0 %v2528_v47  ;;  %v1637_v47 = vor.u32 %v1635_v34, %v1633_v22  ;;  %2439 = vmatprep.subr.bf16.mxu1 %v2535_v39  ;;  %v1190_v31 = vsel %vm562_vm2, %v1187_v18, %v1189_v17 }
  0x52   : > { %2459 = vmatprep.subr.bf16.mxu0 %v2872_v11  ;;  %v2934_v9 = vsel %vm241_vm0, %v1653_v8, %v1657_v4 }
  0x53   : > { %v2923_v61 = vsel %vm241_vm0, %v1637_v47, %v1641_v48  ;;  %2368 = vmatmul.mubr.msk.bf16.gmra.mrb[28].mxu1 %vm322_vm1, %v2521_v50 }
  0x54   : > { %2388 = vmatmul.mubr.msk.bf16.gmra.mrb[28].mxu0 %vm322_vm1, %v2843_v37  ;;  %v2930_v37 = vsel %vm562_vm2, %v1814_v53, %v1816_v5  ;;  %2371 = vmatprep.mubr.msk.bf16.mxu1 %vm322_vm1, %v2523_v56 }
  0x55   : > { %2391 = vmatprep.mubr.msk.bf16.mxu0 %vm322_vm1, %v2856_v27  ;;  %v2526_v27 = vld [vmem:[%s2612_s25 + $0x30] sm:$0xff]  }
  0x5b   : > { %2372 = vmatmul.mubr.msk.bf16.gmra.mrb[32].mxu1 %vm322_vm1, %v2526_v27 }
  0x5c   : > { %2392 = vmatmul.mubr.msk.bf16.gmra.mrb[32].mxu0 %vm322_vm1, %v2774_v46  ;;  %2375 = vmatprep.mubr.msk.bf16.mxu1 %vm322_vm1, %v2529_v16  ;;  %v1185_v46 = vrot.slane %v2752_v29, 1  ;;  %v2541_v29 = vld [vmem:[%s3055_s1 + $0x78] sm:$0xff]  }
  0x5d   : > { %2395 = vmatprep.mubr.msk.bf16.mxu0 %vm322_vm1, %v2792_v12  ;;  %v2536_v12 = vld [vmem:[%s2612_s25 + $0x18] sm:$0xff]  }
  0x63   : > { %2376 = vmatmul.mubr.msk.bf16.gmra.mrb[36].mxu1 %vm322_vm1, %v2531_v23 }
  0x64   : > { %2396 = vmatmul.mubr.msk.bf16.gmra.mrb[36].mxu0 %vm322_vm1, %v2797_v0  ;;  %2403 = vmatprep.mubr.msk.bf16.mxu1 %vm322_vm1, %v2802_v1  ;;  %v1186_v0 = vsel %vm562_vm2, %v1183_v52, %v1185_v46  ;;  %v1188_v1 = vsel %vm562_vm2, %v1185_v46, %v1187_v18  ;;  %v2540_v52 = vld [vmem:[%s2612_s25 + $0x30] sm:$0xff]   ;;  %s2208_s25 = sshll.u32 %s3059_s13, 6 }
  0x65   : > { %2423 = vmatprep.mubr.msk.bf16.mxu0 %vm322_vm1, %v2534_v13  ;;  %s3033_s7 = scalar_lea.vmem %s3057_s3, %s2208_s25 }
  0x6b   : > { %2404 = vmatmul.mubr.msk.bf16.vlgmr.msra.gmra.mrb[40].mxu1 %vm322_vm1, %v1186_v0 }
  0x6c   : > { %2424 = vmatmul.mubr.msk.bf16.vlgmr.msra.gmra.mrb[40].mxu0 %vm322_vm1, %v2536_v12  ;;  %2440 = vmatpush3.bf16.msra.mxu1 %v2535_v39 }
  0x6d   : > { %2460 = vmatpush3.bf16.msra.mxu0 %v2872_v11  ;;  %2427 = vmatprep.mubr.msk.bf16.mxu0 %vm322_vm1, %v2538_v19  ;;  %v1192_v11 = vsel %vm562_vm2, %v1189_v17, %v1191_v2 }
  0x6e   : > { %2461 = vmatprep.subr.bf16.mxu0 %v2543_v30  ;;  %2407 = vmatprep.mubr.msk.bf16.mxu1 %vm322_vm1, %v1188_v1 }
  0x6f   : > { %2441 = vmatprep.subr.bf16.mxu1 %v2541_v29 }
  0x70   : > { %2442 = vmatpush3.bf16.msra.mxu1 %v2541_v29 }
  0x71   : > { %2462 = vmatpush3.bf16.msra.mxu0 %v2543_v30 }
  0x73   : > { %2408 = vmatmul.mubr.msk.bf16.gmra.mrb[44].mxu1 %vm322_vm1, %v1190_v31 }
  0x74   : > { %2428 = vmatmul.mubr.msk.bf16.gmra.mrb[44].mxu0 %vm322_vm1, %v2539_v45  ;;  %2411 = vmatprep.mubr.msk.bf16.mxu1 %vm322_vm1, %v1192_v11 }
  0x75   : > { %2431 = vmatprep.mubr.msk.bf16.mxu0 %vm322_vm1, %v2540_v52 }
  0x7b   : > { %2412 = vmatmul.mubr.msk.bf16.gmra.mrb[48].mxu1 %vm322_vm1, %v2814_v10 }
  0x7c   : > { %2432 = vmatmul.mubr.msk.bf16.gmra.mrb[48].mxu0 %vm322_vm1, %v2542_v59  ;;  %2415 = vmatprep.mubr.msk.bf16.mxu1 %vm322_vm1, %v2817_v6 }
  0x7d   : > { %2435 = vmatprep.mubr.msk.bf16.mxu0 %vm322_vm1, %v2544_v24 }
  0x83   : > { %2416 = vmatmul.mubr.msk.bf16.gmra.mrb[52].mxu1 %vm322_vm1, %v2828_v15 }
  0x84   : > { %2436 = vmatmul.mubr.msk.bf16.gmra.mrb[52].mxu0 %vm322_vm1, %v2545_v25  ;;  %2443 = vmatprep.mubr.msk.bf16.mxu1 %vm322_vm1, %v2878_v7 }
  0x85   : > { %2463 = vmatprep.mubr.msk.bf16.mxu0 %vm322_vm1, %v2863_v62 }
  0x8b   : > { %2444 = vmatmul.mubr.msk.bf16.vlgmr.msra.gmra.mrb[56].mxu1 %vm322_vm1, %v2881_v26 }
  0x8c   : > { %2464 = vmatmul.mubr.msk.bf16.vlgmr.msra.gmra.mrb[56].mxu0 %vm322_vm1, %v2866_v3  ;;  %2447 = vmatprep.mubr.msk.bf16.mxu1 %vm322_vm1, %v2889_v20 }
  0x8d   : > { %2467 = vmatprep.mubr.msk.bf16.mxu0 %vm322_vm1, %v2884_v42 }
  0x93   : > { %2448 = vmatmul.mubr.msk.bf16.gmra.mrb[60].mxu1 %vm322_vm1, %v2901_v40 }
  0x94   : > { %2468 = vmatmul.mubr.msk.bf16.gmra.mrb[60].mxu0 %vm322_vm1, %v2892_v28  ;;  %2451 = vmatprep.mubr.msk.bf16.mxu1 %vm322_vm1, %v2913_v57 }
  0x95   : > { %2471 = vmatprep.mubr.msk.bf16.mxu0 %vm322_vm1, %v2904_v35 }
  0x9b   : > { %2452 = vmatmul.mubr.msk.bf16.gmra.mrb[64].mxu1 %vm322_vm1, %v2923_v61 }
  0x9c   : > { %2472 = vmatmul.mubr.msk.bf16.gmra.mrb[64].mxu0 %vm322_vm1, %v2909_v51  ;;  %2455 = vmatprep.mubr.msk.bf16.mxu1 %vm322_vm1, %v2926_v36 }
  0x9d   : > { %2475 = vmatprep.mubr.msk.bf16.mxu0 %vm322_vm1, %v2918_v63 }
  0xa3   : > { %2456 = vmatmul.mubr.msk.bf16.gmra.mrb[68].mxu1 %vm322_vm1, %v2934_v9 }
  0xa4   : > { %2476 = vmatmul.mubr.msk.bf16.gmra.mrb[68].mxu0 %vm322_vm1, %v2930_v37 }
  0xee   : > { %v2313_v6 = vpop.f32.mrb[0].mxu1 }
  0xef   : > { %v2305_v2 = vpop.f32.mrb[0].mxu0  ;;  %v409_v62 = vpop.f32.mrb[1].mxu1 }
  0xf0   : > { %v381_v10 = vpop.f32.mrb[1].mxu0  ;;  %v2314_v7 = vpop.f32.mrb[2].mxu1 }
  0xf1   : > { %v2306_v15 = vpop.f32.mrb[2].mxu0  ;;  %v412_v26 = vpop.f32.mrb[3].mxu1 }
  0xf2   : > { %v384_v3 = vpop.f32.mrb[3].mxu0 }
  0xf6   : > { %v2317_v21 = vpop.f32.mrb[4].mxu1 }
  0xf7   : > { %v2309_v42 = vpop.f32.mrb[4].mxu0  ;;  %v423_v32 = vpop.f32.mrb[5].mxu1 }
  0xf8   : > { %v395_v20 = vpop.f32.mrb[5].mxu0  ;;  %v2318_v14 = vpop.f32.mrb[6].mxu1 }
  0xf9   : > { %v2310_v28 = vpop.f32.mrb[6].mxu0  ;;  %v426_v34 = vpop.f32.mrb[7].mxu1 }
  0xfa   : > { %v398_v33 = vpop.f32.mrb[7].mxu0 }
  0xfe   : > { %v2325_v40 = vpop.f32.mrb[8].mxu1 }
  0xff   : > { %v2345_v38 = vpop.f32.mrb[8].mxu0  ;;  %v506_v43 = vadd.f32 %v2325_v40, %v2305_v2  ;;  %v498_v44 = vpop.f32.mrb[9].mxu1 }
 0x100   : > { %v650_v39 = vpop.f32.mrb[9].mxu0  ;;  %v499_v35 = vadd.f32 %v498_v44, %v381_v10  ;;  %v2326_v48 = vpop.f32.mrb[10].mxu1 }
 0x101   : > { %v2346_v41 = vpop.f32.mrb[10].mxu0  ;;  %v706_v49 = vadd.f32 %v2345_v38, %v506_v43  ;;  %v501_v50 = vpop.f32.mrb[11].mxu1 }
 0x102   : > { %v653_v22 = vpop.f32.mrb[11].mxu0  ;;  %v705_v51 = vadd.f32 %v650_v39, %v499_v35 }
 0x106   : > { %v2329_v55 = vpop.f32.mrb[12].mxu1 }
 0x107   : > { %v2349_v53 = vpop.f32.mrb[12].mxu0  ;;  %v520_v57 = vadd.f32 %v2329_v55, %v2309_v42  ;;  %v512_v47 = vpop.f32.mrb[13].mxu1 }
 0x108   : > { %v664_v54 = vpop.f32.mrb[13].mxu0  ;;  %v513_v60 = vadd.f32 %v512_v47, %v395_v20  ;;  %v2330_v63 = vpop.f32.mrb[14].mxu1 }
 0x109   : > { %v2350_v56 = vpop.f32.mrb[14].mxu0  ;;  %v708_v4 = vadd.f32 %v2349_v53, %v520_v57  ;;  %v515_v5 = vpop.f32.mrb[15].mxu1 }
 0x10a   : > { %v667_v58 = vpop.f32.mrb[15].mxu0  ;;  %v707_v61 = vadd.f32 %v664_v54, %v513_v60 }
 0x10e   : > { %v2333_v37 = vpop.f32.mrb[16].mxu1 }
 0x10f   : > { %v2353_v36 = vpop.f32.mrb[16].mxu0  ;;  %v534_v27 = vadd.f32 %v2333_v37, %v2313_v6  ;;  %v526_v16 = vpop.f32.mrb[17].mxu1 }
 0x110   : > { %v678_v8 = vpop.f32.mrb[17].mxu0  ;;  %v527_v23 = vadd.f32 %v526_v16, %v409_v62  ;;  %v2334_v46 = vpop.f32.mrb[18].mxu1 }
 0x111   : > { %v2354_v9 = vpop.f32.mrb[18].mxu0  ;;  %v710_v12 = vadd.f32 %v2353_v36, %v534_v27  ;;  %v529_v18 = vpop.f32.mrb[19].mxu1 }
 0x112   : > { %v681_v13 = vpop.f32.mrb[19].mxu0  ;;  %v709_v19 = vadd.f32 %v678_v8, %v527_v23 }
 0x116   : > { %v2337_v1 = vpop.f32.mrb[20].mxu1 }
 0x117   : > { %v2357_v30 = vpop.f32.mrb[20].mxu0  ;;  %v548_v17 = vadd.f32 %v2337_v1, %v2317_v21  ;;  %v540_v45 = vpop.f32.mrb[21].mxu1 }
 0x118   : > { %v692_v0 = vpop.f32.mrb[21].mxu0  ;;  %v541_v31 = vadd.f32 %v540_v45, %v423_v32  ;;  %v2338_v11 = vpop.f32.mrb[22].mxu1 }
 0x119   : > { %v2358_v29 = vpop.f32.mrb[22].mxu0  ;;  %v712_v59 = vadd.f32 %v2357_v30, %v548_v17  ;;  %v543_v24 = vpop.f32.mrb[23].mxu1 }
 0x11a   : > { %v695_v52 = vpop.f32.mrb[23].mxu0  ;;  %v711_v25 = vadd.f32 %v692_v0, %v541_v31 }
 0x11e   : > { %v2365_v6 = vpop.f32.mrb[24].mxu1 }
 0x11f   : > { %v2385_v2 = vpop.f32.mrb[24].mxu0  ;;  %v900_v62 = vadd.f32 %v2365_v6, %v706_v49  ;;  %v844_v3 = vpop.f32.mrb[25].mxu1 }
 0x120   : > { %v1110_v10 = vpop.f32.mrb[25].mxu0  ;;  %v899_v26 = vadd.f32 %v844_v3, %v705_v51  ;;  %v2366_v42 = vpop.f32.mrb[26].mxu1 }
 0x121   : > { %v2386_v15 = vpop.f32.mrb[26].mxu0  ;;  %v1166_v20 = vadd.f32 %v2385_v2, %v900_v62  ;;  %v847_v28 = vpop.f32.mrb[27].mxu1 }
 0x122   : > { %v1113_v7 = vpop.f32.mrb[27].mxu0  ;;  %v1165_v33 = vadd.f32 %v1110_v10, %v899_v26 }
 0x126   : > { %v2369_v34 = vpop.f32.mrb[28].mxu1 }
 0x127   : > { %v2389_v21 = vpop.f32.mrb[28].mxu0  ;;  %v902_v38 = vadd.f32 %v2369_v34, %v708_v4  ;;  %v858_v39 = vpop.f32.mrb[29].mxu1 }
 0x128   : > { %v1124_v14 = vpop.f32.mrb[29].mxu0  ;;  %v901_v41 = vadd.f32 %v858_v39, %v707_v61  ;;  %v2370_v43 = vpop.f32.mrb[30].mxu1 }
 0x129   : > { %v2390_v32 = vpop.f32.mrb[30].mxu0  ;;  %v1168_v44 = vadd.f32 %v2389_v21, %v902_v38  ;;  %v861_v22 = vpop.f32.mrb[31].mxu1 }
 0x12a   : > { %v1127_v40 = vpop.f32.mrb[31].mxu0  ;;  %v1167_v35 = vadd.f32 %v1124_v14, %v901_v41 }
 0x12e   : > { %v2373_v50 = vpop.f32.mrb[32].mxu1 }
 0x12f   : > { %v2393_v48 = vpop.f32.mrb[32].mxu0  ;;  %v904_v53 = vadd.f32 %v2373_v50, %v710_v12  ;;  %v872_v54 = vpop.f32.mrb[33].mxu1 }
 0x130   : > { %v1138_v49 = vpop.f32.mrb[33].mxu0  ;;  %v903_v56 = vadd.f32 %v872_v54, %v709_v19  ;;  %v2374_v57 = vpop.f32.mrb[34].mxu1 }
 0x131   : > { %v2394_v51 = vpop.f32.mrb[34].mxu0  ;;  %v1170_v47 = vadd.f32 %v2393_v48, %v904_v53  ;;  %v875_v58 = vpop.f32.mrb[35].mxu1 }
 0x132   : > { %v1141_v55 = vpop.f32.mrb[35].mxu0  ;;  %v1169_v60 = vadd.f32 %v1138_v49, %v903_v56 }
 0x136   : > { %v2377_v5 = vpop.f32.mrb[36].mxu1 }
 0x137   : > { %v2397_v63 = vpop.f32.mrb[36].mxu0  ;;  %v906_v36 = vadd.f32 %v2377_v5, %v712_v59  ;;  %v886_v8 = vpop.f32.mrb[37].mxu1 }
 0x138   : > { %v1152_v4 = vpop.f32.mrb[37].mxu0  ;;  %v905_v9 = vadd.f32 %v886_v8, %v711_v25  ;;  %v2378_v27 = vpop.f32.mrb[38].mxu1 }
 0x139   : > { %v2398_v61 = vpop.f32.mrb[38].mxu0  ;;  %v1172_v16 = vadd.f32 %v2397_v63, %v906_v36  ;;  %v889_v13 = vpop.f32.mrb[39].mxu1 }
 0x13a   : > { %v1155_v37 = vpop.f32.mrb[39].mxu0  ;;  %v1171_v23 = vadd.f32 %v1152_v4, %v905_v9  ;;  %v2205_v61 = vld [vmem:[%s3056_s2] ss:$0 sm:$0xff] }
 0x13e   : > { %v2405_v18 = vpop.f32.mrb[40].mxu1 }
 0x13f   : > { %v2425_v46 = vpop.f32.mrb[40].mxu0  ;;  %v1325_v30 = vadd.f32 %v2405_v18, %v1166_v20  ;;  %v1269_v0 = vpop.f32.mrb[41].mxu1 }
 0x140   : > { %v1463_v12 = vpop.f32.mrb[41].mxu0  ;;  %v1324_v29 = vadd.f32 %v1269_v0, %v1165_v33  ;;  %v2406_v17 = vpop.f32.mrb[42].mxu1 }
 0x141   : > { %v2426_v19 = vpop.f32.mrb[42].mxu0  ;;  %v1519_v45 = vadd.f32 %v2425_v46, %v1325_v30  ;;  %v1272_v52 = vpop.f32.mrb[43].mxu1 }
 0x142   : > { %v1466_v1 = vpop.f32.mrb[43].mxu0  ;;  %v1518_v31 = vadd.f32 %v1463_v12, %v1324_v29 }
 0x146   : > { %v2409_v24 = vpop.f32.mrb[44].mxu1 }
 0x147   : > { %v2429_v11 = vpop.f32.mrb[44].mxu0  ;;  %v1327_v2 = vadd.f32 %v2409_v24, %v1168_v44  ;;  %v1283_v10 = vpop.f32.mrb[45].mxu1 }
 0x148   : > { %v1477_v59 = vpop.f32.mrb[45].mxu0  ;;  %v1326_v15 = vadd.f32 %v1283_v10, %v1167_v35  ;;  %v2410_v62 = vpop.f32.mrb[46].mxu1 }
 0x149   : > { %v2430_v25 = vpop.f32.mrb[46].mxu0  ;;  %v1521_v3 = vadd.f32 %v2429_v11, %v1327_v2  ;;  %v1286_v7 = vpop.f32.mrb[47].mxu1 }
 0x14a   : > { %v1480_v6 = vpop.f32.mrb[47].mxu0  ;;  %v1520_v26 = vadd.f32 %v1477_v59, %v1326_v15 }
 0x14e   : > { %v2413_v28 = vpop.f32.mrb[48].mxu1 }
 0x14f   : > { %v2433_v42 = vpop.f32.mrb[48].mxu0  ;;  %v1329_v21 = vadd.f32 %v2413_v28, %v1170_v47  ;;  %v1297_v14 = vpop.f32.mrb[49].mxu1 }
 0x150   : > { %v1491_v20 = vpop.f32.mrb[49].mxu0  ;;  %v1328_v32 = vadd.f32 %v1297_v14, %v1169_v60  ;;  %v2414_v38 = vpop.f32.mrb[50].mxu1 }
 0x151   : > { %v2434_v33 = vpop.f32.mrb[50].mxu0  ;;  %v1523_v39 = vadd.f32 %v2433_v42, %v1329_v21  ;;  %v1300_v40 = vpop.f32.mrb[51].mxu1 }
 0x152   : > { %v1494_v34 = vpop.f32.mrb[51].mxu0  ;;  %v1522_v41 = vadd.f32 %v1491_v20, %v1328_v32 }
 0x156   : > { %v2417_v22 = vpop.f32.mrb[52].mxu1 }
 0x157   : > { %v2437_v43 = vpop.f32.mrb[52].mxu0  ;;  %v1331_v48 = vadd.f32 %v2417_v22, %v1172_v16  ;;  %v1311_v49 = vpop.f32.mrb[53].mxu1 }
 0x158   : > { %v1505_v44 = vpop.f32.mrb[53].mxu0  ;;  %v1330_v51 = vadd.f32 %v1311_v49, %v1171_v23  ;;  %v2418_v53 = vpop.f32.mrb[54].mxu1 }
 0x159   : > { %v2438_v35 = vpop.f32.mrb[54].mxu0  ;;  %v1525_v54 = vadd.f32 %v2437_v43, %v1331_v48  ;;  %v1314_v55 = vpop.f32.mrb[55].mxu1 }
 0x15a   : > { %v1508_v50 = vpop.f32.mrb[55].mxu0  ;;  %v1524_v56 = vadd.f32 %v1505_v44, %v1330_v51 }
 0x15e   : > { %v2445_v58 = vpop.f32.mrb[56].mxu1 }
 0x15f   : > { %v2465_v57 = vpop.f32.mrb[56].mxu0  ;;  %v1785_v63 = vadd.f32 %v2445_v58, %v1519_v45  ;;  %v1729_v4 = vpop.f32.mrb[57].mxu1 }
 0x160   : > { %v1888_v47 = vpop.f32.mrb[57].mxu0  ;;  %v1784_v36 = vadd.f32 %v1729_v4, %v1518_v31  ;;  %v2446_v8 = vpop.f32.mrb[58].mxu1 }
 0x161   : > { %v2466_v60 = vpop.f32.mrb[58].mxu0  ;;  %v1944_v37 = vadd.f32 %v2465_v57, %v1785_v63  ;;  %v1732_v9 = vpop.f32.mrb[59].mxu1 }
 0x162   : > { %v1891_v5 = vpop.f32.mrb[59].mxu0  ;;  %v1943_v27 = vadd.f32 %v1888_v47, %v1784_v36 }
 0x163   : > { %v1959_v16 = vadd.f32 %v2205_v61, %v1944_v37 }
 0x164   : > { %v1958_v13 = vadd.f32 %v2205_v61, %v1943_v27 }
 0x165   : > { %1967 = vst.msk [vmem:[%s3033_s7 + $0x8] sm:$0xff] %vm322_vm1, %v1959_v16 }
 0x166   : > { %1966 = vst.msk [vmem:[%s3033_s7] sm:$0xff] %vm322_vm1, %v1958_v13  ;;  %v2449_v12 = vpop.f32.mrb[60].mxu1 }
 0x167   : > { %v2469_v23 = vpop.f32.mrb[60].mxu0  ;;  %v1787_v19 = vadd.f32 %v2449_v12, %v1521_v3  ;;  %v1743_v30 = vpop.f32.mrb[61].mxu1 }
 0x168   : > { %v1902_v46 = vpop.f32.mrb[61].mxu0  ;;  %v1786_v1 = vadd.f32 %v1743_v30, %v1520_v26  ;;  %v2450_v29 = vpop.f32.mrb[62].mxu1 }
 0x169   : > { %v2470_v18 = vpop.f32.mrb[62].mxu0  ;;  %v1946_v17 = vadd.f32 %v2469_v23, %v1787_v19  ;;  %v1746_v45 = vpop.f32.mrb[63].mxu1 }
 0x16a   : > { %v1905_v0 = vpop.f32.mrb[63].mxu0  ;;  %v1945_v52 = vadd.f32 %v1902_v46, %v1786_v1 }
 0x16b   : > { %v1961_v31 = vadd.f32 %v2205_v61, %v1946_v17 }
 0x16c   : > { %v1960_v11 = vadd.f32 %v2205_v61, %v1945_v52 }
 0x16d   : > { %1969 = vst.msk [vmem:[%s3033_s7 + $0x18] sm:$0xff] %vm322_vm1, %v1961_v31 }
 0x16e   : > { %1968 = vst.msk [vmem:[%s3033_s7 + $0x10] sm:$0xff] %vm322_vm1, %v1960_v11  ;;  %v2453_v25 = vpop.f32.mrb[64].mxu1 }
 0x16f   : > { %v2473_v59 = vpop.f32.mrb[64].mxu0  ;;  %v1789_v10 = vadd.f32 %v2453_v25, %v1523_v39  ;;  %v1757_v6 = vpop.f32.mrb[65].mxu1 }
 0x170   : > { %v1916_v24 = vpop.f32.mrb[65].mxu0  ;;  %v1788_v62 = vadd.f32 %v1757_v6, %v1522_v41  ;;  %v2454_v3 = vpop.f32.mrb[66].mxu1 }
 0x171   : > { %v2474_v2 = vpop.f32.mrb[66].mxu0  ;;  %v1948_v7 = vadd.f32 %v2473_v59, %v1789_v10  ;;  %v1760_v26 = vpop.f32.mrb[67].mxu1 }
 0x172   : > { %v1919_v15 = vpop.f32.mrb[67].mxu0  ;;  %v1947_v42 = vadd.f32 %v1916_v24, %v1788_v62 }
 0x173   : > { %v1963_v20 = vadd.f32 %v2205_v61, %v1948_v7 }
 0x174   : > { %v1962_v28 = vadd.f32 %v2205_v61, %v1947_v42 }
 0x175   : > { %1971 = vst.msk [vmem:[%s3033_s7 + $0x28] sm:$0xff] %vm322_vm1, %v1963_v20 }
 0x176   : > { %1970 = vst.msk [vmem:[%s3033_s7 + $0x20] sm:$0xff] %vm322_vm1, %v1962_v28  ;;  %v2457_v14 = vpop.f32.mrb[68].mxu1 }
 0x177   : > { %v2477_v33 = vpop.f32.mrb[68].mxu0  ;;  %v1791_v32 = vadd.f32 %v2457_v14, %v1525_v54  ;;  %v1771_v38 = vpop.f32.mrb[69].mxu1 }
 0x178   : > { %v1930_v21 = vpop.f32.mrb[69].mxu0  ;;  %v1790_v40 = vadd.f32 %v1771_v38, %v1524_v56  ;;  %v2458_v41 = vpop.f32.mrb[70].mxu1 }
 0x179   : > { %v2478_v34 = vpop.f32.mrb[70].mxu0  ;;  %v1950_v43 = vadd.f32 %v2477_v33, %v1791_v32  ;;  %v1774_v44 = vpop.f32.mrb[71].mxu1 }
 0x17a   : > { %v1933_v39 = vpop.f32.mrb[71].mxu0  ;;  %v1949_v22 = vadd.f32 %v1930_v21, %v1790_v40 }
 0x17b   : > { %v1965_v35 = vadd.f32 %v2205_v61, %v1950_v43 }
 0x17c   : > { %v1964_v48 = vadd.f32 %v2205_v61, %v1949_v22 }
 0x17d   : > { %1973 = vst.msk [vmem:[%s3033_s7 + $0x38] sm:$0xff] %vm322_vm1, %v1965_v35 }
 0x17e   : > { %1972 = vst.msk [vmem:[%s3033_s7 + $0x30] sm:$0xff] %vm322_vm1, %v1964_v48 }
 0x17f PF: > { %s13_s12 = sadd.s32 1, %s2562_s12  }
 0x180   : > { %p10_p4 = scmp.ge.s32.totalorder %s13_s12, 4  }
 0x182   :  { %12 = sbr.rel (!%p10_p4) target bundleno = 1 (0x1), region = 70 }

</bundles_post_ra>
